<compile_context>
chip_gen: v6e
topology: v6e:2x2x1
jax: 0.10.0
libtpu: 0.0.40
codegen_flags: <defaults>
</compile_context>

<pallas_src>
import functools

import jax
import jax.numpy as jnp
from jax.experimental import pallas as pl
from jax.experimental.pallas import tpu as pltpu

_SQRT2_INV = 0.7071067811865475  # 1/sqrt(2)
_LN_EPS = 1e-5                   # torch.nn.LayerNorm default eps


# ---------------------------------------------------------------------------
# in-kernel math helpers
# ---------------------------------------------------------------------------
def _erf(x):
    # Abramowitz & Stegun 7.1.26 rational approximation, |abs err| <= 1.5e-7.
    # Used instead of jax.lax.erf because erf has no Mosaic lowering on all
    # jax versions; this uses only VPU mul/add/div plus one EUP exp.
    a = jnp.abs(x)
    t = 1.0 / (1.0 + 0.3275911 * a)
    poly = ((((1.061405429 * t - 1.453152027) * t + 1.421413741) * t
             - 0.284496736) * t + 0.254829592) * t
    e = 1.0 - poly * jnp.exp(-(a * a))
    return jnp.where(x < 0.0, -e, e)


def _gelu_exact(x):
    # torch.nn.GELU() default: exact erf-based GELU.
    # TODO(synk): tanh-approximate GELU would shift work to the idle EUP but
    # changes numerics vs torch's default, so it is intentionally not used.
    return 0.5 * x * (1.0 + _erf(x * _SQRT2_INV))


def _ln_core(x):
    # LayerNorm *without* the affine (gamma/beta folded into the next Linear).
    mu = jnp.mean(x, axis=-1, keepdims=True)
    xc = x - mu
    var = jnp.mean(xc * xc, axis=-1, keepdims=True)
    return xc * jax.lax.rsqrt(var + _LN_EPS)


# ---------------------------------------------------------------------------
# Pallas kernel: whole critic forward for one (TB, input_dim) batch tile
# ---------------------------------------------------------------------------
def critic_kernel(x_ref, w1_ref, w2_ref, w3_ref, wv1_ref, vec_ref, bv2_ref,
                  v_ref):
    # vec_ref rows: 0=b1, 1=b2', 2=b3', 3=bv1', 4=wv2' (LN affines pre-folded).
    b1 = vec_ref[0:1, :]
    b2 = vec_ref[1:2, :]
    b3 = vec_ref[2:3, :]
    bv1 = vec_ref[3:4, :]

    x = x_ref[...]
    h = _ln_core(_gelu_exact(
        jnp.dot(x, w1_ref[...], preferred_element_type=jnp.float32) + b1))
    h = _ln_core(_gelu_exact(
        jnp.dot(h, w2_ref[...], preferred_element_type=jnp.float32) + b2))
    h = _ln_core(_gelu_exact(
        jnp.dot(h, w3_ref[...], preferred_element_type=jnp.float32) + b3))
    h = _ln_core(_gelu_exact(
        jnp.dot(h, wv1_ref[...], preferred_element_type=jnp.float32) + bv1))

    # Value head: contract the whole (8, d) vector pack against h (TB, d) on
    # the feature axis -> (8, TB).  Row 4 is wv2'.h, i.e. V(s) for every
    # sample of the tile, already lane-dense.  The 7 unused rows keep the lhs
    # sublane-aligned; the extra MXU work is free in this VALU-bound kernel.
    vv = jax.lax.dot_general(vec_ref[...], h, (((1,), (1,)), ((), ())),
                             preferred_element_type=jnp.float32)
    v_ref[...] = vv[4:5, :] + bv2_ref[0, 0]


def _round_up(n, m):
    return ((n + m - 1) // m) * m


@functools.partial(jax.jit, static_argnames=("tb",))
def quadruped_critic_forward(x, folded_params, *, tb=128):
    """x: (B, input_dim) f32 -> (B, 1) f32.  folded_params from fold_params()."""
    w1, w2, w3, wv1, vec_pack, bv2 = folded_params
    B, in_dim = x.shape
    d = w2.shape[0]

    # --- batch tiling --------------------------------------------------------
    # tb is a vreg-pressure knob (prefer 128, max 256); it must be a multiple
    # of 128 so the lane-dense (1, tb) output block satisfies the lane rule.
    if B <= 128:
        tb = _round_up(max(B, 1), 8)        # degenerate single-tile case
    else:
        tb = 256 if tb >= 256 else 128
        if B <= tb:                          # guarantee >= 2 tiles so both v7x
            tb = 128                         # TensorCores get work
    n_tiles = pl.cdiv(B, tb)
    b_out = n_tiles * tb

    # No full pad copy of x: multi-tile ragged batches use Pallas' partial
    # last block (OOB rows are garbage, row-independent, sliced off).  Only
    # the single-tile case may need a < 8 row pad to keep the block in bounds.
    if n_tiles == 1 and tb != B:
        x = jnp.pad(x, ((0, tb - B), (0, 0)))

    # Weights / packed vectors are VMEM-resident (constant block index).
    # TODO(synk): for very large dim_feedforward, add pipeline_mode=
    # pl.Buffered(1) on these resident specs to drop their second buffer.
    in_specs = [
        pl.BlockSpec((tb, in_dim), lambda i: (i, 0)),       # activations
        pl.BlockSpec((in_dim, d), lambda i: (0, 0)),        # W1
        pl.BlockSpec((d, d), lambda i: (0, 0)),             # W2 (LN1 folded)
        pl.BlockSpec((d, d), lambda i: (0, 0)),             # W3 (LN2 folded)
        pl.BlockSpec((d, d), lambda i: (0, 0)),             # Wv1 (LN3 folded)
        pl.BlockSpec((8, d), lambda i: (0, 0)),             # packed b/wv2 rows
        pl.BlockSpec(memory_space=pltpu.MemorySpace.SMEM),  # bv2 scalar
    ]
    out_spec = pl.BlockSpec((1, tb), lambda i: (0, i))      # lane-dense row

    weight_bytes = 4 * (in_dim * d + 3 * d * d + 8 * d)
    flops = 2 * b_out * (in_dim * d + 3 * d * d + 8 * d)
    transcendentals = b_out * (4 * d + 4)                   # exp (erf) + rsqrt
    bytes_accessed = 4 * (b_out * in_dim + b_out) + weight_bytes

    # Raise the scoped-VMEM limit only when the double-buffered resident
    # weights approach the default limit (large dim_feedforward); stay under
    # v7x's 64 MiB physical VMEM.
    vmem_est = 2 * weight_bytes + 16 * tb * (in_dim + d) + 32 * tb * d
    vmem_limit = None
    if vmem_est > 12 * 1024 * 1024:
        vmem_limit = int(min(60 * 1024 * 1024,
                             max(32 * 1024 * 1024, 2 * vmem_est)))

    out = pl.pallas_call(
        critic_kernel,
        out_shape=jax.ShapeDtypeStruct((1, b_out), jnp.float32),
        grid=(n_tiles,),
        in_specs=in_specs,
        out_specs=out_spec,
        compiler_params=pltpu.CompilerParams(
            dimension_semantics=("parallel",),
            vmem_limit_bytes=vmem_limit),
        cost_estimate=pl.CostEstimate(
            flops=flops,
            transcendentals=transcendentals,
            bytes_accessed=bytes_accessed),
    )(x, w1, w2, w3, wv1, vec_pack, bv2)

    return out[0, :B].reshape(B, 1)


# ---------------------------------------------------------------------------
# parameters: torch-shaped init + one-time host-side LN-affine folding
# ---------------------------------------------------------------------------
def init_params(key, input_dim, dim_feedforward):
    d = dim_feedforward

    def linear(k, fan_in, fan_out):
        kw, kb = jax.random.split(k)
        bound = 1.0 / jnp.sqrt(jnp.float32(fan_in))
        w = jax.random.uniform(kw, (fan_in, fan_out), jnp.float32, -bound, bound)
        b = jax.random.uniform(kb, (1, fan_out), jnp.float32, -bound, bound)
        return w, b

    def layernorm(k):
        kg, kb = jax.random.split(k)
        # non-trivial gamma/beta so the folding path is actually exercised
        gamma = 1.0 + 0.1 * jax.random.normal(kg, (1, d), jnp.float32)
        beta = 0.1 * jax.random.normal(kb, (1, d), jnp.float32)
        return gamma, beta

    ks = jax.random.split(key, 9)
    w1, b1 = linear(ks[0], input_dim, d); g1, be1 = layernorm(ks[1])
    w2, b2 = linear(ks[2], d, d);         g2, be2 = layernorm(ks[3])
    w3, b3 = linear(ks[4], d, d);         g3, be3 = layernorm(ks[5])
    wv1, bv1 = linear(ks[6], d, d);       gv, bev = layernorm(ks[7])
    wv2, bv2 = linear(ks[8], d, 1)                       # (d, 1), (1, 1)
    return (w1, b1, g1, be1, w2, b2, g2, be2, w3, b3, g3, be3,
            wv1, bv1, gv, bev, wv2, bv2)


def fold_params(params):
    """One-time preprocessing: fold each LayerNorm's (gamma, beta) into the
    following Linear (gamma scales its rows; beta @ W adds to its bias) and
    pack the remaining (1, d) vectors into a single (8, d) array."""
    (w1, b1, g1, be1, w2, b2, g2, be2, w3, b3, g3, be3,
     wv1, bv1, gv, bev, wv2, bv2) = params
    hp = jax.lax.Precision.HIGHEST
    d = w2.shape[0]

    w2f = w2 * g1.reshape(d, 1)
    b2f = b2 + jnp.dot(be1, w2, precision=hp)
    w3f = w3 * g2.reshape(d, 1)
    b3f = b3 + jnp.dot(be2, w3, precision=hp)
    wv1f = wv1 * g3.reshape(d, 1)
    bv1f = bv1 + jnp.dot(be3, wv1, precision=hp)
    wv2f = wv2.reshape(1, d) * gv
    bv2f = bv2 + jnp.dot(bev, wv2, precision=hp)          # (1, 1)

    vec_pack = jnp.zeros((8, d), jnp.float32)
    vec_pack = vec_pack.at[0].set(b1[0]).at[1].set(b2f[0]).at[2].set(b3f[0])
    vec_pack = vec_pack.at[3].set(bv1f[0]).at[4].set(wv2f[0])
    return (w1, w2f, w3f, wv1f, vec_pack, bv2f)


# pure-JAX, torch-faithful reference (exact erf GELU, affine LayerNorm)
def reference_forward(x, params):
    (w1, b1, g1, be1, w2, b2, g2, be2, w3, b3, g3, be3,
     wv1, bv1, gv, bev, wv2, bv2) = params
    hp = jax.lax.Precision.HIGHEST

    def block(h, w, b, g, be):
        h = jnp.dot(h, w, precision=hp) + b
        h = 0.5 * h * (1.0 + jax.lax.erf(h * _SQRT2_INV))
        mu = jnp.mean(h, axis=-1, keepdims=True)
        var = jnp.mean((h - mu) ** 2, axis=-1, keepdims=True)
        return (h - mu) * jax.lax.rsqrt(var + _LN_EPS) * g + be

    h = block(x, w1, b1, g1, be1)
    h = block(h, w2, b2, g2, be2)
    h = block(h, w3, b3, g3, be3)
    h = block(h, wv1, bv1, gv, bev)
    return jnp.dot(h, wv2, precision=hp) + bv2


if __name__ == "__main__":
    # Small shapes consistent with the module; B=200 deliberately exercises
    # a 2-step "parallel" batch grid with a ragged last tile (no pad copy).
    B, INPUT_DIM, D_FF = 200, 32, 128

    key = jax.random.PRNGKey(0)
    k_params, k_x = jax.random.split(key)
    params = init_params(k_params, INPUT_DIM, D_FF)
    folded = fold_params(params)
    x = jax.random.normal(k_x, (B, INPUT_DIM), jnp.float32)

    v = quadruped_critic_forward(x, folded, tb=128)
    v = jax.block_until_ready(v)

    v_ref = reference_forward(x, params)
    assert v.shape == (B, 1), v.shape
    assert bool(jnp.all(jnp.isfinite(v)))
    max_err = float(jnp.max(jnp.abs(v - v_ref)))
    # Tolerance covers the in-kernel erf polynomial (<=1.5e-7), EUP
    # transcendental rounding, and LN-fold reassociation; structural bugs
    # would show up as O(0.1 - 1) errors.
    assert jnp.allclose(v, v_ref, atol=1e-3, rtol=1e-3), (
        f"mismatch: max abs err = {max_err}")

    print("KERNEL_OK")
</pallas_src>

<mosaic_0001>
module attributes {stable_mosaic.version = 11 : i64} {
  func.func @critic_kernel(%arg0: i32, %arg1: memref<128x32xf32, #tpu.memory_space<vmem>>, %arg2: memref<32x128xf32, #tpu.memory_space<vmem>>, %arg3: memref<128x128xf32, #tpu.memory_space<vmem>>, %arg4: memref<128x128xf32, #tpu.memory_space<vmem>>, %arg5: memref<128x128xf32, #tpu.memory_space<vmem>>, %arg6: memref<8x128xf32, #tpu.memory_space<vmem>>, %arg7: memref<1x1xf32, #tpu.memory_space<smem>>, %arg8: memref<1x128xf32, #tpu.memory_space<vmem>>) attributes {dimension_semantics = [#tpu.dimension_semantics<parallel>], iteration_bounds = array<i64: 2>, scalar_prefetch = 0 : i64, scratch_operands = 0 : i64, tpu.core_type = #tpu.core_type<tc>, window_params = [{transform_indices = @transform_0, window_bounds = array<i64: 128, 32>}, {pipeline_mode = #tpu.pipeline_mode<synchronous>, transform_indices = @transform_1, window_bounds = array<i64: 32, 128>}, {pipeline_mode = #tpu.pipeline_mode<synchronous>, transform_indices = @transform_2, window_bounds = array<i64: 128, 128>}, {pipeline_mode = #tpu.pipeline_mode<synchronous>, transform_indices = @transform_3, window_bounds = array<i64: 128, 128>}, {pipeline_mode = #tpu.pipeline_mode<synchronous>, transform_indices = @transform_4, window_bounds = array<i64: 128, 128>}, {pipeline_mode = #tpu.pipeline_mode<synchronous>, transform_indices = @transform_5, window_bounds = array<i64: 8, 128>}, {transform_indices = @transform_6, window_bounds = array<i64: 1, 1>}, {transform_indices = @transform_7, window_bounds = array<i64: 1, 128>}]} {
    %c0 = arith.constant 0 : index
    %c0_0 = arith.constant 0 : index
    %0 = vector.load %arg6[%c0, %c0_0] : memref<8x128xf32, #tpu.memory_space<vmem>>, vector<1x128xf32>
    %c1 = arith.constant 1 : index
    %c0_1 = arith.constant 0 : index
    %1 = vector.load %arg6[%c1, %c0_1] : memref<8x128xf32, #tpu.memory_space<vmem>>, vector<1x128xf32>
    %c2 = arith.constant 2 : index
    %c0_2 = arith.constant 0 : index
    %2 = vector.load %arg6[%c2, %c0_2] : memref<8x128xf32, #tpu.memory_space<vmem>>, vector<1x128xf32>
    %c3 = arith.constant 3 : index
    %c0_3 = arith.constant 0 : index
    %3 = vector.load %arg6[%c3, %c0_3] : memref<8x128xf32, #tpu.memory_space<vmem>>, vector<1x128xf32>
    %c0_4 = arith.constant 0 : index
    %c0_5 = arith.constant 0 : index
    %4 = vector.load %arg1[%c0_4, %c0_5] : memref<128x32xf32, #tpu.memory_space<vmem>>, vector<128x32xf32>
    %c0_6 = arith.constant 0 : index
    %c0_7 = arith.constant 0 : index
    %5 = vector.load %arg2[%c0_6, %c0_7] : memref<32x128xf32, #tpu.memory_space<vmem>>, vector<32x128xf32>
    %cst = arith.constant dense<0.000000e+00> : vector<128x128xf32>
    %6 = tpu.matmul %4, %5, %cst {dimension_numbers = #tpu.dot_dimension_numbers<[1], [0], [0], [1], [0, 0, 1, 1], [], []>} : vector<128x32xf32>, vector<32x128xf32>, vector<128x128xf32> -> vector<128x128xf32>
    %7 = vector.broadcast %0 : vector<1x128xf32> to vector<128x128xf32>
    %8 = arith.addf %6, %7 : vector<128x128xf32>
    %cst_8 = arith.constant 5.000000e-01 : f32
    %9 = vector.broadcast %cst_8 : f32 to vector<128x128xf32>
    %10 = arith.mulf %9, %8 : vector<128x128xf32>
    %cst_9 = arith.constant 0.707106769 : f32
    %11 = vector.broadcast %cst_9 : f32 to vector<128x128xf32>
    %12 = arith.mulf %8, %11 : vector<128x128xf32>
    %13 = math.absf %12 : vector<128x128xf32>
    %cst_10 = arith.constant 0.327591091 : f32
    %14 = vector.broadcast %cst_10 : f32 to vector<128x128xf32>
    %15 = arith.mulf %14, %13 : vector<128x128xf32>
    %cst_11 = arith.constant 1.000000e+00 : f32
    %16 = vector.broadcast %cst_11 : f32 to vector<128x128xf32>
    %17 = arith.addf %16, %15 : vector<128x128xf32>
    %cst_12 = arith.constant 1.000000e+00 : f32
    %18 = vector.broadcast %cst_12 : f32 to vector<128x128xf32>
    %19 = arith.divf %18, %17 : vector<128x128xf32>
    %cst_13 = arith.constant 1.06140542 : f32
    %20 = vector.broadcast %cst_13 : f32 to vector<128x128xf32>
    %21 = arith.mulf %20, %19 : vector<128x128xf32>
    %cst_14 = arith.constant 1.45315206 : f32
    %22 = vector.broadcast %cst_14 : f32 to vector<128x128xf32>
    %23 = arith.subf %21, %22 : vector<128x128xf32>
    %24 = arith.mulf %23, %19 : vector<128x128xf32>
    %cst_15 = arith.constant 1.42141378 : f32
    %25 = vector.broadcast %cst_15 : f32 to vector<128x128xf32>
    %26 = arith.addf %24, %25 : vector<128x128xf32>
    %27 = arith.mulf %26, %19 : vector<128x128xf32>
    %cst_16 = arith.constant 0.284496725 : f32
    %28 = vector.broadcast %cst_16 : f32 to vector<128x128xf32>
    %29 = arith.subf %27, %28 : vector<128x128xf32>
    %30 = arith.mulf %29, %19 : vector<128x128xf32>
    %cst_17 = arith.constant 0.254829586 : f32
    %31 = vector.broadcast %cst_17 : f32 to vector<128x128xf32>
    %32 = arith.addf %30, %31 : vector<128x128xf32>
    %33 = arith.mulf %32, %19 : vector<128x128xf32>
    %34 = arith.mulf %13, %13 : vector<128x128xf32>
    %cst_18 = arith.constant 0.000000e+00 : f32
    %35 = vector.broadcast %cst_18 : f32 to vector<128x128xf32>
    %36 = arith.subf %35, %34 : vector<128x128xf32>
    %37 = math.exp %36 : vector<128x128xf32>
    %38 = arith.mulf %33, %37 : vector<128x128xf32>
    %cst_19 = arith.constant 1.000000e+00 : f32
    %39 = vector.broadcast %cst_19 : f32 to vector<128x128xf32>
    %40 = arith.subf %39, %38 : vector<128x128xf32>
    %cst_20 = arith.constant 0.000000e+00 : f32
    %41 = vector.broadcast %cst_20 : f32 to vector<128x128xf32>
    %42 = arith.cmpf olt, %12, %41 : vector<128x128xf32>
    %cst_21 = arith.constant 0.000000e+00 : f32
    %43 = vector.broadcast %cst_21 : f32 to vector<128x128xf32>
    %44 = arith.subf %43, %40 : vector<128x128xf32>
    %45 = arith.select %42, %44, %40 : vector<128x128xi1>, vector<128x128xf32>
    %cst_22 = arith.constant 1.000000e+00 : f32
    %46 = vector.broadcast %cst_22 : f32 to vector<128x128xf32>
    %47 = arith.addf %46, %45 : vector<128x128xf32>
    %48 = arith.mulf %10, %47 : vector<128x128xf32>
    %cst_23 = arith.constant dense<0.000000e+00> : vector<128xf32>
    %49 = vector.multi_reduction <add>, %48, %cst_23 [1] : vector<128x128xf32> to vector<128xf32>
    %50 = vector.shape_cast %49 : vector<128xf32> to vector<128x1xf32>
    %cst_24 = arith.constant 1.280000e+02 : f32
    %51 = vector.broadcast %cst_24 : f32 to vector<128x1xf32>
    %52 = arith.divf %50, %51 : vector<128x1xf32>
    %53 = vector.broadcast %52 : vector<128x1xf32> to vector<128x128xf32>
    %54 = arith.subf %48, %53 : vector<128x128xf32>
    %55 = arith.mulf %54, %54 : vector<128x128xf32>
    %cst_25 = arith.constant dense<0.000000e+00> : vector<128xf32>
    %56 = vector.multi_reduction <add>, %55, %cst_25 [1] : vector<128x128xf32> to vector<128xf32>
    %57 = vector.shape_cast %56 : vector<128xf32> to vector<128x1xf32>
    %cst_26 = arith.constant 1.280000e+02 : f32
    %58 = vector.broadcast %cst_26 : f32 to vector<128x1xf32>
    %59 = arith.divf %57, %58 : vector<128x1xf32>
    %cst_27 = arith.constant 9.99999974E-6 : f32
    %60 = vector.broadcast %cst_27 : f32 to vector<128x1xf32>
    %61 = arith.addf %59, %60 : vector<128x1xf32>
    %62 = math.rsqrt %61 : vector<128x1xf32>
    %63 = vector.broadcast %62 : vector<128x1xf32> to vector<128x128xf32>
    %64 = arith.mulf %54, %63 : vector<128x128xf32>
    %c0_28 = arith.constant 0 : index
    %c0_29 = arith.constant 0 : index
    %65 = vector.load %arg3[%c0_28, %c0_29] : memref<128x128xf32, #tpu.memory_space<vmem>>, vector<128x128xf32>
    %cst_30 = arith.constant dense<0.000000e+00> : vector<128x128xf32>
    %66 = tpu.matmul %64, %65, %cst_30 {dimension_numbers = #tpu.dot_dimension_numbers<[1], [0], [0], [1], [0, 0, 1, 1], [], []>} : vector<128x128xf32>, vector<128x128xf32>, vector<128x128xf32> -> vector<128x128xf32>
    %67 = vector.broadcast %1 : vector<1x128xf32> to vector<128x128xf32>
    %68 = arith.addf %66, %67 : vector<128x128xf32>
    %cst_31 = arith.constant 5.000000e-01 : f32
    %69 = vector.broadcast %cst_31 : f32 to vector<128x128xf32>
    %70 = arith.mulf %69, %68 : vector<128x128xf32>
    %cst_32 = arith.constant 0.707106769 : f32
    %71 = vector.broadcast %cst_32 : f32 to vector<128x128xf32>
    %72 = arith.mulf %68, %71 : vector<128x128xf32>
    %73 = math.absf %72 : vector<128x128xf32>
    %cst_33 = arith.constant 0.327591091 : f32
    %74 = vector.broadcast %cst_33 : f32 to vector<128x128xf32>
    %75 = arith.mulf %74, %73 : vector<128x128xf32>
    %cst_34 = arith.constant 1.000000e+00 : f32
    %76 = vector.broadcast %cst_34 : f32 to vector<128x128xf32>
    %77 = arith.addf %76, %75 : vector<128x128xf32>
    %cst_35 = arith.constant 1.000000e+00 : f32
    %78 = vector.broadcast %cst_35 : f32 to vector<128x128xf32>
    %79 = arith.divf %78, %77 : vector<128x128xf32>
    %cst_36 = arith.constant 1.06140542 : f32
    %80 = vector.broadcast %cst_36 : f32 to vector<128x128xf32>
    %81 = arith.mulf %80, %79 : vector<128x128xf32>
    %cst_37 = arith.constant 1.45315206 : f32
    %82 = vector.broadcast %cst_37 : f32 to vector<128x128xf32>
    %83 = arith.subf %81, %82 : vector<128x128xf32>
    %84 = arith.mulf %83, %79 : vector<128x128xf32>
    %cst_38 = arith.constant 1.42141378 : f32
    %85 = vector.broadcast %cst_38 : f32 to vector<128x128xf32>
    %86 = arith.addf %84, %85 : vector<128x128xf32>
    %87 = arith.mulf %86, %79 : vector<128x128xf32>
    %cst_39 = arith.constant 0.284496725 : f32
    %88 = vector.broadcast %cst_39 : f32 to vector<128x128xf32>
    %89 = arith.subf %87, %88 : vector<128x128xf32>
    %90 = arith.mulf %89, %79 : vector<128x128xf32>
    %cst_40 = arith.constant 0.254829586 : f32
    %91 = vector.broadcast %cst_40 : f32 to vector<128x128xf32>
    %92 = arith.addf %90, %91 : vector<128x128xf32>
    %93 = arith.mulf %92, %79 : vector<128x128xf32>
    %94 = arith.mulf %73, %73 : vector<128x128xf32>
    %cst_41 = arith.constant 0.000000e+00 : f32
    %95 = vector.broadcast %cst_41 : f32 to vector<128x128xf32>
    %96 = arith.subf %95, %94 : vector<128x128xf32>
    %97 = math.exp %96 : vector<128x128xf32>
    %98 = arith.mulf %93, %97 : vector<128x128xf32>
    %cst_42 = arith.constant 1.000000e+00 : f32
    %99 = vector.broadcast %cst_42 : f32 to vector<128x128xf32>
    %100 = arith.subf %99, %98 : vector<128x128xf32>
    %cst_43 = arith.constant 0.000000e+00 : f32
    %101 = vector.broadcast %cst_43 : f32 to vector<128x128xf32>
    %102 = arith.cmpf olt, %72, %101 : vector<128x128xf32>
    %cst_44 = arith.constant 0.000000e+00 : f32
    %103 = vector.broadcast %cst_44 : f32 to vector<128x128xf32>
    %104 = arith.subf %103, %100 : vector<128x128xf32>
    %105 = arith.select %102, %104, %100 : vector<128x128xi1>, vector<128x128xf32>
    %cst_45 = arith.constant 1.000000e+00 : f32
    %106 = vector.broadcast %cst_45 : f32 to vector<128x128xf32>
    %107 = arith.addf %106, %105 : vector<128x128xf32>
    %108 = arith.mulf %70, %107 : vector<128x128xf32>
    %cst_46 = arith.constant dense<0.000000e+00> : vector<128xf32>
    %109 = vector.multi_reduction <add>, %108, %cst_46 [1] : vector<128x128xf32> to vector<128xf32>
    %110 = vector.shape_cast %109 : vector<128xf32> to vector<128x1xf32>
    %cst_47 = arith.constant 1.280000e+02 : f32
    %111 = vector.broadcast %cst_47 : f32 to vector<128x1xf32>
    %112 = arith.divf %110, %111 : vector<128x1xf32>
    %113 = vector.broadcast %112 : vector<128x1xf32> to vector<128x128xf32>
    %114 = arith.subf %108, %113 : vector<128x128xf32>
    %115 = arith.mulf %114, %114 : vector<128x128xf32>
    %cst_48 = arith.constant dense<0.000000e+00> : vector<128xf32>
    %116 = vector.multi_reduction <add>, %115, %cst_48 [1] : vector<128x128xf32> to vector<128xf32>
    %117 = vector.shape_cast %116 : vector<128xf32> to vector<128x1xf32>
    %cst_49 = arith.constant 1.280000e+02 : f32
    %118 = vector.broadcast %cst_49 : f32 to vector<128x1xf32>
    %119 = arith.divf %117, %118 : vector<128x1xf32>
    %cst_50 = arith.constant 9.99999974E-6 : f32
    %120 = vector.broadcast %cst_50 : f32 to vector<128x1xf32>
    %121 = arith.addf %119, %120 : vector<128x1xf32>
    %122 = math.rsqrt %121 : vector<128x1xf32>
    %123 = vector.broadcast %122 : vector<128x1xf32> to vector<128x128xf32>
    %124 = arith.mulf %114, %123 : vector<128x128xf32>
    %c0_51 = arith.constant 0 : index
    %c0_52 = arith.constant 0 : index
    %125 = vector.load %arg4[%c0_51, %c0_52] : memref<128x128xf32, #tpu.memory_space<vmem>>, vector<128x128xf32>
    %cst_53 = arith.constant dense<0.000000e+00> : vector<128x128xf32>
    %126 = tpu.matmul %124, %125, %cst_53 {dimension_numbers = #tpu.dot_dimension_numbers<[1], [0], [0], [1], [0, 0, 1, 1], [], []>} : vector<128x128xf32>, vector<128x128xf32>, vector<128x128xf32> -> vector<128x128xf32>
    %127 = vector.broadcast %2 : vector<1x128xf32> to vector<128x128xf32>
    %128 = arith.addf %126, %127 : vector<128x128xf32>
    %cst_54 = arith.constant 5.000000e-01 : f32
    %129 = vector.broadcast %cst_54 : f32 to vector<128x128xf32>
    %130 = arith.mulf %129, %128 : vector<128x128xf32>
    %cst_55 = arith.constant 0.707106769 : f32
    %131 = vector.broadcast %cst_55 : f32 to vector<128x128xf32>
    %132 = arith.mulf %128, %131 : vector<128x128xf32>
    %133 = math.absf %132 : vector<128x128xf32>
    %cst_56 = arith.constant 0.327591091 : f32
    %134 = vector.broadcast %cst_56 : f32 to vector<128x128xf32>
    %135 = arith.mulf %134, %133 : vector<128x128xf32>
    %cst_57 = arith.constant 1.000000e+00 : f32
    %136 = vector.broadcast %cst_57 : f32 to vector<128x128xf32>
    %137 = arith.addf %136, %135 : vector<128x128xf32>
    %cst_58 = arith.constant 1.000000e+00 : f32
    %138 = vector.broadcast %cst_58 : f32 to vector<128x128xf32>
    %139 = arith.divf %138, %137 : vector<128x128xf32>
    %cst_59 = arith.constant 1.06140542 : f32
    %140 = vector.broadcast %cst_59 : f32 to vector<128x128xf32>
    %141 = arith.mulf %140, %139 : vector<128x128xf32>
    %cst_60 = arith.constant 1.45315206 : f32
    %142 = vector.broadcast %cst_60 : f32 to vector<128x128xf32>
    %143 = arith.subf %141, %142 : vector<128x128xf32>
    %144 = arith.mulf %143, %139 : vector<128x128xf32>
    %cst_61 = arith.constant 1.42141378 : f32
    %145 = vector.broadcast %cst_61 : f32 to vector<128x128xf32>
    %146 = arith.addf %144, %145 : vector<128x128xf32>
    %147 = arith.mulf %146, %139 : vector<128x128xf32>
    %cst_62 = arith.constant 0.284496725 : f32
    %148 = vector.broadcast %cst_62 : f32 to vector<128x128xf32>
    %149 = arith.subf %147, %148 : vector<128x128xf32>
    %150 = arith.mulf %149, %139 : vector<128x128xf32>
    %cst_63 = arith.constant 0.254829586 : f32
    %151 = vector.broadcast %cst_63 : f32 to vector<128x128xf32>
    %152 = arith.addf %150, %151 : vector<128x128xf32>
    %153 = arith.mulf %152, %139 : vector<128x128xf32>
    %154 = arith.mulf %133, %133 : vector<128x128xf32>
    %cst_64 = arith.constant 0.000000e+00 : f32
    %155 = vector.broadcast %cst_64 : f32 to vector<128x128xf32>
    %156 = arith.subf %155, %154 : vector<128x128xf32>
    %157 = math.exp %156 : vector<128x128xf32>
    %158 = arith.mulf %153, %157 : vector<128x128xf32>
    %cst_65 = arith.constant 1.000000e+00 : f32
    %159 = vector.broadcast %cst_65 : f32 to vector<128x128xf32>
    %160 = arith.subf %159, %158 : vector<128x128xf32>
    %cst_66 = arith.constant 0.000000e+00 : f32
    %161 = vector.broadcast %cst_66 : f32 to vector<128x128xf32>
    %162 = arith.cmpf olt, %132, %161 : vector<128x128xf32>
    %cst_67 = arith.constant 0.000000e+00 : f32
    %163 = vector.broadcast %cst_67 : f32 to vector<128x128xf32>
    %164 = arith.subf %163, %160 : vector<128x128xf32>
    %165 = arith.select %162, %164, %160 : vector<128x128xi1>, vector<128x128xf32>
    %cst_68 = arith.constant 1.000000e+00 : f32
    %166 = vector.broadcast %cst_68 : f32 to vector<128x128xf32>
    %167 = arith.addf %166, %165 : vector<128x128xf32>
    %168 = arith.mulf %130, %167 : vector<128x128xf32>
    %cst_69 = arith.constant dense<0.000000e+00> : vector<128xf32>
    %169 = vector.multi_reduction <add>, %168, %cst_69 [1] : vector<128x128xf32> to vector<128xf32>
    %170 = vector.shape_cast %169 : vector<128xf32> to vector<128x1xf32>
    %cst_70 = arith.constant 1.280000e+02 : f32
    %171 = vector.broadcast %cst_70 : f32 to vector<128x1xf32>
    %172 = arith.divf %170, %171 : vector<128x1xf32>
    %173 = vector.broadcast %172 : vector<128x1xf32> to vector<128x128xf32>
    %174 = arith.subf %168, %173 : vector<128x128xf32>
    %175 = arith.mulf %174, %174 : vector<128x128xf32>
    %cst_71 = arith.constant dense<0.000000e+00> : vector<128xf32>
    %176 = vector.multi_reduction <add>, %175, %cst_71 [1] : vector<128x128xf32> to vector<128xf32>
    %177 = vector.shape_cast %176 : vector<128xf32> to vector<128x1xf32>
    %cst_72 = arith.constant 1.280000e+02 : f32
    %178 = vector.broadcast %cst_72 : f32 to vector<128x1xf32>
    %179 = arith.divf %177, %178 : vector<128x1xf32>
    %cst_73 = arith.constant 9.99999974E-6 : f32
    %180 = vector.broadcast %cst_73 : f32 to vector<128x1xf32>
    %181 = arith.addf %179, %180 : vector<128x1xf32>
    %182 = math.rsqrt %181 : vector<128x1xf32>
    %183 = vector.broadcast %182 : vector<128x1xf32> to vector<128x128xf32>
    %184 = arith.mulf %174, %183 : vector<128x128xf32>
    %c0_74 = arith.constant 0 : index
    %c0_75 = arith.constant 0 : index
    %185 = vector.load %arg5[%c0_74, %c0_75] : memref<128x128xf32, #tpu.memory_space<vmem>>, vector<128x128xf32>
    %cst_76 = arith.constant dense<0.000000e+00> : vector<128x128xf32>
    %186 = tpu.matmul %184, %185, %cst_76 {dimension_numbers = #tpu.dot_dimension_numbers<[1], [0], [0], [1], [0, 0, 1, 1], [], []>} : vector<128x128xf32>, vector<128x128xf32>, vector<128x128xf32> -> vector<128x128xf32>
    %187 = vector.broadcast %3 : vector<1x128xf32> to vector<128x128xf32>
    %188 = arith.addf %186, %187 : vector<128x128xf32>
    %cst_77 = arith.constant 5.000000e-01 : f32
    %189 = vector.broadcast %cst_77 : f32 to vector<128x128xf32>
    %190 = arith.mulf %189, %188 : vector<128x128xf32>
    %cst_78 = arith.constant 0.707106769 : f32
    %191 = vector.broadcast %cst_78 : f32 to vector<128x128xf32>
    %192 = arith.mulf %188, %191 : vector<128x128xf32>
    %193 = math.absf %192 : vector<128x128xf32>
    %cst_79 = arith.constant 0.327591091 : f32
    %194 = vector.broadcast %cst_79 : f32 to vector<128x128xf32>
    %195 = arith.mulf %194, %193 : vector<128x128xf32>
    %cst_80 = arith.constant 1.000000e+00 : f32
    %196 = vector.broadcast %cst_80 : f32 to vector<128x128xf32>
    %197 = arith.addf %196, %195 : vector<128x128xf32>
    %cst_81 = arith.constant 1.000000e+00 : f32
    %198 = vector.broadcast %cst_81 : f32 to vector<128x128xf32>
    %199 = arith.divf %198, %197 : vector<128x128xf32>
    %cst_82 = arith.constant 1.06140542 : f32
    %200 = vector.broadcast %cst_82 : f32 to vector<128x128xf32>
    %201 = arith.mulf %200, %199 : vector<128x128xf32>
    %cst_83 = arith.constant 1.45315206 : f32
    %202 = vector.broadcast %cst_83 : f32 to vector<128x128xf32>
    %203 = arith.subf %201, %202 : vector<128x128xf32>
    %204 = arith.mulf %203, %199 : vector<128x128xf32>
    %cst_84 = arith.constant 1.42141378 : f32
    %205 = vector.broadcast %cst_84 : f32 to vector<128x128xf32>
    %206 = arith.addf %204, %205 : vector<128x128xf32>
    %207 = arith.mulf %206, %199 : vector<128x128xf32>
    %cst_85 = arith.constant 0.284496725 : f32
    %208 = vector.broadcast %cst_85 : f32 to vector<128x128xf32>
    %209 = arith.subf %207, %208 : vector<128x128xf32>
    %210 = arith.mulf %209, %199 : vector<128x128xf32>
    %cst_86 = arith.constant 0.254829586 : f32
    %211 = vector.broadcast %cst_86 : f32 to vector<128x128xf32>
    %212 = arith.addf %210, %211 : vector<128x128xf32>
    %213 = arith.mulf %212, %199 : vector<128x128xf32>
    %214 = arith.mulf %193, %193 : vector<128x128xf32>
    %cst_87 = arith.constant 0.000000e+00 : f32
    %215 = vector.broadcast %cst_87 : f32 to vector<128x128xf32>
    %216 = arith.subf %215, %214 : vector<128x128xf32>
    %217 = math.exp %216 : vector<128x128xf32>
    %218 = arith.mulf %213, %217 : vector<128x128xf32>
    %cst_88 = arith.constant 1.000000e+00 : f32
    %219 = vector.broadcast %cst_88 : f32 to vector<128x128xf32>
    %220 = arith.subf %219, %218 : vector<128x128xf32>
    %cst_89 = arith.constant 0.000000e+00 : f32
    %221 = vector.broadcast %cst_89 : f32 to vector<128x128xf32>
    %222 = arith.cmpf olt, %192, %221 : vector<128x128xf32>
    %cst_90 = arith.constant 0.000000e+00 : f32
    %223 = vector.broadcast %cst_90 : f32 to vector<128x128xf32>
    %224 = arith.subf %223, %220 : vector<128x128xf32>
    %225 = arith.select %222, %224, %220 : vector<128x128xi1>, vector<128x128xf32>
    %cst_91 = arith.constant 1.000000e+00 : f32
    %226 = vector.broadcast %cst_91 : f32 to vector<128x128xf32>
    %227 = arith.addf %226, %225 : vector<128x128xf32>
    %228 = arith.mulf %190, %227 : vector<128x128xf32>
    %cst_92 = arith.constant dense<0.000000e+00> : vector<128xf32>
    %229 = vector.multi_reduction <add>, %228, %cst_92 [1] : vector<128x128xf32> to vector<128xf32>
    %230 = vector.shape_cast %229 : vector<128xf32> to vector<128x1xf32>
    %cst_93 = arith.constant 1.280000e+02 : f32
    %231 = vector.broadcast %cst_93 : f32 to vector<128x1xf32>
    %232 = arith.divf %230, %231 : vector<128x1xf32>
    %233 = vector.broadcast %232 : vector<128x1xf32> to vector<128x128xf32>
    %234 = arith.subf %228, %233 : vector<128x128xf32>
    %235 = arith.mulf %234, %234 : vector<128x128xf32>
    %cst_94 = arith.constant dense<0.000000e+00> : vector<128xf32>
    %236 = vector.multi_reduction <add>, %235, %cst_94 [1] : vector<128x128xf32> to vector<128xf32>
    %237 = vector.shape_cast %236 : vector<128xf32> to vector<128x1xf32>
    %cst_95 = arith.constant 1.280000e+02 : f32
    %238 = vector.broadcast %cst_95 : f32 to vector<128x1xf32>
    %239 = arith.divf %237, %238 : vector<128x1xf32>
    %cst_96 = arith.constant 9.99999974E-6 : f32
    %240 = vector.broadcast %cst_96 : f32 to vector<128x1xf32>
    %241 = arith.addf %239, %240 : vector<128x1xf32>
    %242 = math.rsqrt %241 : vector<128x1xf32>
    %243 = vector.broadcast %242 : vector<128x1xf32> to vector<128x128xf32>
    %244 = arith.mulf %234, %243 : vector<128x128xf32>
    %c0_97 = arith.constant 0 : index
    %c0_98 = arith.constant 0 : index
    %245 = vector.load %arg6[%c0_97, %c0_98] : memref<8x128xf32, #tpu.memory_space<vmem>>, vector<8x128xf32>
    %cst_99 = arith.constant dense<0.000000e+00> : vector<8x128xf32>
    %246 = tpu.matmul %245, %244, %cst_99 {dimension_numbers = #tpu.dot_dimension_numbers<[1], [1], [0], [0], [0, 0, 1, 0], [], []>} : vector<8x128xf32>, vector<128x128xf32>, vector<8x128xf32> -> vector<8x128xf32>
    %247 = vector.extract_strided_slice %246 {offsets = [4, 0], sizes = [1, 128], strides = [1, 1]} : vector<8x128xf32> to vector<1x128xf32>
    %c0_100 = arith.constant 0 : index
    %c0_101 = arith.constant 0 : index
    %248 = memref.load %arg7[%c0_100, %c0_101] : memref<1x1xf32, #tpu.memory_space<smem>>
    %249 = vector.broadcast %248 : f32 to vector<1x128xf32>
    %250 = arith.addf %247, %249 : vector<1x128xf32>
    %c0_102 = arith.constant 0 : index
    %c0_103 = arith.constant 0 : index
    %251 = vector.load %arg8[%c0_102, %c0_103] : memref<1x128xf32, #tpu.memory_space<vmem>>, vector<1x128xf32>
    tpu.vector_store %arg8[%c0_102, %c0_103], %250 {strides = array<i32>} : memref<1x128xf32, #tpu.memory_space<vmem>>, vector<1x128xf32>,
    return
  }
  func.func @transform_0(%arg0: i32) -> (i32, i32) {
    %c0_i32 = arith.constant 0 : i32
    %c0_i32_0 = arith.constant 0 : i32
    return %arg0, %c0_i32 : i32, i32
  }
  func.func @transform_1(%arg0: i32) -> (i32, i32) {
    %c0_i32 = arith.constant 0 : i32
    %c0_i32_0 = arith.constant 0 : i32
    %c0_i32_1 = arith.constant 0 : i32
    return %c0_i32, %c0_i32_0 : i32, i32
  }
  func.func @transform_2(%arg0: i32) -> (i32, i32) {
    %c0_i32 = arith.constant 0 : i32
    %c0_i32_0 = arith.constant 0 : i32
    %c0_i32_1 = arith.constant 0 : i32
    return %c0_i32, %c0_i32_0 : i32, i32
  }
  func.func @transform_3(%arg0: i32) -> (i32, i32) {
    %c0_i32 = arith.constant 0 : i32
    %c0_i32_0 = arith.constant 0 : i32
    %c0_i32_1 = arith.constant 0 : i32
    return %c0_i32, %c0_i32_0 : i32, i32
  }
  func.func @transform_4(%arg0: i32) -> (i32, i32) {
    %c0_i32 = arith.constant 0 : i32
    %c0_i32_0 = arith.constant 0 : i32
    %c0_i32_1 = arith.constant 0 : i32
    return %c0_i32, %c0_i32_0 : i32, i32
  }
  func.func @transform_5(%arg0: i32) -> (i32, i32) {
    %c0_i32 = arith.constant 0 : i32
    %c0_i32_0 = arith.constant 0 : i32
    %c0_i32_1 = arith.constant 0 : i32
    return %c0_i32, %c0_i32_0 : i32, i32
  }
  func.func @transform_6(%arg0: i32) -> (i32, i32) {
    %c0_i32 = arith.constant 0 : i32
    %c0_i32_0 = arith.constant 0 : i32
    %c0_i32_1 = arith.constant 0 : i32
    return %c0_i32, %c0_i32_0 : i32, i32
  }
  func.func @transform_7(%arg0: i32) -> (i32, i32) {
    %c0_i32 = arith.constant 0 : i32
    %c0_i32_0 = arith.constant 0 : i32
    return %c0_i32, %arg0 : i32, i32
  }
}

</mosaic_0001>

<bundles_post_ra>
// kernel: quadruped_critic_forward.1
= control target key start
LH: loop header
LB: loop body
LE: loop exit
PB: predicated region body
PF: predicated region fallthrough
CT: control target
= control target key end

     0   :  { %s6866_s0 = inlined_call_operand.vmem [shape: f32[200,32], index: 0, kind: input, shape index: {}]   ;;  %s6867_s1 = inlined_call_operand.hbm [shape: f32[32,128], index: 1, kind: input, shape index: {}]   ;;  %s6868_s2 = inlined_call_operand.vmem [shape: f32[128,128], index: 2, kind: input, shape index: {}]   ;;  %s6869_s3 = inlined_call_operand.vmem [shape: f32[128,128], index: 3, kind: input, shape index: {}]   ;;  %s6870_s4 = inlined_call_operand.hbm [shape: f32[128,128], index: 4, kind: input, shape index: {}]   ;;  %s6871_s5 = inlined_call_operand.vmem [shape: f32[8,128], index: 5, kind: input, shape index: {}]   ;;  %s6872_s6 = inlined_call_operand.<no memory space> [shape: f32[1,1], index: 6, kind: input, shape index: {}]   ;;  %s6873_s7 = inlined_call_operand.vmem [shape: f32[1,256], index: 7, kind: output, shape index: {}]  }
   0x1   :  { %12 = sst [smem:[#allocation2]] %s6872_s6 }
   0x2   :  { %13 = vsyncpa [#allocation4], 0 }
   0x3   :  { %14 = vsyncpa [#allocation6], 0  ;;  %s4685_s26 = smov 0  }
   0x4 LB: > { %s4691_s27 = sadd.s32 4294967295, %s4634_s26   ;;  %p3624_p0 = scmp.ge.s32.totalorder %s4634_s26, 1  ;;  %s4634_s26 = sphi %s4685_s26, %s20_s26  }
   0x5   : > { %p203_p1 = scmp.lt.s32.totalorder %s4634_s26, 3  ;;  %s4636_s28 = smov [#allocation3]  }
   0x6   : > { %s215_s6 = sshll.u32 %s4636_s28, 4  ;;  %p4166_p3 = scmp.eq.s32.totalorder %s4691_s27, 0  ;;  %s216_s6 = int_to_ptr.vmem [resolvable:$true] %s215_s6 }
   0x7   : > { %p4695_p2 = pnand %p3624_p0, %p203_p1  ;;  %s4637_s30 = smov [#allocation5]  }
   0x8   : > { %s234_s8 = sshll.u32 %s4637_s30, 4  ;;  %s4579_s10 = scalar_lea.vmem %s216_s6, 512  ;;  %s235_s8 = int_to_ptr.vmem [resolvable:$true] %s234_s8 }
   0x9   : > { %p4159_p4 = pneg %p4695_p2  ;;  %p4580_p7 = scmp.ne.s32.totalorder %s216_s6, %s4579_s10 }
   0xa   : > { %p4587_p10 = scmp.lt.s32.totalorder %s216_s6, %s216_s6  ;;  %p4588_p11 = scmp.lt.s32.totalorder %s4579_s10, %s4579_s10 }
   0xb   : > { %p4704_p5 = pnand %p4166_p3, %p4159_p4 }
   0xc   : > { %p4589_p12 = por %p4588_p11, %p4587_p10 }
   0xd   : > { %p4570_p6 = pneg %p4704_p5 }
   0xf   : > { %p4582_p8 = pnand %p4580_p7, %p4570_p6 }
  0x11   : > { %p4583_p9 = pneg %p4582_p8 }
  0x13   : > { %p4590_p13 = pnand %p4589_p12, %p4583_p9 }
  0x15   : > { %4593 = shalt.err (!%p4590_p13)
}
  0x16   : > { %s4638_s11 = smov 128   ;;  %s4639_s12 = smov 8  }
  0x17   : > { %4162 = dma.hbm_to_vmem [thread:$0]  (!%p4704_p5), %s6867_s1, 512, %s216_s6, [#allocation4], %s4638_s11, %s4638_s11, %s4639_s12  }
  0x18   : > { %s4605_s15 = scalar_lea.vmem %s235_s8, 2048  ;;  %p4613_p7 = scmp.lt.s32.totalorder %s235_s8, %s235_s8 }
  0x19   : > { %p4606_p0 = scmp.ne.s32.totalorder %s235_s8, %s4605_s15  ;;  %p4614_p8 = scmp.lt.s32.totalorder %s4605_s15, %s4605_s15 }
  0x1b   : > { %p4608_p1 = pnand %p4606_p0, %p4570_p6  ;;  %p4615_p10 = por %p4614_p8, %p4613_p7 }
  0x1d   : > { %p4609_p4 = pneg %p4608_p1 }
  0x1f   : > { %p4616_p9 = pnand %p4615_p10, %p4609_p4 }
  0x21   : > { %4619 = shalt.err (!%p4616_p9)
}
  0x22   : > { %4165 = dma.hbm_to_vmem [thread:$0]  (!%p4704_p5), %s6870_s4, 2048, %s235_s8, [#allocation6], %s4638_s11, %s4638_s11, %s4639_s12  }
  0x23   : > { %273 = sbr.rel (%p4695_p2) target bundleno = 2628 (0xa44), region = 48 }
  0x28   : > { %4625 = dma.done.wait (%p4166_p3), [#allocation4], 512  }
  0x29   : > { %4627 = vsyncadd (%p4166_p3), [#allocation4], 4294966784 }
  0x2a   : > { %4629 = dma.done.wait (%p4166_p3), [#allocation6], 2048  }
  0x2b   : > { %4631 = vsyncadd (%p4166_p3), [#allocation6], 4294965248  ;;  %s3631_s18 = sshll.u32 %s4691_s27, 4  ;;  %vm356_vm0 = vcmask 261120   ;;  %v351_v0 = vld [vmem:[#allocation3 + $0x18] sm:$0xff]  ;;  %v350_v1 = vld [vmem:[#allocation3 + $0x10] sm:$0xff] }
  0x2c   : > { %p316_p6 = scmp.lt.s32.totalorder %s3631_s18, 24  ;;  %3916 = vmatprep.subr.mxu1 %v351_v0  ;;  %v349_v3 = vld [vmem:[#allocation3 + $0x8] sm:$0xff]  ;;  %v348_v4 = vld [vmem:[#allocation3] sm:$0xff]  ;;  %s3549_s9 = sld [smem:[#allocation2]] }
  0x2d   : > { %3917 = vmatpush3.msra.mxu1 %v351_v0  ;;  %v4777_v20 = vld [vmem:[%s6871_s5] ss:$0 sm:$0xff]  ;;  %p325_p2 = scmp.lt.s32.totalorder %s4691_s27, 1 }
  0x2e   : > { %s7051_s18 = smov (!%p316_p6, %s3631_s18), 24  ;;  %3918 = vmatprep.subr.mxu1 %v350_v1 }
  0x2f   : > { %s3632_s19 = sshll.u32 %s7051_s18, 3  ;;  %3919 = vmatpush3.msra.mxu1 %v350_v1  ;;  %s7053_s27 = smov (!%p325_p2, %s4691_s27), 1 }
  0x30   : > { %s4740_s22 = scalar_lea.vmem %s6866_s0, %s3632_s19  ;;  %3920 = vmatprep.subr.mxu1 %v349_v3  ;;  %s327_s12 = scalar_lea.vmem %s6873_s7, %s7053_s27 }
  0x31   : > { %v332_v2 = vld [vmem:[%s4740_s22] sm:$0xff]  ;;  %3921 = vmatpush3.msra.mxu1 %v349_v3  ;;  %v333_v5 = vld [vmem:[%s4740_s22 + $0x8] sm:$0xff]  ;;  %v334_v6 = vld [vmem:[%s4740_s22 + $0x10] sm:$0xff] }
  0x32   : > { %3924 = vmatprep.mubr.msk.f32.mxu1 %vm356_vm0, %v332_v2  ;;  %3922 = vmatprep.subr.mxu1 %v348_v4  ;;  %v335_v7 = vld [vmem:[%s4740_s22 + $0x18] sm:$0xff]  ;;  %v336_v8 = vld [vmem:[%s4740_s22 + $0x20] sm:$0xff]  ;;  %v337_v9 = vld [vmem:[%s4740_s22 + $0x28] sm:$0xff] }
  0x33   : > { %3923 = vmatpush3.msra.mxu1 %v348_v4  ;;  %v338_v10 = vld [vmem:[%s4740_s22 + $0x30] sm:$0xff]  ;;  %v339_v11 = vld [vmem:[%s4740_s22 + $0x38] sm:$0xff]  ;;  %v340_v12 = vld [vmem:[%s4740_s22 + $0x40] sm:$0xff] }
  0x34   : > { %3925 = vmatmul.mubr.msk.f32.vlgmr.msra.gmra.mxu1 %vm356_vm0, %v333_v5  ;;  %v341_v13 = vld [vmem:[%s4740_s22 + $0x48] sm:$0xff]  ;;  %v342_v14 = vld [vmem:[%s4740_s22 + $0x50] sm:$0xff]  ;;  %v343_v15 = vld [vmem:[%s4740_s22 + $0x58] sm:$0xff] }
  0x35   : > { %3927 = vmatprep.mubr.msk.f32.mxu1 %vm356_vm0, %v334_v6  ;;  %v344_v16 = vld [vmem:[%s4740_s22 + $0x60] sm:$0xff]  ;;  %v345_v17 = vld [vmem:[%s4740_s22 + $0x68] sm:$0xff]  ;;  %v346_v18 = vld [vmem:[%s4740_s22 + $0x70] sm:$0xff] }
  0x36   : > { %v347_v19 = vld [vmem:[%s4740_s22 + $0x78] sm:$0xff] }
  0x38   : > { %3928 = vmatmul.mubr.msk.f32.gmra.mxu1 %vm356_vm0, %v335_v7 }
  0x39   : > { %3930 = vmatprep.mubr.msk.f32.mxu1 %vm356_vm0, %v336_v8 }
  0x3c   : > { %3931 = vmatmul.mubr.msk.f32.gmra.mxu1 %vm356_vm0, %v337_v9 }
  0x3d   : > { %3933 = vmatprep.mubr.msk.f32.mxu1 %vm356_vm0, %v338_v10 }
  0x40   : > { %3934 = vmatmul.mubr.msk.f32.gmra.mxu1 %vm356_vm0, %v339_v11 }
  0x41   : > { %3936 = vmatprep.mubr.msk.f32.mxu1 %vm356_vm0, %v340_v12 }
  0x44   : > { %3937 = vmatmul.mubr.msk.f32.gmra.mxu1 %vm356_vm0, %v341_v13 }
  0x45   : > { %3939 = vmatprep.mubr.msk.f32.mxu1 %vm356_vm0, %v342_v14 }
  0x48   : > { %3940 = vmatmul.mubr.msk.f32.gmra.mxu1 %vm356_vm0, %v343_v15 }
  0x49   : > { %3942 = vmatprep.mubr.msk.f32.mxu1 %vm356_vm0, %v344_v16 }
  0x4c   : > { %3943 = vmatmul.mubr.msk.f32.gmra.mxu1 %vm356_vm0, %v345_v17 }
  0x4d   : > { %3945 = vmatprep.mubr.msk.f32.mxu1 %vm356_vm0, %v346_v18 }
  0x50   : > { %3946 = vmatmul.mubr.msk.f32.gmra.mxu1 %vm356_vm0, %v347_v19 }
  0xf4   : > { %v3926_v21 = vpop.f32.mrf.mxu1 }
  0xf5   : > { %v4780_v22 = vadd.f32 %v3926_v21, %v4777_v20 }
  0xf6   : > { %v471_v23 = vpop.f32.mrf.mxu1 }
  0xf7   : > { %v4783_v24 = vmul.f32 0.70710677, %v4780_v22  ;;  %v4786_v25 = vadd.f32 %v4777_v20, %v471_v23 }
  0xf8   : > { %v3929_v26 = vpop.f32.mrf.mxu1 }
  0xf9   : > { %v583_v27 = vand.u32 2147483647, %v4783_v24  ;;  %v4790_v28 = vmul.f32 0.70710677, %v4786_v25  ;;  %v4793_v29 = vadd.f32 %v3929_v26, %v4777_v20  ;;  %vm903_vm3 = vcmp.lt.f32.partialorder %v4783_v24, 0.0 }
  0xfa   : > { %v481_v30 = vpop.f32.mrf.mxu1 }
  0xfb   : > { %v807_v31 = vmul.f32 %v583_v27, %v583_v27  ;;  %v582_v32 = vand.u32 2147483647, %v4790_v28  ;;  %v4797_v33 = vmul.f32 0.70710677, %v4793_v29  ;;  %v4800_v34 = vadd.f32 %v4777_v20, %v481_v30 }
  0xfc   : > { %v3932_v35 = vpop.f32.mrf.mxu1  ;;  %v599_v36 = vmul.f32 0.3275911, %v583_v27  ;;  %vm902_vm1 = vcmp.lt.f32.partialorder %v4790_v28, 0.0 }
  0xfd   : > { %v806_v37 = vmul.f32 %v582_v32, %v582_v32  ;;  %v823_v38 = vsub.f32 0.0, %v807_v31  ;;  %v585_v39 = vand.u32 2147483647, %v4797_v33  ;;  %v4804_v40 = vmul.f32 0.70710677, %v4800_v34 }
  0xfe   : > { %v491_v41 = vpop.f32.mrf.mxu1  ;;  %v598_v42 = vmul.f32 0.3275911, %v582_v32  ;;  %v615_v48 = vadd.f32 1.0, %v599_v36  ;;  %v4808_v49 = vadd.f32 %v3932_v35, %v4777_v20  ;;  %vm905_vm4 = vcmp.lt.f32.partialorder %v4797_v33, 0.0 }
  0xff   : > { %v822_v43 = vsub.f32 0.0, %v806_v37  ;;  %v601_v44 = vmul.f32 0.3275911, %v585_v39  ;;  %v809_v45 = vmul.f32 %v585_v39, %v585_v39  ;;  %v584_v46 = vand.u32 2147483647, %v4804_v40 }
 0x100   : > { %v3935_v47 = vpop.f32.mrf.mxu1  ;;  %v4811_v50 = vadd.f32 %v4777_v20, %v491_v41  ;;  %v840_v51 = vmul.f32 1.442695, %v823_v38  ;;  %v614_v53 = vadd.f32 1.0, %v598_v42  ;;  %v4814_v56 = vmul.f32 0.70710677, %v4808_v49 }
 0x101   : > { %v825_v54 = vsub.f32 0.0, %v809_v45  ;;  %v808_v55 = vmul.f32 %v584_v46, %v584_v46  ;;  %v838_v57 = vmul.f32 1.442695, %v822_v43  ;;  %v617_v58 = vadd.f32 1.0, %v601_v44 }
 0x102   : > { %v501_v52 = vpop.f32.mrf.mxu1  ;;  %4184 = vrcp.f32 %v615_v48  ;;  %v600_v60 = vmul.f32 0.3275911, %v584_v46  ;;  %v587_v61 = vand.u32 2147483647, %v4814_v56  ;;  %v4818_v62 = vmul.f32 0.70710677, %v4811_v50 }
 0x103   : > { %4186 = vpow2.f32 %v840_v51  ;;  %v824_v63 = vsub.f32 0.0, %v808_v55  ;;  %v4821_v0 = vadd.f32 %v3935_v47, %v4777_v20  ;;  %v844_v2 = vmul.f32 1.442695, %v825_v54 }
 0x104   : > { %v3938_v59 = vpop.f32.mrf.mxu1  ;;  %4188 = vrcp.f32 %v614_v53  ;;  %v811_v3 = vmul.f32 %v587_v61, %v587_v61  ;;  %v4824_v4 = vadd.f32 %v4777_v20, %v501_v52  ;;  %v603_v5 = vmul.f32 0.3275911, %v587_v61 }
 0x105   : > { %4190 = vpow2.f32 %v838_v57  ;;  %v586_v6 = vand.u32 2147483647, %v4818_v62  ;;  %v4828_v7 = vmul.f32 0.70710677, %v4821_v0  ;;  %v616_v9 = vadd.f32 1.0, %v600_v60 }
 0x106   : > { %v511_v1 = vpop.f32.mrf.mxu1  ;;  %4192 = vrcp.f32 %v617_v58  ;;  %v827_v10 = vsub.f32 0.0, %v811_v3  ;;  %v4831_v11 = vadd.f32 %v3938_v59, %v4777_v20  ;;  %v842_v12 = vmul.f32 1.442695, %v824_v63 }
 0x107   : > { %v602_v13 = vmul.f32 0.3275911, %v586_v6  ;;  %v810_v14 = vmul.f32 %v586_v6, %v586_v6  ;;  %v589_v15 = vand.u32 2147483647, %v4828_v7  ;;  %4194 = vpow2.f32 %v844_v2 }
 0x108   : > { %v3941_v8 = vpop.f32.mrf.mxu1  ;;  %v4835_v16 = vmul.f32 0.70710677, %v4824_v4  ;;  %v619_v17 = vadd.f32 1.0, %v603_v5  ;;  %4196 = vrcp.f32 %v616_v9  ;;  %v848_v26 = vmul.f32 1.442695, %v827_v10 }
 0x109   : > { %v826_v18 = vsub.f32 0.0, %v810_v14  ;;  %v605_v19 = vmul.f32 0.3275911, %v589_v15  ;;  %v813_v21 = vmul.f32 %v589_v15, %v589_v15  ;;  %v4839_v30 = vmul.f32 0.70710677, %v4831_v11 }
 0x10a   : > { %v521_v23 = vpop.f32.mrf.mxu1  ;;  %v588_v27 = vand.u32 2147483647, %v4835_v16  ;;  %4198 = vpow2.f32 %v842_v12  ;;  %v618_v31 = vadd.f32 1.0, %v602_v13  ;;  %v4843_v41 = vadd.f32 %v4777_v20, %v511_v1 }
 0x10b   : > { %v829_v32 = vsub.f32 0.0, %v813_v21  ;;  %v846_v35 = vmul.f32 1.442695, %v826_v18  ;;  %v591_v38 = vand.u32 2147483647, %v4839_v30  ;;  %4200 = vrcp.f32 %v619_v17 }
 0x10c   : > { %v604_v36 = vmul.f32 0.3275911, %v588_v27  ;;  %v812_v37 = vmul.f32 %v588_v27, %v588_v27  ;;  %v621_v39 = vadd.f32 1.0, %v605_v19  ;;  %v4846_v42 = vadd.f32 %v3941_v8, %v4777_v20  ;;  %v3944_v43 = vpop.f32.mrf.mxu1 }
 0x10d   : > { %v4849_v44 = vmul.f32 0.5, %v4780_v22  ;;  %4202 = vpow2.f32 %v848_v26  ;;  %v852_v45 = vmul.f32 1.442695, %v829_v32  ;;  %v607_v48 = vmul.f32 0.3275911, %v591_v38 }
 0x10e   : > { %6926 = vst [vmem:[#allocation9_spill] sm:$0xff] %v4846_v42  ;;  %v828_v46 = vsub.f32 0.0, %v812_v37  ;;  %4204 = vrcp.f32 %v618_v31  ;;  %v815_v51 = vmul.f32 %v591_v38, %v591_v38  ;;  %v4854_v52 = vmul.f32 0.70710677, %v4843_v41  ;;  %v531_v61 = vpop.f32.mrf.mxu1 }
 0x10f   : > { %v4851_v47 = vpop.eup %4184  ;;  %v4859_v54 = vmul.f32 0.5, %v4786_v25  ;;  %4206 = vpow2.f32 %v846_v35  ;;  %v620_v55 = vadd.f32 1.0, %v604_v36  ;;  %v4865_v60 = vmul.f32 0.70710677, %v4846_v42 }
 0x110   : > { %v4856_v53 = vpop.eup %4186  ;;  %v850_v22 = vmul.f32 1.442695, %v828_v46  ;;  %4208 = vrcp.f32 %v621_v39  ;;  %v831_v58 = vsub.f32 0.0, %v815_v51  ;;  %v590_v59 = vand.u32 2147483647, %v4854_v52  ;;  %v3947_v17 = vpop.f32.mrf.mxu1 }
 0x111   : > { %v4861_v57 = vpop.eup %4188  ;;  %v4870_v1 = vmul.f32 0.5, %v4793_v29  ;;  %v4873_v25 = vmul.f32 0.5, %v4800_v34  ;;  %4210 = vpow2.f32 %v852_v45  ;;  %v4876_v2 = vadd.f32 %v4777_v20, %v521_v23 }
 0x112   : > { %v4867_v63 = vpop.eup %4190  ;;  %v623_v5 = vadd.f32 1.0, %v607_v48  ;;  %v606_v6 = vmul.f32 0.3275911, %v590_v59  ;;  %v814_v8 = vmul.f32 %v590_v59, %v590_v59  ;;  %v4881_v9 = vadd.f32 %v3944_v43, %v4777_v20  ;;  %v541_v45 = vpop.f32.mrf.mxu1 }
 0x113   : > { %v4878_v3 = vpop.eup %4192  ;;  %v4884_v10 = vmul.f32 0.5, %v4808_v49  ;;  %4212 = vrcp.f32 %v620_v55  ;;  %v593_v29 = vand.u32 2147483647, %v4865_v60  ;;  %v4888_v34 = vmul.f32 0.70710677, %v4876_v2 }
 0x114   : > { %6927 = vst [vmem:[#allocation10_spill] sm:$0xff] %v4881_v9  ;;  %v4890_v12 = vpop.eup %4194  ;;  %4214 = vpow2.f32 %v850_v22  ;;  %v856_v13 = vmul.f32 1.442695, %v831_v58  ;;  %v830_v14 = vsub.f32 0.0, %v814_v8  ;;  %v4893_v15 = vadd.f32 %v4777_v20, %v531_v61 }
 0x115   : > { %v622_v18 = vadd.f32 1.0, %v606_v6  ;;  %v609_v19 = vmul.f32 0.3275911, %v593_v29  ;;  %v817_v21 = vmul.f32 %v593_v29, %v593_v29  ;;  %v592_v49 = vand.u32 2147483647, %v4888_v34  ;;  %v4896_v23 = vpop.eup %4196 }
 0x116   : > { %6928 = vst [vmem:[#allocation11_spill] sm:$0xff] %v4893_v15  ;;  %v4899_v26 = vmul.f32 0.5, %v4811_v50  ;;  %v4902_v27 = vmul.f32 0.5, %v4821_v0  ;;  %4216 = vrcp.f32 %v623_v5  ;;  %v4905_v31 = vmul.f32 0.70710677, %v4881_v9 }
 0x117   : > { %v4907_v32 = vpop.eup %4198  ;;  %v854_v35 = vmul.f32 1.442695, %v830_v14  ;;  %v833_v36 = vsub.f32 0.0, %v817_v21  ;;  %v608_v37 = vmul.f32 0.3275911, %v592_v49  ;;  %v816_v38 = vmul.f32 %v592_v49, %v592_v49 }
 0x118   : > { %6929 = vst [vmem:[#allocation12_spill] sm:$0xff] %v4905_v31  ;;  %4218 = vpow2.f32 %v856_v13  ;;  %v625_v39 = vadd.f32 1.0, %v609_v19  ;;  %v595_v43 = vand.u32 2147483647, %v4905_v31  ;;  %v4911_v50 = vmul.f32 0.70710677, %v4893_v15  ;;  %v4913_v0 = vpop.eup %4200 }
 0x119   : > { %v4916_v46 = vmul.f32 0.5, %v4824_v4  ;;  %4220 = vrcp.f32 %v622_v18  ;;  %v860_v48 = vmul.f32 1.442695, %v833_v36  ;;  %v832_v51 = vsub.f32 0.0, %v816_v38 }
 0x11a   : > { %6930 = vst [vmem:[#allocation13_spill] sm:$0xff] %v4911_v50  ;;  %v4918_v55 = vpop.eup %4202  ;;  %v624_v22 = vadd.f32 1.0, %v608_v37  ;;  %v611_v58 = vmul.f32 0.3275911, %v595_v43  ;;  %v819_v59 = vmul.f32 %v595_v43, %v595_v43  ;;  %v594_v61 = vand.u32 2147483647, %v4911_v50 }
 0x11b   : > { %v4921_v5 = vpop.eup %4204  ;;  %4222 = vpow2.f32 %v854_v35  ;;  %v858_v6 = vmul.f32 1.442695, %v832_v51  ;;  %v4924_v8 = vadd.f32 %v3947_v17, %v4777_v20  ;;  %v4927_v4 = vadd.f32 %v4777_v20, %v541_v45 }
 0x11c   : > { %v4929_v29 = vpop.eup %4206  ;;  %4224 = vrcp.f32 %v625_v39  ;;  %v627_v13 = vadd.f32 1.0, %v611_v58  ;;  %v835_v14 = vsub.f32 0.0, %v819_v59  ;;  %v610_v18 = vmul.f32 0.3275911, %v594_v61 }
 0x11d   : > { %6931 = vst [vmem:[#allocation14_spill] sm:$0xff] %v4924_v8  ;;  %6932 = vst [vmem:[#allocation15_spill] sm:$0xff] %v4927_v4  ;;  %v4931_v19 = vpop.eup %4208  ;;  %v4934_v21 = vmul.f32 0.5, %v4831_v11  ;;  %4226 = vpow2.f32 %v860_v48  ;;  %v818_v49 = vmul.f32 %v594_v61, %v594_v61  ;;  %v4937_v35 = vmul.f32 0.70710677, %v4924_v8 }
 0x11e   : > { %v4939_v17 = vpop.eup %4210  ;;  %v4942_v20 = vmul.f32 0.5, %v4843_v41  ;;  %4228 = vrcp.f32 %v624_v22  ;;  %v864_v36 = vmul.f32 1.442695, %v835_v14  ;;  %v626_v37 = vadd.f32 1.0, %v610_v18 }
 0x11f   : > { %6933 = vst [vmem:[#allocation16_spill] sm:$0xff] %v4934_v21  ;;  %6934 = vst [vmem:[#allocation17_spill] sm:$0xff] %v4937_v35  ;;  %4230 = vpow2.f32 %v858_v6  ;;  %v834_v38 = vsub.f32 0.0, %v818_v49  ;;  %v597_v39 = vand.u32 2147483647, %v4937_v35  ;;  %v4956_v61 = vmul.f32 0.5, %v4876_v2 }
 0x120   : > { %6935 = vst [vmem:[#allocation18_spill] sm:$0xff] %v4942_v20  ;;  %v4946_v11 = vmul.f32 0.70710677, %v4927_v4  ;;  %v4948_v43 = vpop.eup %4212  ;;  %4232 = vrcp.f32 %v627_v13  ;;  %v662_v45 = vmul.f32 1.0614054, %v4861_v57  ;;  %vm904_vm2 = vcmp.lt.f32.partialorder %v4804_v40, 0.0 }
 0x121   : > { %v664_v48 = vmul.f32 1.0614054, %v4896_v23  ;;  %v663_v41 = vmul.f32 1.0614054, %v4851_v47  ;;  %v4953_v51 = vpop.eup %4214  ;;  %4234 = vpow2.f32 %v864_v36  ;;  %v862_v22 = vmul.f32 1.442695, %v834_v38 }
 0x122   : > { %6936 = vst [vmem:[#allocation19_spill] sm:$0xff] %v4946_v11  ;;  %v613_v58 = vmul.f32 0.3275911, %v597_v39  ;;  %v821_v59 = vmul.f32 %v597_v39, %v597_v39  ;;  %6937 = vst [vmem:[#allocation20_spill] sm:$0xff] %v4956_v61  ;;  %4236 = vrcp.f32 %v626_v37  ;;  %v596_v6 = vand.u32 2147483647, %v4946_v11 }
 0x123   : > { %v3650_v14 = vadd.f32 -1.4531521, %v662_v45  ;;  %v4959_v13 = vpop.eup %4216  ;;  %4238 = vpow2.f32 %v862_v22  ;;  %v3652_v8 = vadd.f32 -1.4531521, %v664_v48  ;;  %v3651_v38 = vadd.f32 -1.4531521, %v663_v41 }
 0x124   : > { %v629_v18 = vadd.f32 1.0, %v613_v58  ;;  %v837_v49 = vsub.f32 0.0, %v821_v59  ;;  %v612_v35 = vmul.f32 0.3275911, %v596_v6  ;;  %v820_v4 = vmul.f32 %v596_v6, %v596_v6 }
 0x125   : > { %v694_v36 = vmul.f32 %v4861_v57, %v3650_v14  ;;  %v4962_v9 = vpop.eup %4218  ;;  %v696_v37 = vmul.f32 %v4896_v23, %v3652_v8  ;;  %v665_v39 = vmul.f32 1.0614054, %v4878_v3  ;;  %v695_v48 = vmul.f32 %v4851_v47, %v3651_v38 }
 0x126   : > { %4240 = vrcp.f32 %v629_v18  ;;  %v868_v2 = vmul.f32 1.442695, %v837_v49  ;;  %v4966_v45 = vpop.eup %4220  ;;  %v628_v11 = vadd.f32 1.0, %v612_v35  ;;  %v836_v22 = vsub.f32 0.0, %v820_v4 }
 0x127   : > { %v710_v58 = vadd.f32 1.4214138, %v694_v36  ;;  %v712_v59 = vadd.f32 1.4214138, %v696_v37  ;;  %v3653_v6 = vadd.f32 -1.4531521, %v665_v39 }
 0x128   : > { %4242 = vpow2.f32 %v868_v2  ;;  %v666_v41 = vmul.f32 1.0614054, %v4921_v5  ;;  %v4970_v14 = vpop.eup %4222  ;;  %v866_v18 = vmul.f32 1.442695, %v836_v22  ;;  %v711_v49 = vadd.f32 1.4214138, %v695_v48 }
 0x129   : > { %4244 = vrcp.f32 %v628_v11  ;;  %v726_v8 = vmul.f32 %v4861_v57, %v710_v58  ;;  %v4973_v31 = vpop.eup %4224  ;;  %v728_v35 = vmul.f32 %v4896_v23, %v712_v59  ;;  %v697_v4 = vmul.f32 %v4878_v3, %v3653_v6 }
 0x12a   : > { %v3654_v36 = vadd.f32 -1.4531521, %v666_v41  ;;  %v667_v38 = vmul.f32 1.0614054, %v4913_v0  ;;  %v4978_v2 = vpop.eup %4226  ;;  %4246 = vpow2.f32 %v866_v18  ;;  %v727_v39 = vmul.f32 %v4851_v47, %v711_v49 }
 0x12b   : > { %6938 = vst [vmem:[#allocation21_spill] sm:$0xff] %v4978_v2  ;;  %v3666_v37 = vadd.f32 -0.28449672, %v726_v8  ;;  %v668_v11 = vmul.f32 1.0614054, %v4948_v43  ;;  %v4982_v22 = vpop.eup %4228  ;;  %vm906_vm5 = vcmp.lt.f32.partialorder %v4818_v62, 0.0 }
 0x12c   : > { %v3668_v58 = vadd.f32 -0.28449672, %v728_v35  ;;  %v713_v48 = vadd.f32 1.4214138, %v697_v4  ;;  %v698_v15 = vmul.f32 %v4921_v5, %v3654_v36  ;;  %v3655_v59 = vadd.f32 -1.4531521, %v667_v38  ;;  %v4985_v42 = vpop.eup %4230 }
 0x12d   : > { %v758_v6 = vmul.f32 %v4861_v57, %v3666_v37  ;;  %v3667_v41 = vadd.f32 -0.28449672, %v727_v39  ;;  %v3656_v50 = vadd.f32 -1.4531521, %v668_v11  ;;  %v669_v18 = vmul.f32 1.0614054, %v4931_v19  ;;  %v4989_v8 = vpop.eup %4232 }
 0x12e   : > { %v760_v49 = vmul.f32 %v4896_v23, %v3668_v58  ;;  %v729_v61 = vmul.f32 %v4878_v3, %v713_v48  ;;  %v714_v21 = vadd.f32 1.4214138, %v698_v15  ;;  %v699_v35 = vmul.f32 %v4913_v0, %v3655_v59  ;;  %v4994_v4 = vpop.eup %4234 }
 0x12f   : > { %6939 = vst [vmem:[#allocation22_spill] sm:$0xff] %v4994_v4  ;;  %v774_v36 = vadd.f32 0.2548296, %v758_v6  ;;  %v759_v38 = vmul.f32 %v4851_v47, %v3667_v41  ;;  %v700_v37 = vmul.f32 %v4948_v43, %v3656_v50  ;;  %v3657_v39 = vadd.f32 -1.4531521, %v669_v18  ;;  %v4998_v11 = vpop.eup %4236 }
 0x130   : > { %v776_v20 = vadd.f32 0.2548296, %v760_v49  ;;  %v3669_v2 = vadd.f32 -0.28449672, %v729_v61  ;;  %v730_v58 = vmul.f32 %v4921_v5, %v714_v21  ;;  %v715_v48 = vadd.f32 1.4214138, %v699_v35  ;;  %v5002_v15 = vpop.eup %4238 }
 0x131   : > { %6940 = vst [vmem:[#allocation23_spill] sm:$0xff] %v5002_v15  ;;  %v790_v59 = vmul.f32 %v4861_v57, %v774_v36  ;;  %v775_v6 = vadd.f32 0.2548296, %v759_v38  ;;  %v716_v41 = vadd.f32 1.4214138, %v700_v37  ;;  %v701_v50 = vmul.f32 %v4931_v19, %v3657_v39 }
 0x132   : > { %v792_v18 = vmul.f32 %v4896_v23, %v776_v20  ;;  %v761_v49 = vmul.f32 %v4878_v3, %v3669_v2  ;;  %v3670_v61 = vadd.f32 -0.28449672, %v730_v58  ;;  %v731_v21 = vmul.f32 %v4913_v0, %v715_v48 }
 0x133   : > { %v5011_v35 = vpop.eup %4240  ;;  %v870_v4 = vmul.f32 %v4867_v63, %v790_v59  ;;  %v791_v15 = vmul.f32 %v4851_v47, %v775_v6  ;;  %v732_v57 = vmul.f32 %v4948_v43, %v716_v41  ;;  %v717_v36 = vadd.f32 1.4214138, %v701_v50 }
 0x134   : > { %v872_v38 = vmul.f32 %v4907_v32, %v792_v18  ;;  %v777_v37 = vadd.f32 0.2548296, %v761_v49  ;;  %v762_v39 = vmul.f32 %v4921_v5, %v3670_v61  ;;  %v3671_v23 = vadd.f32 -0.28449672, %v731_v21 }
 0x135   : > { %v5018_v20 = vpop.eup %4242  ;;  %v886_v2 = vsub.f32 1.0, %v870_v4  ;;  %v871_v58 = vmul.f32 %v4856_v53, %v791_v15  ;;  %v3672_v48 = vadd.f32 -0.28449672, %v732_v57  ;;  %v733_v63 = vmul.f32 %v4931_v19, %v717_v36 }
 0x136   : > { %v5023_v47 = vpop.eup %4244  ;;  %v888_v59 = vsub.f32 1.0, %v872_v38  ;;  %v793_v6 = vmul.f32 %v4878_v3, %v777_v37  ;;  %v778_v32 = vadd.f32 0.2548296, %v762_v39  ;;  %v763_v41 = vmul.f32 %v4913_v0, %v3671_v23 }
 0x137   : > { %v918_v50 = vsub.f32 0.0, %v886_v2  ;;  %v887_v18 = vsub.f32 1.0, %v871_v58  ;;  %v764_v49 = vmul.f32 %v4948_v43, %v3672_v48  ;;  %v3673_v4 = vadd.f32 -0.28449672, %v733_v63  ;;  %v5029_v61 = vpop.eup %4246 }
 0x138   : > { %v920_v53 = vsub.f32 0.0, %v888_v59  ;;  %v873_v15 = vmul.f32 %v4890_v12, %v793_v6  ;;  %v794_v21 = vmul.f32 %v4921_v5, %v778_v32  ;;  %v779_v57 = vadd.f32 0.2548296, %v763_v41 }
 0x139   : > { %v934_v3 = vsel %vm902_vm1, %v918_v50, %v886_v2  ;;  %v919_v36 = vsub.f32 0.0, %v887_v18  ;;  %v780_v38 = vadd.f32 0.2548296, %v764_v49  ;;  %v765_v37 = vmul.f32 %v4931_v19, %v3673_v4 }
 0x13a   : > { %vm907_vm6 = vcmp.lt.f32.partialorder %v4814_v56, 0.0  ;;  %vm908_vm7 = vcmp.lt.f32.partialorder %v4835_v16, 0.0  ;;  %v950_v39 = vadd.f32 1.0, %v934_v3  ;;  %v936_v23 = vsel %vm904_vm2, %v920_v53, %v888_v59 }
 0x13b   : > { %v889_v58 = vsub.f32 1.0, %v873_v15  ;;  %v874_v12 = vmul.f32 %v4929_v29, %v794_v21  ;;  %v952_v5 = vadd.f32 1.0, %v936_v23  ;;  %v935_v28 = vsel %vm903_vm3, %v919_v36, %v887_v18 }
 0x13c   : > { %v795_v2 = vmul.f32 %v4913_v0, %v779_v57  ;;  %v796_v48 = vmul.f32 %v4948_v43, %v780_v38  ;;  %v5046_v63 = vmul.f32 %v950_v39, %v4859_v54  ;;  %v951_v6 = vadd.f32 1.0, %v935_v28 }
 0x13d   : > { %v921_v32 = vsub.f32 0.0, %v889_v58  ;;  %v890_v41 = vsub.f32 1.0, %v874_v12  ;;  %v5049_v40 = vmul.f32 %v952_v5, %v4873_v25  ;;  %v781_v50 = vadd.f32 0.2548296, %v765_v37 }
 0x13e   : > { %v875_v59 = vmul.f32 %v4918_v55, %v795_v2  ;;  %v876_v29 = vmul.f32 %v4953_v51, %v796_v48  ;;  %982 = vadd.xlane.f32.xlu0 %v5046_v63  ;;  %v5055_v24 = vmul.f32 %v951_v6, %v4849_v44  ;;  %v670_v43 = vmul.f32 1.0614054, %v4966_v45 }
 0x13f   : > { %v937_v54 = vsel %vm905_vm4, %v921_v32, %v889_v58  ;;  %v922_v0 = vsub.f32 0.0, %v890_v41  ;;  %vm909_vm8 = vcmp.lt.f32.partialorder %v4828_v7, 0.0  ;;  %986 = vadd.xlane.f32.xlu1 %v5049_v40  ;;  %v797_v51 = vmul.f32 %v4931_v19, %v781_v50 }
 0x140   : > { %v953_v25 = vadd.f32 1.0, %v937_v54  ;;  %v891_v55 = vsub.f32 1.0, %v875_v59  ;;  %v892_v18 = vsub.f32 1.0, %v876_v29  ;;  %v3658_v44 = vadd.f32 -1.4531521, %v670_v43 }
 0x141   : > { %v938_v49 = vsel %vm906_vm5, %v922_v0, %v890_v41  ;;  %v671_v4 = vmul.f32 1.0614054, %v4959_v13  ;;  %v672_v33 = vmul.f32 1.0614054, %v4982_v22  ;;  %v877_v3 = vmul.f32 %v4939_v17, %v797_v51 }
 0x142   : > { %v5068_v53 = vmul.f32 %v953_v25, %v4870_v1  ;;  %v954_v15 = vadd.f32 1.0, %v938_v49  ;;  %v923_v21 = vsub.f32 0.0, %v891_v55  ;;  %v924_v57 = vsub.f32 0.0, %v892_v18  ;;  %984 = vadd.xlane.f32.xlu0 %v5055_v24 }
 0x143   : > { %v702_v19 = vmul.f32 %v4966_v45, %v3658_v44  ;;  %v3659_v36 = vadd.f32 -1.4531521, %v671_v4  ;;  %v3660_v62 = vadd.f32 -1.4531521, %v672_v33  ;;  %v673_v39 = vmul.f32 1.0614054, %v4973_v31 }
 0x144   : > { %988 = vadd.xlane.f32.xlu1 %v5068_v53  ;;  %v5075_v38 = vmul.f32 %v954_v15, %v4899_v26  ;;  %v939_v1 = vsel %vm907_vm6, %v923_v21, %v891_v55  ;;  %v940_v37 = vsel %vm908_vm7, %v924_v57, %v892_v18  ;;  %v893_v17 = vsub.f32 1.0, %v877_v3 }
 0x145   : > { %v955_v23 = vadd.f32 1.0, %v939_v1  ;;  %v956_v58 = vadd.f32 1.0, %v940_v37  ;;  %v718_v12 = vadd.f32 1.4214138, %v702_v19  ;;  %v703_v5 = vmul.f32 %v4959_v13, %v3659_v36 }
 0x146   : > { %v704_v28 = vmul.f32 %v4982_v22, %v3660_v62  ;;  %v3661_v2 = vadd.f32 -1.4531521, %v673_v39  ;;  %v674_v26 = vmul.f32 1.0614054, %v4998_v11  ;;  %990 = vadd.xlane.f32.xlu0 %v5075_v38  ;;  %v925_v48 = vsub.f32 0.0, %v893_v17 }
 0x147   : > { %v5087_v56 = vmul.f32 %v955_v23, %v4884_v10  ;;  %v5090_v16 = vmul.f32 %v956_v58, %v4916_v46  ;;  %v734_v6 = vmul.f32 %v4966_v45, %v718_v12  ;;  %v719_v32 = vadd.f32 1.4214138, %v703_v5 }
 0x148   : > { %v720_v41 = vadd.f32 1.4214138, %v704_v28  ;;  %v705_v59 = vmul.f32 %v4973_v31, %v3661_v2  ;;  %v3662_v29 = vadd.f32 -1.4531521, %v674_v26  ;;  %v941_v50 = vsel %vm909_vm8, %v925_v48, %v893_v17 }
 0x149   : > { %992 = vadd.xlane.f32.xlu1 %v5087_v56  ;;  %v3674_v54 = vadd.f32 -0.28449672, %v734_v6  ;;  %v675_v10 = vmul.f32 1.0614054, %v4989_v8  ;;  %v676_v0 = vmul.f32 1.0614054, %v5023_v47  ;;  %v735_v43 = vmul.f32 %v4959_v13, %v719_v32 }
 0x14a   : > { %v957_v46 = vadd.f32 1.0, %v941_v50  ;;  %v736_v25 = vmul.f32 %v4982_v22, %v720_v41  ;;  %v721_v55 = vadd.f32 1.4214138, %v705_v59  ;;  %994 = vadd.xlane.f32.xlu0 %v5090_v16  ;;  %v706_v51 = vmul.f32 %v4998_v11, %v3662_v29 }
 0x14b   : > { %v766_v18 = vmul.f32 %v4966_v45, %v3674_v54  ;;  %v3663_v49 = vadd.f32 -1.4531521, %v675_v10  ;;  %v3664_v7 = vadd.f32 -1.4531521, %v676_v0  ;;  %v3675_v4 = vadd.f32 -0.28449672, %v735_v43 }
 0x14c   : > { %v5105_v44 = vmul.f32 %v957_v46, %v4902_v27  ;;  %v3676_v33 = vadd.f32 -0.28449672, %v736_v25  ;;  %v737_v15 = vmul.f32 %v4973_v31, %v721_v55  ;;  %v722_v57 = vadd.f32 1.4214138, %v706_v51 }
 0x14d   : > { %v782_v21 = vadd.f32 0.2548296, %v766_v18  ;;  %v707_v3 = vmul.f32 %v4989_v8, %v3663_v49  ;;  %v708_v19 = vmul.f32 %v5023_v47, %v3664_v7  ;;  %vm910_vm9 = vcmp.lt.f32.partialorder %v4854_v52, 0.0  ;;  %v6941_v49 = vld [vmem:[#allocation21_spill] sm:$0xff] }
 0x14e   : > { %996 = vadd.xlane.f32.xlu1 %v5105_v44  ;;  %v767_v36 = vmul.f32 %v4959_v13, %v3675_v4  ;;  %v768_v62 = vmul.f32 %v4982_v22, %v3676_v33  ;;  %v3677_v27 = vadd.f32 -0.28449672, %v737_v15  ;;  %v677_v1 = vmul.f32 1.0614054, %v5011_v35 }
 0x14f   : > { %v798_v37 = vmul.f32 %v4966_v45, %v782_v21  ;;  %v738_v39 = vmul.f32 %v4998_v11, %v722_v57  ;;  %v723_v23 = vadd.f32 1.4214138, %v707_v3  ;;  %v724_v58 = vadd.f32 1.4214138, %v708_v19  ;;  %v6942_v19 = vld [vmem:[#allocation23_spill] sm:$0xff] }
 0x150   : > { %v783_v17 = vadd.f32 0.2548296, %v767_v36  ;;  %v784_v12 = vadd.f32 0.2548296, %v768_v62  ;;  %v769_v5 = vmul.f32 %v4973_v31, %v3677_v27  ;;  %v3665_v28 = vadd.f32 -1.4531521, %v677_v1 }
 0x151   : > { %vm911_vm10 = vcmp.lt.f32.partialorder %v4839_v30, 0.0  ;;  %vm912_vm11 = vcmp.lt.f32.partialorder %v4888_v34, 0.0  ;;  %v878_v2 = vmul.f32 %v4970_v14, %v798_v37  ;;  %v3678_v26 = vadd.f32 -0.28449672, %v738_v39  ;;  %v6943_v37 = vld [vmem:[#allocation18_spill] sm:$0xff]  ;;  %v6945_v30 = vld [vmem:[#allocation16_spill] sm:$0xff] }
 0x152   : > { %v739_v48 = vmul.f32 %v4989_v8, %v723_v23  ;;  %v740_v45 = vmul.f32 %v5023_v47, %v724_v58  ;;  %v799_v6 = vmul.f32 %v4959_v13, %v783_v17  ;;  %v800_v32 = vmul.f32 %v4982_v22, %v784_v12  ;;  %v6946_v34 = vld [vmem:[#allocation20_spill] sm:$0xff] }
 0x153   : > { %v785_v41 = vadd.f32 0.2548296, %v769_v5  ;;  %v709_v59 = vmul.f32 %v5011_v35, %v3665_v28  ;;  %vm913_vm12 = vcmp.lt.f32.partialorder %v4865_v60, 0.0  ;;  %v894_v29 = vsub.f32 1.0, %v878_v2  ;;  %v6944_v5 = vld [vmem:[#allocation22_spill] sm:$0xff] }
 0x154   : > { %v770_v50 = vmul.f32 %v4998_v11, %v3678_v26  ;;  %v3679_v54 = vadd.f32 -0.28449672, %v739_v48  ;;  %v3680_v10 = vadd.f32 -0.28449672, %v740_v45  ;;  %v879_v14 = vmul.f32 %v4962_v9, %v799_v6 }
 0x155   : > { %v880_v0 = vmul.f32 %v4985_v42, %v800_v32  ;;  %v801_v46 = vmul.f32 %v4973_v31, %v785_v41  ;;  %v725_v43 = vadd.f32 1.4214138, %v709_v59  ;;  %v926_v13 = vsub.f32 0.0, %v894_v29  ;;  %v6947_v32 = vld [vmem:[#allocation13_spill] sm:$0xff] }
 0x156   : > { %v786_v25 = vadd.f32 0.2548296, %v770_v50  ;;  %v771_v22 = vmul.f32 %v4989_v8, %v3679_v54  ;;  %v772_v55 = vmul.f32 %v5023_v47, %v3680_v10  ;;  %v895_v18 = vsub.f32 1.0, %v879_v14  ;;  %v6948_v50 = vld [vmem:[#allocation9_spill] sm:$0xff]  ;;  %v6949_v54 = vld [vmem:[#allocation11_spill] sm:$0xff] }
 0x157   : > { %v896_v51 = vsub.f32 1.0, %v880_v0  ;;  %v881_v7 = vmul.f32 %v6941_v49, %v801_v46  ;;  %v741_v4 = vmul.f32 %v5011_v35, %v725_v43  ;;  %v942_v9 = vsel %vm910_vm9, %v926_v13, %v894_v29  ;;  %v6950_v13 = vld [vmem:[#allocation12_spill] sm:$0xff] }
 0x158   : > { %v802_v42 = vmul.f32 %v4998_v11, %v786_v25  ;;  %v787_v33 = vadd.f32 0.2548296, %v771_v22  ;;  %v788_v31 = vadd.f32 0.2548296, %v772_v55  ;;  %v958_v15 = vadd.f32 1.0, %v942_v9  ;;  %v6951_v25 = vld [vmem:[#allocation19_spill] sm:$0xff] }
 0x159   : > { %v927_v21 = vsub.f32 0.0, %v895_v18  ;;  %v928_v57 = vsub.f32 0.0, %v896_v51  ;;  %v897_v3 = vsub.f32 1.0, %v881_v7  ;;  %v3681_v1 = vadd.f32 -0.28449672, %v741_v4  ;;  %v6952_v7 = vld [vmem:[#allocation10_spill] sm:$0xff] }
 0x15a   : > { %v882_v36 = vmul.f32 %v6942_v19, %v802_v42  ;;  %v803_v62 = vmul.f32 %v4989_v8, %v787_v33  ;;  %v804_v27 = vmul.f32 %v5023_v47, %v788_v31  ;;  %v5142_v39 = vmul.f32 %v958_v15, %v6943_v37  ;;  %v6953_v9 = vld [vmem:[#allocation15_spill] sm:$0xff]  ;;  %v6955_v19 = vld [vmem:[#allocation14_spill] sm:$0xff] }
 0x15b   : > { %v943_v52 = vsel %vm911_vm10, %v927_v21, %v895_v18  ;;  %v944_v11 = vsel %vm912_vm11, %v928_v57, %v896_v51  ;;  %v929_v23 = vsub.f32 0.0, %v897_v3  ;;  %v773_v2 = vmul.f32 %v5011_v35, %v3681_v1  ;;  %v1174_v1 = vld [vmem:[%s6868_s2 + $0x78] sm:$0xff]  ;;  %v1173_v37 = vld [vmem:[%s6868_s2 + $0x70] sm:$0xff] }
 0x15c   : > { %v959_v58 = vadd.f32 1.0, %v943_v52  ;;  %v960_v17 = vadd.f32 1.0, %v944_v11  ;;  %v898_v12 = vsub.f32 1.0, %v882_v36  ;;  %v883_v28 = vmul.f32 %v6944_v5, %v803_v62  ;;  %998 = vadd.xlane.f32.xlu0 %v5142_v39  ;;  %3948 = vmatprep.subr.mxu1 %v1174_v1  ;;  %v1172_v52 = vld [vmem:[%s6868_s2 + $0x68] sm:$0xff]  ;;  %v1171_v11 = vld [vmem:[%s6868_s2 + $0x60] sm:$0xff] }
 0x15d   : > { %v945_v8 = vsel %vm913_vm12, %v929_v23, %v897_v3  ;;  %v884_v47 = vmul.f32 %v5029_v61, %v804_v27  ;;  %vm914_vm13 = vcmp.lt.f32.partialorder %v6947_v32, 0.0  ;;  %v789_v29 = vadd.f32 0.2548296, %v773_v2  ;;  %v6954_v3 = vld [vmem:[#allocation17_spill] sm:$0xff]  ;;  %3949 = vmatpush3.msra.mxu1 %v1174_v1  ;;  %v1170_v23 = vld [vmem:[%s6868_s2 + $0x58] sm:$0xff] }
 0x15e   : > { %v5155_v26 = vmul.f32 %v959_v58, %v6945_v30  ;;  %v5158_v48 = vmul.f32 %v960_v17, %v6946_v34  ;;  %v961_v45 = vadd.f32 1.0, %v945_v8  ;;  %v930_v6 = vsub.f32 0.0, %v898_v12  ;;  %3950 = vmatprep.subr.mxu1 %v1173_v37 }
 0x15f   : > { %v899_v41 = vsub.f32 1.0, %v883_v28  ;;  %v900_v59 = vsub.f32 1.0, %v884_v47  ;;  %v561_v60 = vmul.f32 0.5, %v6948_v50  ;;  %v562_v10 = vmul.f32 0.5, %v6949_v54  ;;  %3951 = vmatpush3.msra.mxu1 %v1173_v37 }
 0x160   : > { %1000 = vadd.xlane.f32.xlu1 %v5155_v26  ;;  %v946_v61 = vsel %vm914_vm13, %v930_v6, %v898_v12  ;;  %1002 = vadd.xlane.f32.xlu0 %v5158_v48  ;;  %v805_v43 = vmul.f32 %v5011_v35, %v789_v29  ;;  %vm915_vm14 = vcmp.lt.f32.partialorder %v6950_v13, 0.0  ;;  %vm916_vm15 = vcmp.lt.f32.partialorder %v6951_v25, 0.0  ;;  %v1169_v25 = vld [vmem:[%s6868_s2 + $0x50] sm:$0xff] }
 0x161   : > { %v962_v14 = vadd.f32 1.0, %v946_v61  ;;  %v931_v0 = vsub.f32 0.0, %v899_v41  ;;  %v932_v46 = vsub.f32 0.0, %v900_v59  ;;  %v5168_v22 = vmul.f32 %v961_v45, %v561_v60  ;;  %3952 = vmatprep.subr.mxu1 %v1172_v52 }
 0x162   : > { %v885_v49 = vmul.f32 %v5018_v20, %v805_v43  ;;  %v563_v4 = vmul.f32 0.5, %v6952_v7  ;;  %v564_v42 = vmul.f32 0.5, %v6953_v9  ;;  %vm917_vm0 = vcmp.lt.f32.partialorder %v6954_v3, 0.0  ;;  %3953 = vmatpush3.msra.mxu1 %v1172_v52  ;;  %v1165_v7 = vld [vmem:[%s6868_s2 + $0x30] sm:$0xff]  ;;  %v1163_v3 = vld [vmem:[%s6868_s2 + $0x20] sm:$0xff] }
 0x163   : > { %v5170_v55 = vmul.f32 %v962_v14, %v562_v10  ;;  %v947_v18 = vsel %vm915_vm14, %v931_v0, %v899_v41  ;;  %v948_v51 = vsel %vm916_vm15, %v932_v46, %v900_v59  ;;  %v565_v36 = vmul.f32 0.5, %v6955_v19  ;;  %3954 = vmatprep.subr.mxu1 %v1171_v11 }
 0x164   : > { %1004 = vadd.xlane.f32.xlu1 %v5168_v22  ;;  %v963_v33 = vadd.f32 1.0, %v947_v18  ;;  %v964_v35 = vadd.f32 1.0, %v948_v51  ;;  %v901_v31 = vsub.f32 1.0, %v885_v49  ;;  %3955 = vmatpush3.msra.mxu1 %v1171_v11  ;;  %v1166_v18 = vld [vmem:[%s6868_s2 + $0x38] sm:$0xff] }
 0x165   : > { %1006 = vadd.xlane.f32.xlu0 %v5170_v55  ;;  %3956 = vmatprep.subr.mxu1 %v1170_v23 }
 0x166   : > { %v5177_v15 = vmul.f32 %v963_v33, %v563_v4  ;;  %v5179_v21 = vmul.f32 %v964_v35, %v564_v42  ;;  %v933_v57 = vsub.f32 0.0, %v901_v31  ;;  %3957 = vmatpush3.msra.mxu1 %v1170_v23  ;;  %v1164_v4 = vld [vmem:[%s6868_s2 + $0x28] sm:$0xff] }
 0x167   : > { %3958 = vmatprep.subr.mxu1 %v1169_v25 }
 0x168   : > { %1008 = vadd.xlane.f32.xlu1 %v5177_v15  ;;  %v949_v20 = vsel %vm917_vm0, %v933_v57, %v901_v31  ;;  %3959 = vmatpush3.msra.mxu1 %v1169_v25 }
 0x169   : > { %1010 = vadd.xlane.f32.xlu0 %v5179_v21  ;;  %v965_v62 = vadd.f32 1.0, %v949_v20  ;;  %v1162_v20 = vld [vmem:[%s6868_s2 + $0x18] sm:$0xff] }
 0x16b   : > { %v5185_v27 = vmul.f32 %v965_v62, %v565_v36 }
 0x16d   : > { %1012 = vadd.xlane.f32.xlu1 %v5185_v27 }
 0x1c7   : > { %v983_v58 = vpop.xlane.xlu0 %982 }
 0x1c8   : > { %v1015_v17 = vmul.f32 0.0078125, %v983_v58  ;;  %v987_v12 = vpop.xlane.xlu1 %986 }
 0x1c9   : > { %v1017_v5 = vmul.f32 0.0078125, %v987_v12 }
 0x1ca   : > { %v5204_v28 = vsub.f32 %v5046_v63, %v1015_v17 }
 0x1cb   : > { %v985_v8 = vpop.xlane.xlu0 %984  ;;  %v5207_v47 = vsub.f32 %v5049_v40, %v1017_v5 }
 0x1cc   : > { %v1016_v2 = vmul.f32 0.0078125, %v985_v8  ;;  %v1047_v30 = vmul.f32 %v5204_v28, %v5204_v28 }
 0x1cd   : > { %v989_v34 = vpop.xlane.xlu1 %988  ;;  %v1049_v6 = vmul.f32 %v5207_v47, %v5207_v47 }
 0x1ce   : > { %v1018_v45 = vmul.f32 0.0078125, %v989_v34  ;;  %1063 = vadd.xlane.f32.xlu0 %v1047_v30  ;;  %v5214_v32 = vsub.f32 %v5055_v24, %v1016_v2 }
 0x1cf   : > { %v991_v41 = vpop.xlane.xlu0 %990 }
 0x1d0   : > { %v5217_v63 = vsub.f32 %v5068_v53, %v1018_v45  ;;  %v1019_v59 = vmul.f32 0.0078125, %v991_v41  ;;  %v1048_v40 = vmul.f32 %v5214_v32, %v5214_v32 }
 0x1d2   : > { %v993_v29 = vpop.xlane.xlu1 %992  ;;  %1067 = vadd.xlane.f32.xlu0 %v1049_v6  ;;  %1065 = vadd.xlane.f32.xlu1 %v1048_v40  ;;  %v1050_v60 = vmul.f32 %v5217_v63, %v5217_v63  ;;  %v5224_v54 = vsub.f32 %v5075_v38, %v1019_v59 }
 0x1d3   : > { %v1020_v50 = vmul.f32 0.0078125, %v993_v29  ;;  %v995_v24 = vpop.xlane.xlu0 %994 }
 0x1d4   : > { %v1021_v10 = vmul.f32 0.0078125, %v995_v24  ;;  %v1051_v53 = vmul.f32 %v5224_v54, %v5224_v54 }
 0x1d5   : > { %v5229_v61 = vsub.f32 %v5087_v56, %v1020_v50 }
 0x1d6   : > { %1069 = vadd.xlane.f32.xlu1 %v1050_v60  ;;  %1071 = vadd.xlane.f32.xlu0 %v1051_v53  ;;  %v5234_v46 = vsub.f32 %v5090_v16, %v1021_v10  ;;  %v1168_v16 = vld [vmem:[%s6868_s2 + $0x48] sm:$0xff] }
 0x1d7   : > { %v997_v14 = vpop.xlane.xlu1 %996  ;;  %v1052_v0 = vmul.f32 %v5229_v61, %v5229_v61  ;;  %3960 = vmatprep.subr.mxu1 %v1168_v16 }
 0x1d8   : > { %v1022_v43 = vmul.f32 0.0078125, %v997_v14  ;;  %v1053_v38 = vmul.f32 %v5234_v46, %v5234_v46  ;;  %3961 = vmatpush3.msra.mxu1 %v1168_v16 }
 0x1da   : > { %v5239_v13 = vsub.f32 %v5105_v44, %v1022_v43  ;;  %1073 = vadd.xlane.f32.xlu1 %v1052_v0  ;;  %1075 = vadd.xlane.f32.xlu0 %v1053_v38  ;;  %v1167_v44 = vld [vmem:[%s6868_s2 + $0x40] sm:$0xff] }
 0x1db   : > { %3962 = vmatprep.subr.mxu1 %v1167_v44 }
 0x1dc   : > { %v1054_v56 = vmul.f32 %v5239_v13, %v5239_v13  ;;  %3963 = vmatpush3.msra.mxu1 %v1167_v44 }
 0x1dd   : > { %3964 = vmatprep.subr.mxu1 %v1166_v18 }
 0x1de   : > { %1077 = vadd.xlane.f32.xlu1 %v1054_v56  ;;  %3965 = vmatpush3.msra.mxu1 %v1166_v18 }
 0x1df   : > { %3966 = vmatprep.subr.mxu1 %v1165_v7 }
 0x1e0   : > { %3967 = vmatpush3.msra.mxu1 %v1165_v7 }
 0x1e1   : > { %3968 = vmatprep.subr.mxu1 %v1164_v4 }
 0x1e2   : > { %3969 = vmatpush3.msra.mxu1 %v1164_v4 }
 0x1e3   : > { %3970 = vmatprep.subr.mxu1 %v1163_v3 }
 0x1e4   : > { %3971 = vmatpush3.msra.mxu1 %v1163_v3 }
 0x1e5   : > { %v999_v51 = vpop.xlane.xlu0 %998  ;;  %3972 = vmatprep.subr.mxu1 %v1162_v20 }
 0x1e6   : > { %v1023_v49 = vmul.f32 0.0078125, %v999_v51  ;;  %3973 = vmatpush3.msra.mxu1 %v1162_v20 }
 0x1e8   : > { %v5262_v42 = vsub.f32 %v5142_v39, %v1023_v49 }
 0x1e9   : > { %v1001_v9 = vpop.xlane.xlu1 %1000  ;;  %v1003_v35 = vpop.xlane.xlu0 %1002 }
 0x1ea   : > { %v1024_v33 = vmul.f32 0.0078125, %v1001_v9  ;;  %v1025_v31 = vmul.f32 0.0078125, %v1003_v35  ;;  %v1055_v57 = vmul.f32 %v5262_v42, %v5262_v42 }
 0x1ec   : > { %v5273_v39 = vsub.f32 %v5155_v26, %v1024_v33  ;;  %1079 = vadd.xlane.f32.xlu0 %v1055_v57  ;;  %v5276_v36 = vsub.f32 %v5158_v48, %v1025_v31 }
 0x1ed   : > { %v1005_v19 = vpop.xlane.xlu1 %1004 }
 0x1ee   : > { %v1026_v62 = vmul.f32 0.0078125, %v1005_v19  ;;  %v1007_v1 = vpop.xlane.xlu0 %1006  ;;  %v1056_v37 = vmul.f32 %v5273_v39, %v5273_v39  ;;  %v1057_v11 = vmul.f32 %v5276_v36, %v5276_v36 }
 0x1ef   : > { %v1027_v52 = vmul.f32 0.0078125, %v1007_v1 }
 0x1f0   : > { %1081 = vadd.xlane.f32.xlu1 %v1056_v37  ;;  %v5283_v26 = vsub.f32 %v5168_v22, %v1026_v62  ;;  %1083 = vadd.xlane.f32.xlu0 %v1057_v11 }
 0x1f1   : > { %v1009_v23 = vpop.xlane.xlu1 %1008  ;;  %v5286_v48 = vsub.f32 %v5170_v55, %v1027_v52 }
 0x1f2   : > { %v1028_v58 = vmul.f32 0.0078125, %v1009_v23  ;;  %v1011_v17 = vpop.xlane.xlu0 %1010  ;;  %v1058_v12 = vmul.f32 %v5283_v26, %v5283_v26 }
 0x1f3   : > { %v1029_v5 = vmul.f32 0.0078125, %v1011_v17  ;;  %v1059_v8 = vmul.f32 %v5286_v48, %v5286_v48 }
 0x1f4   : > { %1085 = vadd.xlane.f32.xlu1 %v1058_v12  ;;  %v5293_v2 = vsub.f32 %v5177_v15, %v1028_v58  ;;  %v1161_v15 = vld [vmem:[%s6868_s2 + $0x10] sm:$0xff] }
 0x1f5   : > { %1087 = vadd.xlane.f32.xlu0 %v1059_v8  ;;  %v5296_v22 = vsub.f32 %v5179_v21, %v1029_v5  ;;  %v1160_v21 = vld [vmem:[%s6868_s2 + $0x8] sm:$0xff]  ;;  %3974 = vmatprep.subr.mxu1 %v1161_v15 }
 0x1f6   : > { %v1060_v55 = vmul.f32 %v5293_v2, %v5293_v2  ;;  %v1013_v30 = vpop.xlane.xlu1 %1012  ;;  %3975 = vmatpush3.msra.mxu1 %v1161_v15 }
 0x1f7   : > { %v1061_v34 = vmul.f32 %v5296_v22, %v5296_v22  ;;  %v1030_v45 = vmul.f32 0.0078125, %v1013_v30  ;;  %3976 = vmatprep.subr.mxu1 %v1160_v21 }
 0x1f8   : > { %1089 = vadd.xlane.f32.xlu1 %v1060_v55  ;;  %3977 = vmatpush3.msra.mxu1 %v1160_v21 }
 0x1f9   : > { %1091 = vadd.xlane.f32.xlu0 %v1061_v34  ;;  %v5303_v6 = vsub.f32 %v5185_v27, %v1030_v45  ;;  %v1159_v27 = vld [vmem:[%s6868_s2] sm:$0xff] }
 0x1fa   : > { %3978 = vmatprep.subr.mxu1 %v1159_v27 }
 0x1fb   : > { %v1062_v41 = vmul.f32 %v5303_v6, %v5303_v6  ;;  %3979 = vmatpush3.msra.mxu1 %v1159_v27 }
 0x1fd   : > { %1093 = vadd.xlane.f32.xlu1 %v1062_v41 }
 0x257   : > { %v1064_v59 = vpop.xlane.xlu0 %1063 }
 0x258   : > { %v1095_v40 = vmul.f32 0.0078125, %v1064_v59 }
 0x25a   : > { %v1111_v29 = vadd.f32 1e-05, %v1095_v40 }
 0x25b   : > { %v1066_v50 = vpop.xlane.xlu1 %1065  ;;  %v1068_v60 = vpop.xlane.xlu0 %1067 }
 0x25c   : > { %4248 = vrsqrt.f32 %v1111_v29  ;;  %v1096_v24 = vmul.f32 0.0078125, %v1066_v50  ;;  %v1097_v10 = vmul.f32 0.0078125, %v1068_v60 }
 0x25e   : > { %v1112_v53 = vadd.f32 1e-05, %v1096_v24  ;;  %v1113_v14 = vadd.f32 1e-05, %v1097_v10 }
 0x25f   : > { %v1070_v0 = vpop.xlane.xlu1 %1069  ;;  %v1072_v43 = vpop.xlane.xlu0 %1071 }
 0x260   : > { %4250 = vrsqrt.f32 %v1112_v53  ;;  %v1098_v38 = vmul.f32 0.0078125, %v1070_v0  ;;  %v1099_v56 = vmul.f32 0.0078125, %v1072_v43 }
 0x261   : > { %4252 = vrsqrt.f32 %v1113_v14 }
 0x262   : > { %v1114_v25 = vadd.f32 1e-05, %v1098_v38  ;;  %v1115_v16 = vadd.f32 1e-05, %v1099_v56 }
 0x263   : > { %v1074_v44 = vpop.xlane.xlu1 %1073  ;;  %v1076_v18 = vpop.xlane.xlu0 %1075 }
 0x264   : > { %4254 = vrsqrt.f32 %v1114_v25  ;;  %v1100_v51 = vmul.f32 0.0078125, %v1074_v44  ;;  %v1101_v49 = vmul.f32 0.0078125, %v1076_v18 }
 0x265   : > { %4256 = vrsqrt.f32 %v1115_v16 }
 0x266   : > { %v1116_v7 = vadd.f32 1e-05, %v1100_v51  ;;  %v1117_v4 = vadd.f32 1e-05, %v1101_v49 }
 0x267   : > { %v1078_v9 = vpop.xlane.xlu1 %1077 }
 0x268   : > { %4258 = vrsqrt.f32 %v1116_v7  ;;  %v1102_v33 = vmul.f32 0.0078125, %v1078_v9 }
 0x269   : > { %v4249_v35 = vpop.eup %4248  ;;  %4260 = vrsqrt.f32 %v1117_v4 }
 0x26a   : > { %v1118_v31 = vadd.f32 1e-05, %v1102_v33  ;;  %v1143_v57 = vmul.f32 %v4249_v35, %v5204_v28 }
 0x26c   : > { %4262 = vrsqrt.f32 %v1118_v31  ;;  %3980 = vmatprep.mubr.f32.mxu1 %v1143_v57 }
 0x26d   : > { %v4251_v3 = vpop.eup %4250 }
 0x26e   : > { %v4253_v20 = vpop.eup %4252  ;;  %v1144_v19 = vmul.f32 %v4251_v3, %v5214_v32 }
 0x26f   : > { %v1145_v62 = vmul.f32 %v4253_v20, %v5207_v47 }
 0x270   : > { %3981 = vmatmul.mubr.f32.vlgmr.msra.gmra.mxu1 %v1144_v19 }
 0x271   : > { %v4255_v1 = vpop.eup %4254  ;;  %3983 = vmatprep.mubr.f32.mxu1 %v1145_v62 }
 0x272   : > { %v4257_v37 = vpop.eup %4256  ;;  %v1146_v52 = vmul.f32 %v4255_v1, %v5217_v63 }
 0x273   : > { %v1147_v11 = vmul.f32 %v4257_v37, %v5224_v54 }
 0x274   : > { %3984 = vmatmul.mubr.f32.gmra.mxu1 %v1146_v52 }
 0x275   : > { %v1080_v23 = vpop.xlane.xlu0 %1079  ;;  %v4259_v58 = vpop.eup %4258  ;;  %3986 = vmatprep.mubr.f32.mxu1 %v1147_v11 }
 0x276   : > { %v1103_v28 = vmul.f32 0.0078125, %v1080_v23  ;;  %v4261_v17 = vpop.eup %4260  ;;  %v1148_v12 = vmul.f32 %v4259_v58, %v5229_v61 }
 0x277   : > { %v1149_v47 = vmul.f32 %v4261_v17, %v5234_v46 }
 0x278   : > { %v1119_v5 = vadd.f32 1e-05, %v1103_v28  ;;  %3987 = vmatmul.mubr.f32.gmra.mxu1 %v1148_v12 }
 0x279   : > { %v1082_v32 = vpop.xlane.xlu1 %1081  ;;  %v1084_v55 = vpop.xlane.xlu0 %1083  ;;  %3989 = vmatprep.mubr.f32.mxu1 %v1149_v47 }
 0x27a   : > { %v1104_v8 = vmul.f32 0.0078125, %v1082_v32  ;;  %v4263_v30 = vpop.eup %4262  ;;  %4264 = vrsqrt.f32 %v1119_v5  ;;  %v1105_v63 = vmul.f32 0.0078125, %v1084_v55 }
 0x27b   : > { %v1150_v34 = vmul.f32 %v4263_v30, %v5239_v13 }
 0x27c   : > { %v1120_v54 = vadd.f32 1e-05, %v1104_v8  ;;  %v1121_v45 = vadd.f32 1e-05, %v1105_v63 }
 0x27d   : > { %v1086_v15 = vpop.xlane.xlu1 %1085  ;;  %3990 = vmatmul.mubr.f32.gmra.mxu1 %v1150_v34 }
 0x27e   : > { %4266 = vrsqrt.f32 %v1120_v54  ;;  %v1106_v21 = vmul.f32 0.0078125, %v1086_v15  ;;  %v1088_v41 = vpop.xlane.xlu0 %1087 }
 0x27f   : > { %4268 = vrsqrt.f32 %v1121_v45  ;;  %v1107_v61 = vmul.f32 0.0078125, %v1088_v41 }
 0x280   : > { %v1122_v27 = vadd.f32 1e-05, %v1106_v21 }
 0x281   : > { %v1123_v46 = vadd.f32 1e-05, %v1107_v61  ;;  %v1090_v59 = vpop.xlane.xlu1 %1089 }
 0x282   : > { %4270 = vrsqrt.f32 %v1122_v27  ;;  %v1108_v40 = vmul.f32 0.0078125, %v1090_v59  ;;  %v1092_v29 = vpop.xlane.xlu0 %1091 }
 0x283   : > { %4272 = vrsqrt.f32 %v1123_v46  ;;  %v1109_v50 = vmul.f32 0.0078125, %v1092_v29 }
 0x284   : > { %v1124_v60 = vadd.f32 1e-05, %v1108_v40 }
 0x285   : > { %v1125_v24 = vadd.f32 1e-05, %v1109_v50 }
 0x286   : > { %4274 = vrsqrt.f32 %v1124_v60  ;;  %v1094_v13 = vpop.xlane.xlu1 %1093 }
 0x287   : > { %4276 = vrsqrt.f32 %v1125_v24  ;;  %v4265_v10 = vpop.eup %4264  ;;  %v1110_v53 = vmul.f32 0.0078125, %v1094_v13 }
 0x288   : > { %v1151_v14 = vmul.f32 %v4265_v10, %v5262_v42 }
 0x289   : > { %v1126_v0 = vadd.f32 1e-05, %v1110_v53 }
 0x28a   : > { %3992 = vmatprep.mubr.f32.mxu1 %v1151_v14 }
 0x28b   : > { %v4267_v43 = vpop.eup %4266  ;;  %4278 = vrsqrt.f32 %v1126_v0 }
 0x28c   : > { %v4269_v38 = vpop.eup %4268  ;;  %v1152_v56 = vmul.f32 %v4267_v43, %v5273_v39 }
 0x28d   : > { %v1153_v25 = vmul.f32 %v4269_v38, %v5276_v36 }
 0x28e   : > { %3993 = vmatmul.mubr.f32.gmra.mxu1 %v1152_v56 }
 0x28f   : > { %v4271_v16 = vpop.eup %4270  ;;  %3995 = vmatprep.mubr.f32.mxu1 %v1153_v25 }
 0x290   : > { %v4273_v44 = vpop.eup %4272  ;;  %v1154_v18 = vmul.f32 %v4271_v16, %v5283_v26  ;;  %v5335_v26 = vld [vmem:[%s6871_s5 + $0x1] ss:$0 sm:$0xff] }
 0x291   : > { %v1155_v51 = vmul.f32 %v4273_v44, %v5286_v48 }
 0x292   : > { %3996 = vmatmul.mubr.f32.gmra.mxu1 %v1154_v18 }
 0x293   : > { %v4275_v49 = vpop.eup %4274  ;;  %3998 = vmatprep.mubr.f32.mxu1 %v1155_v51 }
 0x294   : > { %v4277_v42 = vpop.eup %4276  ;;  %v1156_v7 = vmul.f32 %v4275_v49, %v5293_v2 }
 0x295   : > { %v1157_v4 = vmul.f32 %v4277_v42, %v5296_v22 }
 0x296   : > { %3999 = vmatmul.mubr.f32.gmra.mxu1 %v1156_v7 }
 0x297   : > { %4001 = vmatprep.mubr.f32.mxu1 %v1157_v4 }
 0x298   : > { %v4279_v39 = vpop.eup %4278 }
 0x299   : > { %v1158_v36 = vmul.f32 %v4279_v39, %v5303_v6 }
 0x29b   : > { %4002 = vmatmul.mubr.f32.gmra.mxu1 %v1158_v36 }
 0x330   : > { %v3982_v48 = vpop.f32.mrf.mxu1 }
 0x331   : > { %v1251_v9 = vadd.f32 %v3982_v48, %v5335_v26 }
 0x332   : > { %v1245_v33 = vpop.f32.mrf.mxu1 }
 0x333   : > { %v5338_v35 = vmul.f32 0.70710677, %v1251_v9  ;;  %v1246_v2 = vadd.f32 %v5335_v26, %v1245_v33  ;;  %v5366_v38 = vmul.f32 0.5, %v1251_v9 }
 0x334   : > { %v3985_v22 = vpop.f32.mrf.mxu1 }
 0x335   : > { %v1357_v31 = vand.u32 2147483647, %v5338_v35  ;;  %v5342_v57 = vmul.f32 0.70710677, %v1246_v2  ;;  %v1261_v6 = vadd.f32 %v3985_v22, %v5335_v26  ;;  %v5372_v18 = vmul.f32 0.5, %v1246_v2 }
 0x336   : > { %v1255_v3 = vpop.f32.mrf.mxu1  ;;  %vm1677_vm1 = vcmp.lt.f32.partialorder %v5338_v35, 0.0 }
 0x337   : > { %v1373_v20 = vmul.f32 0.3275911, %v1357_v31  ;;  %v1356_v19 = vand.u32 2147483647, %v5342_v57  ;;  %v5346_v62 = vmul.f32 0.70710677, %v1261_v6  ;;  %v1256_v1 = vadd.f32 %v5335_v26, %v1255_v3 }
 0x338   : > { %v3988_v37 = vpop.f32.mrf.mxu1  ;;  %v1581_v17 = vmul.f32 %v1357_v31, %v1357_v31  ;;  %v5375_v36 = vmul.f32 0.5, %v1261_v6  ;;  %vm1676_vm2 = vcmp.lt.f32.partialorder %v5342_v57, 0.0 }
 0x339   : > { %v1389_v52 = vadd.f32 1.0, %v1373_v20  ;;  %v1372_v11 = vmul.f32 0.3275911, %v1356_v19  ;;  %v1359_v23 = vand.u32 2147483647, %v5346_v62  ;;  %v1271_v8 = vadd.f32 %v3988_v37, %v5335_v26 }
 0x33a   : > { %v5350_v58 = vmul.f32 0.70710677, %v1256_v1  ;;  %v1265_v28 = vpop.f32.mrf.mxu1  ;;  %v1580_v30 = vmul.f32 %v1356_v19, %v1356_v19  ;;  %v1597_v34 = vsub.f32 0.0, %v1581_v17  ;;  %v5377_v33 = vmul.f32 0.5, %v1256_v1 }
 0x33b   : > { %4280 = vrcp.f32 %v1389_v52  ;;  %v1388_v12 = vadd.f32 1.0, %v1372_v11  ;;  %v1375_v32 = vmul.f32 0.3275911, %v1359_v23  ;;  %v1266_v55 = vadd.f32 %v5335_v26, %v1265_v28 }
 0x33c   : > { %v1358_v47 = vand.u32 2147483647, %v5350_v58  ;;  %v1583_v63 = vmul.f32 %v1359_v23, %v1359_v23  ;;  %v5355_v54 = vmul.f32 0.70710677, %v1271_v8  ;;  %v1596_v27 = vsub.f32 0.0, %v1580_v30 }
 0x33d   : > { %v3991_v5 = vpop.f32.mrf.mxu1  ;;  %4282 = vrcp.f32 %v1388_v12  ;;  %v1391_v15 = vadd.f32 1.0, %v1375_v32  ;;  %v5358_v61 = vmul.f32 0.70710677, %v1266_v55  ;;  %v1614_v13 = vmul.f32 1.442695, %v1597_v34 }
 0x33e   : > { %v1582_v21 = vmul.f32 %v1358_v47, %v1358_v47  ;;  %v1361_v41 = vand.u32 2147483647, %v5355_v54  ;;  %v1281_v46 = vadd.f32 %v3991_v5, %v5335_v26  ;;  %v1599_v59 = vsub.f32 0.0, %v1583_v63 }
 0x33f   : > { %v1275_v45 = vpop.f32.mrf.mxu1  ;;  %v1374_v50 = vmul.f32 0.3275911, %v1358_v47  ;;  %v1360_v60 = vand.u32 2147483647, %v5358_v61  ;;  %4284 = vrcp.f32 %v1391_v15  ;;  %v1612_v53 = vmul.f32 1.442695, %v1596_v27 }
 0x340   : > { %v1585_v40 = vmul.f32 %v1361_v41, %v1361_v41  ;;  %v1276_v29 = vadd.f32 %v5335_v26, %v1275_v45  ;;  %v5363_v24 = vmul.f32 0.70710677, %v1281_v46  ;;  %v1598_v10 = vsub.f32 0.0, %v1582_v21 }
 0x341   : > { %v1377_v14 = vmul.f32 0.3275911, %v1361_v41  ;;  %v1584_v0 = vmul.f32 %v1360_v60, %v1360_v60  ;;  %v1618_v56 = vmul.f32 1.442695, %v1599_v59  ;;  %v1390_v51 = vadd.f32 1.0, %v1374_v50 }
 0x342   : > { %v1363_v43 = vand.u32 2147483647, %v5363_v24  ;;  %v1601_v25 = vsub.f32 0.0, %v1585_v40  ;;  %v5368_v16 = vmul.f32 0.70710677, %v1276_v29  ;;  %4286 = vpow2.f32 %v1614_v13 }
 0x343   : > { %v1376_v49 = vmul.f32 0.3275911, %v1360_v60  ;;  %v1616_v7 = vmul.f32 1.442695, %v1598_v10  ;;  %v1600_v4 = vsub.f32 0.0, %v1584_v0  ;;  %4288 = vpow2.f32 %v1612_v53 }
 0x344   : > { %v1587_v42 = vmul.f32 %v1363_v43, %v1363_v43  ;;  %v1362_v39 = vand.u32 2147483647, %v5368_v16  ;;  %v1393_v48 = vadd.f32 1.0, %v1377_v14  ;;  %v1379_v9 = vmul.f32 0.3275911, %v1363_v43 }
 0x345   : > { %4290 = vpow2.f32 %v1618_v56  ;;  %v1622_v22 = vmul.f32 1.442695, %v1601_v25  ;;  %v5380_v31 = vmul.f32 0.5, %v1271_v8  ;;  %v1392_v3 = vadd.f32 1.0, %v1376_v49 }
 0x346   : > { %4292 = vrcp.f32 %v1390_v51  ;;  %v1603_v20 = vsub.f32 0.0, %v1587_v42  ;;  %v1620_v52 = vmul.f32 1.442695, %v1600_v4  ;;  %v1378_v6 = vmul.f32 0.3275911, %v1362_v39 }
 0x347   : > { %4294 = vpow2.f32 %v1616_v7  ;;  %v5385_v23 = vmul.f32 0.5, %v1266_v55  ;;  %v1395_v1 = vadd.f32 1.0, %v1379_v9  ;;  %v1586_v28 = vmul.f32 %v1362_v39, %v1362_v39 }
 0x348   : > { %v5370_v44 = vpop.eup %4280  ;;  %4296 = vrcp.f32 %v1393_v48  ;;  %v5387_v12 = vmul.f32 0.5, %v1281_v46  ;;  %v1626_v47 = vmul.f32 1.442695, %v1603_v20  ;;  %v1394_v55 = vadd.f32 1.0, %v1378_v6 }
 0x349   : > { %v1437_v2 = vmul.f32 1.0614054, %v5370_v44  ;;  %4298 = vpow2.f32 %v1622_v22  ;;  %v5401_v21 = vmul.f32 0.5, %v1276_v29  ;;  %v1602_v41 = vsub.f32 0.0, %v1586_v28 }
 0x34a   : > { %v5382_v37 = vpop.eup %4282  ;;  %4300 = vrcp.f32 %v1392_v3  ;;  %vm1679_vm3 = vcmp.lt.f32.partialorder %v5346_v62, 0.0  ;;  %vm1678_vm4 = vcmp.lt.f32.partialorder %v5350_v58, 0.0  ;;  %vm1681_vm5 = vcmp.lt.f32.partialorder %v5355_v54, 0.0 }
 0x34b   : > { %v3684_v32 = vadd.f32 -1.4531521, %v1437_v2  ;;  %v1436_v63 = vmul.f32 1.0614054, %v5382_v37  ;;  %4302 = vpow2.f32 %v1620_v52  ;;  %v1624_v25 = vmul.f32 1.442695, %v1602_v41 }
 0x34c   : > { %v5399_v15 = vpop.eup %4284  ;;  %4304 = vrcp.f32 %v1395_v1  ;;  %vm1680_vm6 = vcmp.lt.f32.partialorder %v5358_v61, 0.0  ;;  %vm1683_vm7 = vcmp.lt.f32.partialorder %v5363_v24, 0.0  ;;  %vm1682_vm8 = vcmp.lt.f32.partialorder %v5368_v16, 0.0 }
 0x34d   : > { %v1469_v60 = vmul.f32 %v5370_v44, %v3684_v32  ;;  %4306 = vpow2.f32 %v1626_v47  ;;  %v3683_v53 = vadd.f32 -1.4531521, %v1436_v63  ;;  %v1439_v43 = vmul.f32 1.0614054, %v5399_v15 }
 0x34e   : > { %v3994_v19 = vpop.f32.mrf.mxu1  ;;  %4308 = vrcp.f32 %v1394_v55 }
 0x34f   : > { %v1291_v11 = vadd.f32 %v3994_v19, %v5335_v26  ;;  %v5416_v56 = vpop.eup %4286  ;;  %v1485_v22 = vadd.f32 1.4214138, %v1469_v60  ;;  %v1468_v32 = vmul.f32 %v5382_v37, %v3683_v53  ;;  %4310 = vpow2.f32 %v1624_v25 }
 0x350   : > { %v1285_v17 = vpop.f32.mrf.mxu1  ;;  %v5421_v4 = vpop.eup %4288 }
 0x351   : > { %v5389_v5 = vmul.f32 0.70710677, %v1291_v11  ;;  %v5392_v8 = vadd.f32 %v5335_v26, %v1285_v17  ;;  %v5425_v3 = vmul.f32 0.5, %v1291_v11 }
 0x352   : > { %v3997_v30 = vpop.f32.mrf.mxu1  ;;  %v5423_v2 = vpop.eup %4290 }
 0x353   : > { %v1365_v34 = vand.u32 2147483647, %v5389_v5  ;;  %v5397_v45 = vadd.f32 %v3997_v30, %v5335_v26  ;;  %v5404_v27 = vmul.f32 0.70710677, %v5392_v8  ;;  %v5428_v6 = vpop.eup %4292  ;;  %vm1685_vm9 = vcmp.lt.f32.partialorder %v5389_v5, 0.0 }
 0x354   : > { %v1295_v46 = vpop.f32.mrf.mxu1  ;;  %v5434_v47 = vpop.eup %4294 }
 0x355   : > { %v1381_v59 = vmul.f32 0.3275911, %v1365_v34  ;;  %v1589_v40 = vmul.f32 %v1365_v34, %v1365_v34  ;;  %v5407_v50 = vmul.f32 0.70710677, %v5397_v45  ;;  %v1364_v13 = vand.u32 2147483647, %v5404_v27  ;;  %v5436_v34 = vpop.eup %4296 }
 0x356   : > { %v5412_v10 = vadd.f32 %v5335_v26, %v1295_v46  ;;  %v4000_v29 = vpop.f32.mrf.mxu1  ;;  %v1501_v46 = vmul.f32 %v5370_v44, %v1485_v22  ;;  %vm1684_vm10 = vcmp.lt.f32.partialorder %v5404_v27, 0.0 }
 0x357   : > { %6956 = vst [vmem:[#allocation21_spill] sm:$0xff] %v5407_v50  ;;  %v1605_v14 = vsub.f32 0.0, %v1589_v40  ;;  %v1367_v0 = vand.u32 2147483647, %v5407_v50  ;;  %v1380_v51 = vmul.f32 0.3275911, %v1364_v13  ;;  %v1588_v49 = vmul.f32 %v1364_v13, %v1364_v13  ;;  %v5442_v40 = vpop.eup %4298 }
 0x358   : > { %6957 = vst [vmem:[#allocation23_spill] sm:$0xff] %v5412_v10  ;;  %v5419_v42 = vmul.f32 0.70710677, %v5412_v10  ;;  %v1305_v7 = vpop.f32.mrf.mxu1  ;;  %v1397_v39 = vadd.f32 1.0, %v1381_v59  ;;  %v5431_v17 = vadd.f32 %v4000_v29, %v5335_v26  ;;  %v3686_v59 = vadd.f32 -1.4531521, %v1439_v43  ;;  %v5447_v53 = vpop.eup %4300 }
 0x359   : > { %v1383_v48 = vmul.f32 0.3275911, %v1367_v0  ;;  %v1591_v9 = vmul.f32 %v1367_v0, %v1367_v0  ;;  %v1630_v20 = vmul.f32 1.442695, %v1605_v14  ;;  %v1604_v19 = vsub.f32 0.0, %v1588_v49  ;;  %v5453_v49 = vpop.eup %4302 }
 0x35a   : > { %6958 = vst [vmem:[#allocation18_spill] sm:$0xff] %v5419_v42  ;;  %v1366_v52 = vand.u32 2147483647, %v5419_v42  ;;  %v1396_v1 = vadd.f32 1.0, %v1380_v51  ;;  %6959 = vst [vmem:[#allocation22_spill] sm:$0xff] %v5431_v17  ;;  %4312 = vrcp.f32 %v1397_v39  ;;  %v5445_v29 = vadd.f32 %v5335_v26, %v1305_v7  ;;  %v5458_v7 = vpop.eup %4304 }
 0x35b   : > { %v1607_v28 = vsub.f32 0.0, %v1591_v9  ;;  %v1399_v30 = vadd.f32 1.0, %v1383_v48  ;;  %v4003_v55 = vpop.f32.mrf.mxu1  ;;  %v5439_v41 = vmul.f32 0.70710677, %v5431_v17  ;;  %4314 = vpow2.f32 %v1630_v20 }
 0x35c   : > { %v1382_v63 = vmul.f32 0.3275911, %v1366_v52  ;;  %v1590_v11 = vmul.f32 %v1366_v52, %v1366_v52  ;;  %v1628_v60 = vmul.f32 1.442695, %v1604_v19  ;;  %6961 = vst [vmem:[#allocation20_spill] sm:$0xff] %v5445_v29  ;;  %4316 = vrcp.f32 %v1396_v1 }
 0x35d   : > { %6960 = vst [vmem:[#allocation16_spill] sm:$0xff] %v5439_v41  ;;  %v1634_v14 = vmul.f32 1.442695, %v1607_v28  ;;  %v1369_v0 = vand.u32 2147483647, %v5439_v41  ;;  %v5451_v25 = vadd.f32 %v4003_v55, %v5335_v26  ;;  %v1315_v51 = vpop.f32.mrf.mxu1  ;;  %4318 = vrcp.f32 %v1399_v30  ;;  %v5467_v30 = vpop.eup %4306 }
 0x35e   : > { %v1606_v13 = vsub.f32 0.0, %v1590_v11  ;;  %v1398_v43 = vadd.f32 1.0, %v1382_v63  ;;  %v5456_v39 = vmul.f32 0.70710677, %v5445_v29  ;;  %v1484_v48 = vadd.f32 1.4214138, %v1468_v32  ;;  %v5470_v55 = vpop.eup %4308 }
 0x35f   : > { %6962 = vst [vmem:[#allocation13_spill] sm:$0xff] %v5451_v25  ;;  %v1385_v22 = vmul.f32 0.3275911, %v1369_v0  ;;  %v1593_v20 = vmul.f32 %v1369_v0, %v1369_v0  ;;  %v5461_v19 = vmul.f32 0.70710677, %v5451_v25  ;;  %4320 = vpow2.f32 %v1628_v60 }
 0x360   : > { %6963 = vst [vmem:[#allocation9_spill] sm:$0xff] %v5456_v39  ;;  %v1632_v9 = vmul.f32 1.442695, %v1606_v13  ;;  %v1368_v52 = vand.u32 2147483647, %v5456_v39  ;;  %v5465_v1 = vadd.f32 %v5335_v26, %v1315_v51  ;;  %4322 = vpow2.f32 %v1634_v14 }
 0x361   : > { %6964 = vst [vmem:[#allocation11_spill] sm:$0xff] %v5461_v19  ;;  %v3700_v28 = vadd.f32 -0.28449672, %v1501_v46  ;;  %v1401_v63 = vadd.f32 1.0, %v1385_v22  ;;  %v1609_v32 = vsub.f32 0.0, %v1593_v20  ;;  %4324 = vrcp.f32 %v1398_v43 }
 0x362   : > { %6965 = vst [vmem:[#allocation12_spill] sm:$0xff] %v5465_v1  ;;  %v1371_v11 = vand.u32 2147483647, %v5461_v19  ;;  %v1384_v13 = vmul.f32 0.3275911, %v1368_v52  ;;  %v1592_v0 = vmul.f32 %v1368_v52, %v1368_v52  ;;  %4326 = vpow2.f32 %v1632_v9 }
 0x363   : > { %v5473_v60 = vmul.f32 0.70710677, %v5465_v1  ;;  %v1638_v25 = vmul.f32 1.442695, %v1609_v32  ;;  %4328 = vrcp.f32 %v1401_v63  ;;  %v1533_v19 = vmul.f32 %v5370_v44, %v3700_v28  ;;  %v5477_v1 = vpop.eup %4310 }
 0x364   : > { %v1387_v26 = vmul.f32 0.3275911, %v1371_v11  ;;  %v1595_v51 = vmul.f32 %v1371_v11, %v1371_v11  ;;  %v1400_v46 = vadd.f32 1.0, %v1384_v13  ;;  %v1608_v29 = vsub.f32 0.0, %v1592_v0 }
 0x365   : > { %6966 = vst [vmem:[#allocation19_spill] sm:$0xff] %v5473_v60  ;;  %v1370_v14 = vand.u32 2147483647, %v5473_v60  ;;  %4330 = vpow2.f32 %v1638_v25  ;;  %v1549_v32 = vadd.f32 0.2548296, %v1533_v19  ;;  %v1500_v63 = vmul.f32 %v5382_v37, %v1484_v48 }
 0x366   : > { %v1403_v22 = vadd.f32 1.0, %v1387_v26  ;;  %v1611_v20 = vsub.f32 0.0, %v1595_v51  ;;  %4332 = vrcp.f32 %v1400_v46  ;;  %v1636_v43 = vmul.f32 1.442695, %v1608_v29 }
 0x367   : > { %v1386_v52 = vmul.f32 0.3275911, %v1370_v14  ;;  %v1594_v39 = vmul.f32 %v1370_v14, %v1370_v14  ;;  %v5480_v11 = vpop.eup %4312  ;;  %v1471_v28 = vmul.f32 %v5399_v15, %v3686_v59  ;;  %v1565_v29 = vmul.f32 %v5370_v44, %v1549_v32 }
 0x368   : > { %4334 = vrcp.f32 %v1403_v22  ;;  %v1642_v9 = vmul.f32 1.442695, %v1611_v20  ;;  %v5484_v0 = vpop.eup %4314  ;;  %v3699_v26 = vadd.f32 -0.28449672, %v1500_v63  ;;  %v1438_v51 = vmul.f32 1.0614054, %v5428_v6 }
 0x369   : > { %4336 = vpow2.f32 %v1636_v43  ;;  %v1402_v25 = vadd.f32 1.0, %v1386_v52  ;;  %v1610_v13 = vsub.f32 0.0, %v1594_v39  ;;  %v5488_v19 = vpop.eup %4316  ;;  %v1487_v46 = vadd.f32 1.4214138, %v1471_v28 }
 0x36a   : > { %4338 = vpow2.f32 %v1642_v9  ;;  %v1441_v14 = vmul.f32 1.0614054, %v5436_v34  ;;  %v5491_v22 = vpop.eup %4318  ;;  %v1645_v39 = vmul.f32 %v5416_v56, %v1565_v29  ;;  %v1532_v59 = vmul.f32 %v5382_v37, %v3699_v26 }
 0x36b   : > { %4340 = vrcp.f32 %v1402_v25  ;;  %v1640_v48 = vmul.f32 1.442695, %v1610_v13  ;;  %v3685_v20 = vadd.f32 -1.4531521, %v1438_v51  ;;  %v1440_v43 = vmul.f32 1.0614054, %v5447_v53 }
 0x36c   : > { %v1503_v44 = vmul.f32 %v5399_v15, %v1487_v46  ;;  %v3688_v52 = vadd.f32 -1.4531521, %v1441_v14  ;;  %v1443_v9 = vmul.f32 1.0614054, %v5458_v7  ;;  %v5498_v32 = vpop.eup %4320  ;;  %v1661_v63 = vsub.f32 1.0, %v1645_v39 }
 0x36d   : > { %4342 = vpow2.f32 %v1640_v48  ;;  %v1548_v25 = vadd.f32 0.2548296, %v1532_v59  ;;  %v1470_v13 = vmul.f32 %v5428_v6, %v3685_v20  ;;  %v3687_v28 = vadd.f32 -1.4531521, %v1440_v43  ;;  %v5501_v60 = vpop.eup %4322 }
 0x36e   : > { %v3702_v56 = vadd.f32 -0.28449672, %v1503_v44  ;;  %v1473_v29 = vmul.f32 %v5436_v34, %v3688_v52  ;;  %v3690_v26 = vadd.f32 -1.4531521, %v1443_v9  ;;  %v1442_v51 = vmul.f32 1.0614054, %v5470_v55  ;;  %v5506_v48 = vpop.eup %4324 }
 0x36f   : > { %v1693_v46 = vsub.f32 0.0, %v1661_v63  ;;  %v1564_v14 = vmul.f32 %v5382_v37, %v1548_v25  ;;  %v1486_v39 = vadd.f32 1.4214138, %v1470_v13  ;;  %v1472_v59 = vmul.f32 %v5447_v53, %v3687_v28  ;;  %v5510_v20 = vpop.eup %4326 }
 0x370   : > { %v1535_v43 = vmul.f32 %v5399_v15, %v3702_v56  ;;  %v1489_v41 = vadd.f32 1.4214138, %v1473_v29  ;;  %v1475_v44 = vmul.f32 %v5458_v7, %v3690_v26  ;;  %v3689_v17 = vadd.f32 -1.4531521, %v1442_v51  ;;  %v5514_v52 = vpop.eup %4328 }
 0x371   : > { %v1709_v9 = vsel %vm1677_vm1, %v1693_v46, %v1661_v63  ;;  %v1644_v42 = vmul.f32 %v5421_v4, %v1564_v14  ;;  %v1502_v37 = vmul.f32 %v5428_v6, %v1486_v39  ;;  %v1488_v25 = vadd.f32 1.4214138, %v1472_v59 }
 0x372   : > { %v5520_v13 = vpop.eup %4330  ;;  %v1725_v28 = vadd.f32 1.0, %v1709_v9  ;;  %v1551_v10 = vadd.f32 0.2548296, %v1535_v43  ;;  %v1505_v56 = vmul.f32 %v5436_v34, %v1489_v41  ;;  %v1491_v29 = vadd.f32 1.4214138, %v1475_v44 }
 0x373   : > { %v5523_v50 = vpop.eup %4332  ;;  %v1660_v26 = vsub.f32 1.0, %v1644_v42  ;;  %v3701_v51 = vadd.f32 -0.28449672, %v1502_v37  ;;  %v1504_v35 = vmul.f32 %v5447_v53, %v1488_v25  ;;  %v1474_v4 = vmul.f32 %v5470_v55, %v3689_v17 }
 0x374   : > { %v5531_v46 = vmul.f32 %v1725_v28, %v5366_v38  ;;  %v1567_v14 = vmul.f32 %v5399_v15, %v1551_v10  ;;  %v3704_v39 = vadd.f32 -0.28449672, %v1505_v56  ;;  %v1507_v41 = vmul.f32 %v5458_v7, %v1491_v29 }
 0x375   : > { %v5528_v63 = vpop.eup %4334  ;;  %v1692_v43 = vsub.f32 0.0, %v1660_v26  ;;  %v1534_v42 = vmul.f32 %v5428_v6, %v3701_v51  ;;  %v3703_v44 = vadd.f32 -0.28449672, %v1504_v35  ;;  %v1490_v9 = vadd.f32 1.4214138, %v1474_v4 }
 0x376   : > { %v5535_v59 = vpop.eup %4336  ;;  %1758 = vadd.xlane.f32.xlu1 %v5531_v46  ;;  %v1647_v17 = vmul.f32 %v5423_v2, %v1567_v14  ;;  %v1537_v38 = vmul.f32 %v5436_v34, %v3704_v39  ;;  %v3706_v25 = vadd.f32 -0.28449672, %v1507_v41  ;;  %v1445_v15 = vmul.f32 1.0614054, %v5480_v11 }
 0x377   : > { %v5538_v37 = vpop.eup %4338  ;;  %v1708_v28 = vsel %vm1676_vm2, %v1692_v43, %v1660_v26  ;;  %v1550_v56 = vadd.f32 0.2548296, %v1534_v42  ;;  %v1536_v29 = vmul.f32 %v5447_v53, %v3703_v44  ;;  %v1506_v51 = vmul.f32 %v5470_v55, %v1490_v9 }
 0x378   : > { %v5544_v10 = vpop.eup %4340  ;;  %v1724_v35 = vadd.f32 1.0, %v1708_v28  ;;  %v1663_v4 = vsub.f32 1.0, %v1647_v17  ;;  %v1553_v2 = vadd.f32 0.2548296, %v1537_v38  ;;  %v1539_v14 = vmul.f32 %v5458_v7, %v3706_v25 }
 0x379   : > { %v1566_v41 = vmul.f32 %v5428_v6, %v1550_v56  ;;  %v1552_v57 = vadd.f32 0.2548296, %v1536_v29  ;;  %v3705_v26 = vadd.f32 -0.28449672, %v1506_v51  ;;  %v3692_v43 = vadd.f32 -1.4531521, %v1445_v15 }
 0x37a   : > { %v5552_v39 = vpop.eup %4342  ;;  %v5558_v42 = vmul.f32 %v1724_v35, %v5372_v18  ;;  %v1695_v44 = vsub.f32 0.0, %v1663_v4  ;;  %v1569_v9 = vmul.f32 %v5436_v34, %v1553_v2  ;;  %v1555_v17 = vadd.f32 0.2548296, %v1539_v14 }
 0x37b   : > { %v1646_v38 = vmul.f32 %v5434_v47, %v1566_v41  ;;  %v1568_v25 = vmul.f32 %v5447_v53, %v1552_v57  ;;  %v1538_v6 = vmul.f32 %v5470_v55, %v3705_v26  ;;  %v1477_v28 = vmul.f32 %v5480_v11, %v3692_v43 }
 0x37c   : > { %1756 = vadd.xlane.f32.xlu0 %v5558_v42  ;;  %v1711_v18 = vsel %vm1679_vm3, %v1695_v44, %v1663_v4  ;;  %v1649_v15 = vmul.f32 %v5442_v40, %v1569_v9  ;;  %v1571_v34 = vmul.f32 %v5458_v7, %v1555_v17  ;;  %v1444_v56 = vmul.f32 1.0614054, %v5488_v19 }
 0x37d   : > { %v1727_v29 = vadd.f32 1.0, %v1711_v18  ;;  %v1662_v51 = vsub.f32 1.0, %v1646_v38  ;;  %v1648_v47 = vmul.f32 %v5453_v49, %v1568_v25  ;;  %v1554_v53 = vadd.f32 0.2548296, %v1538_v6 }
 0x37e   : > { %v1665_v35 = vsub.f32 1.0, %v1649_v15  ;;  %v1651_v2 = vmul.f32 %v5467_v30, %v1571_v34  ;;  %v1493_v14 = vadd.f32 1.4214138, %v1477_v28  ;;  %v3691_v41 = vadd.f32 -1.4531521, %v1444_v56 }
 0x37f   : > { %v5576_v62 = vmul.f32 %v1727_v29, %v5375_v36  ;;  %v1694_v40 = vsub.f32 0.0, %v1662_v51  ;;  %v1664_v4 = vsub.f32 1.0, %v1648_v47  ;;  %v1570_v7 = vmul.f32 %v5470_v55, %v1554_v53 }
 0x380   : > { %v1697_v57 = vsub.f32 0.0, %v1665_v35  ;;  %v1667_v26 = vsub.f32 1.0, %v1651_v2  ;;  %v1509_v43 = vmul.f32 %v5480_v11, %v1493_v14  ;;  %v1476_v49 = vmul.f32 %v5488_v19, %v3691_v41 }
 0x381   : > { %1762 = vadd.xlane.f32.xlu1 %v5576_v62  ;;  %v1710_v30 = vsel %vm1678_vm4, %v1694_v40, %v1662_v51  ;;  %v1696_v44 = vsub.f32 0.0, %v1664_v4  ;;  %v1650_v9 = vmul.f32 %v5477_v1, %v1570_v7  ;;  %v1447_v36 = vmul.f32 1.0614054, %v5491_v22 }
 0x382   : > { %v1726_v17 = vadd.f32 1.0, %v1710_v30  ;;  %v1713_v55 = vsel %vm1681_vm5, %v1697_v57, %v1665_v35  ;;  %v1699_v38 = vsub.f32 0.0, %v1667_v26  ;;  %v3708_v25 = vadd.f32 -0.28449672, %v1509_v43 }
 0x383   : > { %v1729_v6 = vadd.f32 1.0, %v1713_v55  ;;  %v1712_v28 = vsel %vm1680_vm6, %v1696_v44, %v1664_v4  ;;  %v1666_v18 = vsub.f32 1.0, %v1650_v9  ;;  %v1492_v15 = vadd.f32 1.4214138, %v1476_v49 }
 0x384   : > { %v5591_v58 = vmul.f32 %v1726_v17, %v5377_v33  ;;  %v1728_v34 = vadd.f32 1.0, %v1712_v28  ;;  %v1715_v1 = vsel %vm1683_vm7, %v1699_v38, %v1667_v26  ;;  %v1541_v56 = vmul.f32 %v5480_v11, %v3708_v25 }
 0x385   : > { %v5597_v54 = vmul.f32 %v1729_v6, %v5380_v31  ;;  %v1731_v29 = vadd.f32 1.0, %v1715_v1  ;;  %v1698_v51 = vsub.f32 0.0, %v1666_v18  ;;  %v1508_v47 = vmul.f32 %v5488_v19, %v1492_v15 }
 0x386   : > { %1760 = vadd.xlane.f32.xlu0 %v5591_v58  ;;  %v5602_v61 = vmul.f32 %v1728_v34, %v5385_v23  ;;  %v1557_v33 = vadd.f32 0.2548296, %v1541_v56  ;;  %v3694_v53 = vadd.f32 -1.4531521, %v1447_v36  ;;  %v1446_v35 = vmul.f32 1.0614054, %v5506_v48 }
 0x387   : > { %1766 = vadd.xlane.f32.xlu1 %v5597_v54  ;;  %v5608_v24 = vmul.f32 %v1731_v29, %v5387_v12  ;;  %v1714_v31 = vsel %vm1682_vm8, %v1698_v51, %v1666_v18  ;;  %v3707_v2 = vadd.f32 -0.28449672, %v1508_v47  ;;  %v1449_v14 = vmul.f32 1.0614054, %v5514_v52 }
 0x388   : > { %v1730_v41 = vadd.f32 1.0, %v1714_v31  ;;  %v1573_v23 = vmul.f32 %v5480_v11, %v1557_v33  ;;  %v1479_v40 = vmul.f32 %v5491_v22, %v3694_v53  ;;  %v3693_v4 = vadd.f32 -1.4531521, %v1446_v35 }
 0x389   : > { %v1540_v7 = vmul.f32 %v5488_v19, %v3707_v2  ;;  %v3696_v57 = vadd.f32 -1.4531521, %v1449_v14  ;;  %v1448_v26 = vmul.f32 1.0614054, %v5523_v50  ;;  %v1451_v12 = vmul.f32 1.0614054, %v5528_v63 }
 0x38a   : > { %1764 = vadd.xlane.f32.xlu0 %v5602_v61  ;;  %v5620_v16 = vmul.f32 %v1730_v41, %v5401_v21  ;;  %v1653_v43 = vmul.f32 %v5484_v0, %v1573_v23  ;;  %v1495_v49 = vadd.f32 1.4214138, %v1479_v40  ;;  %v1478_v11 = vmul.f32 %v5506_v48, %v3693_v4 }
 0x38b   : > { %1770 = vadd.xlane.f32.xlu1 %v5608_v24  ;;  %v1556_v30 = vadd.f32 0.2548296, %v1540_v7  ;;  %v1481_v44 = vmul.f32 %v5514_v52, %v3696_v57  ;;  %v3695_v9 = vadd.f32 -1.4531521, %v1448_v26  ;;  %v3698_v36 = vadd.f32 -1.4531521, %v1451_v12 }
 0x38c   : > { %v1669_v17 = vsub.f32 1.0, %v1653_v43  ;;  %v1511_v55 = vmul.f32 %v5491_v22, %v1495_v49  ;;  %v1494_v38 = vadd.f32 1.4214138, %v1478_v11  ;;  %v1450_v21 = vmul.f32 1.0614054, %v5544_v10 }
 0x38d   : > { %v1572_v0 = vmul.f32 %v5488_v19, %v1556_v30  ;;  %v1497_v25 = vadd.f32 1.4214138, %v1481_v44  ;;  %v1480_v6 = vmul.f32 %v5523_v50, %v3695_v9  ;;  %v1483_v28 = vmul.f32 %v5528_v63, %v3698_v36 }
 0x38e   : > { %1768 = vadd.xlane.f32.xlu0 %v5620_v16  ;;  %v1701_v18 = vsub.f32 0.0, %v1669_v17  ;;  %v3710_v15 = vadd.f32 -0.28449672, %v1511_v55  ;;  %v1510_v34 = vmul.f32 %v5506_v48, %v1494_v38  ;;  %v3697_v1 = vadd.f32 -1.4531521, %v1450_v21 }
 0x38f   : > { %v1652_v56 = vmul.f32 %v5498_v32, %v1572_v0  ;;  %v1513_v29 = vmul.f32 %v5514_v52, %v1497_v25  ;;  %v1496_v51 = vadd.f32 1.4214138, %v1480_v6  ;;  %v1499_v47 = vadd.f32 1.4214138, %v1483_v28 }
 0x390   : > { %v1717_v19 = vsel %vm1685_vm9, %v1701_v18, %v1669_v17  ;;  %v1543_v33 = vmul.f32 %v5491_v22, %v3710_v15  ;;  %v3709_v53 = vadd.f32 -0.28449672, %v1510_v34  ;;  %v1482_v35 = vmul.f32 %v5544_v10, %v3697_v1  ;;  %v6967_v15 = vld [vmem:[#allocation21_spill] sm:$0xff] }
 0x391   : > { %v1733_v31 = vadd.f32 1.0, %v1717_v19  ;;  %v1668_v2 = vsub.f32 1.0, %v1652_v56  ;;  %v3712_v14 = vadd.f32 -0.28449672, %v1513_v29  ;;  %v1512_v41 = vmul.f32 %v5523_v50, %v1496_v51  ;;  %v6968_v56 = vld [vmem:[#allocation23_spill] sm:$0xff] }
 0x392   : > { %v1559_v23 = vadd.f32 0.2548296, %v1543_v33  ;;  %v1542_v32 = vmul.f32 %v5506_v48, %v3709_v53  ;;  %v1515_v40 = vmul.f32 %v5528_v63, %v1499_v47  ;;  %v1498_v4 = vadd.f32 1.4214138, %v1482_v35  ;;  %v6969_v47 = vld [vmem:[#allocation18_spill] sm:$0xff] }
 0x393   : > { %v5644_v7 = vmul.f32 %v1733_v31, %v5425_v3  ;;  %v1700_v5 = vsub.f32 0.0, %v1668_v2  ;;  %v1545_v57 = vmul.f32 %v5514_v52, %v3712_v14  ;;  %v3711_v26 = vadd.f32 -0.28449672, %v1512_v41 }
 0x394   : > { %v1575_v12 = vmul.f32 %v5491_v22, %v1559_v23  ;;  %v1558_v43 = vadd.f32 0.2548296, %v1542_v32  ;;  %v3714_v49 = vadd.f32 -0.28449672, %v1515_v40  ;;  %v1514_v11 = vmul.f32 %v5544_v10, %v1498_v4 }
 0x395   : > { %v1332_v30 = vmul.f32 0.5, %v5392_v8  ;;  %1774 = vadd.xlane.f32.xlu1 %v5644_v7  ;;  %v1716_v44 = vsel %vm1684_vm10, %v1700_v5, %v1668_v2  ;;  %v1561_v9 = vadd.f32 0.2548296, %v1545_v57  ;;  %v1544_v3 = vmul.f32 %v5523_v50, %v3711_v26  ;;  %v6970_v2 = vld [vmem:[#allocation22_spill] sm:$0xff]  ;;  %v6972_v5 = vld [vmem:[#allocation9_spill] sm:$0xff] }
 0x396   : > { %v1732_v36 = vadd.f32 1.0, %v1716_v44  ;;  %v1655_v17 = vmul.f32 %v5501_v60, %v1575_v12  ;;  %v1574_v55 = vmul.f32 %v5506_v48, %v1558_v43  ;;  %v1547_v22 = vmul.f32 %v5528_v63, %v3714_v49  ;;  %v6973_v12 = vld [vmem:[#allocation20_spill] sm:$0xff] }
 0x397   : > { %v1577_v38 = vmul.f32 %v5514_v52, %v1561_v9  ;;  %v1560_v21 = vadd.f32 0.2548296, %v1544_v3  ;;  %v3713_v0 = vadd.f32 -0.28449672, %v1514_v11  ;;  %v1335_v28 = vmul.f32 0.5, %v5397_v45 }
 0x398   : > { %v5658_v8 = vmul.f32 %v1732_v36, %v1332_v30  ;;  %v1671_v25 = vsub.f32 1.0, %v1655_v17  ;;  %v1654_v27 = vmul.f32 %v5510_v20, %v1574_v55  ;;  %v1563_v6 = vadd.f32 0.2548296, %v1547_v22  ;;  %v6975_v36 = vld [vmem:[#allocation13_spill] sm:$0xff] }
 0x399   : > { %v1657_v18 = vmul.f32 %v5520_v13, %v1577_v38  ;;  %v1576_v60 = vmul.f32 %v5523_v50, %v1560_v21  ;;  %v1546_v48 = vmul.f32 %v5544_v10, %v3713_v0  ;;  %vm1687_vm11 = vcmp.lt.f32.partialorder %v6967_v15, 0.0  ;;  %v6976_v38 = vld [vmem:[#allocation19_spill] sm:$0xff]  ;;  %v1944_v15 = vld [vmem:[%s6869_s3 + $0x60] sm:$0xff] }
 0x39a   : > { %1772 = vadd.xlane.f32.xlu0 %v5658_v8  ;;  %v1703_v52 = vsub.f32 0.0, %v1671_v25  ;;  %v1670_v34 = vsub.f32 1.0, %v1654_v27  ;;  %v1579_v1 = vmul.f32 %v5528_v63, %v1563_v6  ;;  %v1334_v29 = vmul.f32 0.5, %v6968_v56  ;;  %v6971_v63 = vld [vmem:[#allocation16_spill] sm:$0xff] }
 0x39b   : > { %v1673_v20 = vsub.f32 1.0, %v1657_v18  ;;  %v1656_v51 = vmul.f32 %v5535_v59, %v1576_v60  ;;  %v1562_v45 = vadd.f32 0.2548296, %v1546_v48  ;;  %vm1686_vm12 = vcmp.lt.f32.partialorder %v6969_v47, 0.0  ;;  %v1947_v18 = vld [vmem:[%s6869_s3 + $0x78] sm:$0xff]  ;;  %v1946_v60 = vld [vmem:[%s6869_s3 + $0x70] sm:$0xff] }
 0x39c   : > { %v1719_v13 = vsel %vm1687_vm11, %v1703_v52, %v1671_v25  ;;  %v1702_v50 = vsub.f32 0.0, %v1670_v34  ;;  %v1659_v19 = vmul.f32 %v5538_v37, %v1579_v1  ;;  %v1337_v14 = vmul.f32 0.5, %v6970_v2  ;;  %v6977_v25 = vld [vmem:[#allocation12_spill] sm:$0xff]  ;;  %4004 = vmatprep.subr.mxu0 %v1947_v18  ;;  %v1945_v48 = vld [vmem:[%s6869_s3 + $0x68] sm:$0xff] }
 0x39d   : > { %v1735_v33 = vadd.f32 1.0, %v1719_v13  ;;  %v1705_v53 = vsub.f32 0.0, %v1673_v20  ;;  %v1672_v35 = vsub.f32 1.0, %v1656_v51  ;;  %v1578_v31 = vmul.f32 %v5544_v10, %v1562_v45  ;;  %v6974_v10 = vld [vmem:[#allocation11_spill] sm:$0xff]  ;;  %4005 = vmatpush3.msra.mxu0 %v1947_v18  ;;  %v1943_v52 = vld [vmem:[%s6869_s3 + $0x58] sm:$0xff] }
 0x39e   : > { %vm1689_vm13 = vcmp.lt.f32.partialorder %v6971_v63, 0.0  ;;  %v1718_v41 = vsel %vm1686_vm12, %v1702_v50, %v1670_v34  ;;  %v1675_v23 = vsub.f32 1.0, %v1659_v19  ;;  %vm1688_vm14 = vcmp.lt.f32.partialorder %v6972_v5, 0.0  ;;  %4006 = vmatprep.subr.mxu0 %v1946_v60 }
 0x39f   : > { %v5675_v32 = vmul.f32 %v1735_v33, %v1335_v28  ;;  %v1734_v59 = vadd.f32 1.0, %v1718_v41  ;;  %v1721_v40 = vsel %vm1689_vm13, %v1705_v53, %v1673_v20  ;;  %v1704_v4 = vsub.f32 0.0, %v1672_v35  ;;  %4007 = vmatpush3.msra.mxu0 %v1946_v60 }
 0x3a0   : > { %v1737_v57 = vadd.f32 1.0, %v1721_v40  ;;  %v1707_v37 = vsub.f32 0.0, %v1675_v23  ;;  %v1658_v26 = vmul.f32 %v5552_v39, %v1578_v31  ;;  %v1336_v43 = vmul.f32 0.5, %v6973_v12  ;;  %4008 = vmatprep.subr.mxu0 %v1945_v48 }
 0x3a1   : > { %vm1691_vm15 = vcmp.lt.f32.partialorder %v6974_v10, 0.0  ;;  %1778 = vadd.xlane.f32.xlu1 %v5675_v32  ;;  %v5682_v49 = vmul.f32 %v1734_v59, %v1334_v29  ;;  %v1720_v11 = vsel %vm1688_vm14, %v1704_v4, %v1672_v35  ;;  %v1339_v17 = vmul.f32 0.5, %v6975_v36  ;;  %4009 = vmatpush3.msra.mxu0 %v1945_v48  ;;  %v1940_v10 = vld [vmem:[%s6869_s3 + $0x40] sm:$0xff]  ;;  %v1938_v36 = vld [vmem:[%s6869_s3 + $0x30] sm:$0xff] }
 0x3a2   : > { %v5684_v30 = vmul.f32 %v1737_v57, %v1337_v14  ;;  %v1736_v44 = vadd.f32 1.0, %v1720_v11  ;;  %v1723_v9 = vsel %vm1691_vm15, %v1707_v37, %v1675_v23  ;;  %v1674_v3 = vsub.f32 1.0, %v1658_v26  ;;  %4010 = vmatprep.subr.mxu0 %v1944_v15  ;;  %v1942_v23 = vld [vmem:[%s6869_s3 + $0x50] sm:$0xff] }
 0x3a3   : > { %1776 = vadd.xlane.f32.xlu0 %v5682_v49  ;;  %v1739_v55 = vadd.f32 1.0, %v1723_v9  ;;  %vm1690_vm0 = vcmp.lt.f32.partialorder %v6976_v38, 0.0  ;;  %v1338_v27 = vmul.f32 0.5, %v6977_v25  ;;  %4011 = vmatpush3.msra.mxu0 %v1944_v15  ;;  %v1935_v25 = vld [vmem:[%s6869_s3 + $0x18] sm:$0xff] }
 0x3a4   : > { %v5688_v39 = vmul.f32 %v1736_v44, %v1336_v43  ;;  %v1706_v22 = vsub.f32 0.0, %v1674_v3  ;;  %4012 = vmatprep.subr.mxu0 %v1943_v52 }
 0x3a5   : > { %1782 = vadd.xlane.f32.xlu1 %v5684_v30  ;;  %v5692_v21 = vmul.f32 %v1739_v55, %v1339_v17  ;;  %4013 = vmatpush3.msra.mxu0 %v1943_v52  ;;  %v1937_v55 = vld [vmem:[%s6869_s3 + $0x28] sm:$0xff] }
 0x3a6   : > { %v1722_v0 = vsel %vm1690_vm0, %v1706_v22, %v1674_v3  ;;  %4014 = vmatprep.subr.mxu0 %v1942_v23  ;;  %v1939_v3 = vld [vmem:[%s6869_s3 + $0x38] sm:$0xff]  ;;  %v1936_v22 = vld [vmem:[%s6869_s3 + $0x20] sm:$0xff] }
 0x3a7   : > { %1780 = vadd.xlane.f32.xlu0 %v5688_v39  ;;  %v1738_v6 = vadd.f32 1.0, %v1722_v0  ;;  %4015 = vmatpush3.msra.mxu0 %v1942_v23 }
 0x3a9   : > { %1786 = vadd.xlane.f32.xlu1 %v5692_v21  ;;  %v5697_v28 = vmul.f32 %v1738_v6, %v1338_v27 }
 0x3ab   : > { %1784 = vadd.xlane.f32.xlu0 %v5697_v28 }
 0x3ff   : > { %v1759_v34 = vpop.xlane.xlu1 %1758 }
 0x400   : > { %v1789_v1 = vmul.f32 0.0078125, %v1759_v34 }
 0x402   : > { %v5716_v56 = vsub.f32 %v5531_v46, %v1789_v1 }
 0x404   : > { %v1821_v29 = vmul.f32 %v5716_v56, %v5716_v56 }
 0x405   : > { %v1757_v20 = vpop.xlane.xlu0 %1756 }
 0x406   : > { %v1788_v51 = vmul.f32 0.0078125, %v1757_v20  ;;  %1838 = vadd.xlane.f32.xlu1 %v1821_v29 }
 0x408   : > { %v5721_v45 = vsub.f32 %v5558_v42, %v1788_v51 }
 0x40a   : > { %v1763_v47 = vpop.xlane.xlu1 %1762  ;;  %v1820_v13 = vmul.f32 %v5721_v45, %v5721_v45 }
 0x40b   : > { %v1791_v50 = vmul.f32 0.0078125, %v1763_v47  ;;  %v1934_v47 = vld [vmem:[%s6869_s3 + $0x10] sm:$0xff] }
 0x40c   : > { %1836 = vadd.xlane.f32.xlu0 %v1820_v13 }
 0x40d   : > { %v5726_v19 = vsub.f32 %v5576_v62, %v1791_v50 }
 0x40f   : > { %v1761_v46 = vpop.xlane.xlu0 %1760  ;;  %v1823_v33 = vmul.f32 %v5726_v19, %v5726_v19 }
 0x410   : > { %v1790_v53 = vmul.f32 0.0078125, %v1761_v46  ;;  %v1767_v35 = vpop.xlane.xlu1 %1766 }
 0x411   : > { %v1793_v31 = vmul.f32 0.0078125, %v1767_v35  ;;  %1842 = vadd.xlane.f32.xlu1 %v1823_v33 }
 0x412   : > { %v5731_v42 = vsub.f32 %v5591_v58, %v1790_v53  ;;  %v1933_v53 = vld [vmem:[%s6869_s3 + $0x8] sm:$0xff] }
 0x413   : > { %v5734_v2 = vsub.f32 %v5597_v54, %v1793_v31  ;;  %v1765_v14 = vpop.xlane.xlu0 %1764 }
 0x414   : > { %v1792_v63 = vmul.f32 0.0078125, %v1765_v14  ;;  %v1771_v41 = vpop.xlane.xlu1 %1770  ;;  %v1822_v62 = vmul.f32 %v5731_v42, %v5731_v42 }
 0x415   : > { %v1795_v59 = vmul.f32 0.0078125, %v1771_v41  ;;  %v1825_v40 = vmul.f32 %v5734_v2, %v5734_v2 }
 0x416   : > { %v5744_v58 = vsub.f32 %v5602_v61, %v1792_v63  ;;  %1840 = vadd.xlane.f32.xlu0 %v1822_v62  ;;  %v1941_v61 = vld [vmem:[%s6869_s3 + $0x48] sm:$0xff] }
 0x417   : > { %v5747_v54 = vsub.f32 %v5608_v24, %v1795_v59  ;;  %v1769_v4 = vpop.xlane.xlu0 %1768  ;;  %1846 = vadd.xlane.f32.xlu1 %v1825_v40  ;;  %4016 = vmatprep.subr.mxu0 %v1941_v61 }
 0x418   : > { %v1794_v5 = vmul.f32 0.0078125, %v1769_v4  ;;  %v1824_v57 = vmul.f32 %v5744_v58, %v5744_v58  ;;  %4017 = vmatpush3.msra.mxu0 %v1941_v61 }
 0x419   : > { %v1827_v37 = vmul.f32 %v5747_v54, %v5747_v54  ;;  %4018 = vmatprep.subr.mxu0 %v1940_v10 }
 0x41a   : > { %v5754_v26 = vsub.f32 %v5620_v16, %v1794_v5  ;;  %1844 = vadd.xlane.f32.xlu0 %v1824_v57  ;;  %4019 = vmatpush3.msra.mxu0 %v1940_v10 }
 0x41b   : > { %1850 = vadd.xlane.f32.xlu1 %v1827_v37  ;;  %4020 = vmatprep.subr.mxu0 %v1939_v3 }
 0x41c   : > { %v1826_v24 = vmul.f32 %v5754_v26, %v5754_v26  ;;  %4021 = vmatpush3.msra.mxu0 %v1939_v3 }
 0x41d   : > { %4022 = vmatprep.subr.mxu0 %v1938_v36 }
 0x41e   : > { %v1775_v12 = vpop.xlane.xlu1 %1774  ;;  %1848 = vadd.xlane.f32.xlu0 %v1826_v24  ;;  %4023 = vmatpush3.msra.mxu0 %v1938_v36 }
 0x41f   : > { %v1797_v43 = vmul.f32 0.0078125, %v1775_v12  ;;  %4024 = vmatprep.subr.mxu0 %v1937_v55 }
 0x420   : > { %4025 = vmatpush3.msra.mxu0 %v1937_v55 }
 0x421   : > { %v5765_v16 = vsub.f32 %v5644_v7, %v1797_v43  ;;  %4026 = vmatprep.subr.mxu0 %v1936_v22 }
 0x422   : > { %4027 = vmatpush3.msra.mxu0 %v1936_v22 }
 0x423   : > { %v1773_v11 = vpop.xlane.xlu0 %1772  ;;  %v1829_v44 = vmul.f32 %v5765_v16, %v5765_v16  ;;  %4028 = vmatprep.subr.mxu0 %v1935_v25 }
 0x424   : > { %v1796_v9 = vmul.f32 0.0078125, %v1773_v11  ;;  %4029 = vmatpush3.msra.mxu0 %v1935_v25 }
 0x425   : > { %1854 = vadd.xlane.f32.xlu1 %v1829_v44  ;;  %4030 = vmatprep.subr.mxu0 %v1934_v47 }
 0x426   : > { %v5776_v17 = vsub.f32 %v5658_v8, %v1796_v9  ;;  %4031 = vmatpush3.msra.mxu0 %v1934_v47 }
 0x427   : > { %4032 = vmatprep.subr.mxu0 %v1933_v53 }
 0x428   : > { %v1828_v7 = vmul.f32 %v5776_v17, %v5776_v17  ;;  %4033 = vmatpush3.msra.mxu0 %v1933_v53 }
 0x42a   : > { %v1779_v38 = vpop.xlane.xlu1 %1778  ;;  %1852 = vadd.xlane.f32.xlu0 %v1828_v7 }
 0x42b   : > { %v1799_v8 = vmul.f32 0.0078125, %v1779_v38 }
 0x42c   : > { %v1777_v0 = vpop.xlane.xlu0 %1776 }
 0x42d   : > { %v5790_v27 = vsub.f32 %v5675_v32, %v1799_v8  ;;  %v1798_v6 = vmul.f32 0.0078125, %v1777_v0 }
 0x42e   : > { %v1783_v18 = vpop.xlane.xlu1 %1782 }
 0x42f   : > { %v5793_v60 = vsub.f32 %v5682_v49, %v1798_v6  ;;  %v1801_v48 = vmul.f32 0.0078125, %v1783_v18  ;;  %v1831_v15 = vmul.f32 %v5790_v27, %v5790_v27 }
 0x430   : > { %v1781_v52 = vpop.xlane.xlu0 %1780 }
 0x431   : > { %v5798_v34 = vsub.f32 %v5684_v30, %v1801_v48  ;;  %v1800_v1 = vmul.f32 0.0078125, %v1781_v52  ;;  %1858 = vadd.xlane.f32.xlu1 %v1831_v15  ;;  %v1830_v32 = vmul.f32 %v5793_v60, %v5793_v60 }
 0x432   : > { %v1787_v29 = vpop.xlane.xlu1 %1786 }
 0x433   : > { %v5803_v20 = vsub.f32 %v5688_v39, %v1800_v1  ;;  %v1803_v51 = vmul.f32 0.0078125, %v1787_v29  ;;  %1856 = vadd.xlane.f32.xlu0 %v1830_v32  ;;  %v1833_v49 = vmul.f32 %v5798_v34, %v5798_v34 }
 0x434   : > { %v1785_v30 = vpop.xlane.xlu0 %1784 }
 0x435   : > { %v5811_v13 = vsub.f32 %v5692_v21, %v1803_v51  ;;  %v1802_v50 = vmul.f32 0.0078125, %v1785_v30  ;;  %1862 = vadd.xlane.f32.xlu1 %v1833_v49  ;;  %v1832_v39 = vmul.f32 %v5803_v20, %v5803_v20 }
 0x437   : > { %v5816_v46 = vsub.f32 %v5697_v28, %v1802_v50  ;;  %1860 = vadd.xlane.f32.xlu0 %v1832_v39  ;;  %v1835_v33 = vmul.f32 %v5811_v13, %v5811_v13  ;;  %v1932_v28 = vld [vmem:[%s6869_s3] sm:$0xff] }
 0x438   : > { %4034 = vmatprep.subr.mxu0 %v1932_v28 }
 0x439   : > { %1866 = vadd.xlane.f32.xlu1 %v1835_v33  ;;  %v1834_v21 = vmul.f32 %v5816_v46, %v5816_v46  ;;  %4035 = vmatpush3.msra.mxu0 %v1932_v28 }
 0x43b   : > { %1864 = vadd.xlane.f32.xlu0 %v1834_v21 }
 0x48f   : > { %v1839_v35 = vpop.xlane.xlu1 %1838 }
 0x490   : > { %v1869_v31 = vmul.f32 0.0078125, %v1839_v35 }
 0x492   : > { %v1885_v14 = vadd.f32 1e-05, %v1869_v31 }
 0x494   : > { %4344 = vrsqrt.f32 %v1885_v14 }
 0x495   : > { %v1837_v63 = vpop.xlane.xlu0 %1836 }
 0x496   : > { %v1868_v41 = vmul.f32 0.0078125, %v1837_v63 }
 0x498   : > { %v1884_v62 = vadd.f32 1e-05, %v1868_v41 }
 0x49a   : > { %4346 = vrsqrt.f32 %v1884_v62  ;;  %v1843_v23 = vpop.xlane.xlu1 %1842 }
 0x49b   : > { %v1871_v59 = vmul.f32 0.0078125, %v1843_v23 }
 0x49d   : > { %v1887_v40 = vadd.f32 1e-05, %v1871_v59 }
 0x49f   : > { %v1841_v4 = vpop.xlane.xlu0 %1840  ;;  %4348 = vrsqrt.f32 %v1887_v40 }
 0x4a0   : > { %v1870_v5 = vmul.f32 0.0078125, %v1841_v4  ;;  %v1847_v57 = vpop.xlane.xlu1 %1846 }
 0x4a1   : > { %v1873_v37 = vmul.f32 0.0078125, %v1847_v57  ;;  %v4345_v44 = vpop.eup %4344 }
 0x4a2   : > { %v1886_v61 = vadd.f32 1e-05, %v1870_v5  ;;  %v1917_v38 = vmul.f32 %v4345_v44, %v5716_v56 }
 0x4a3   : > { %v1889_v24 = vadd.f32 1e-05, %v1873_v37  ;;  %v1845_v12 = vpop.xlane.xlu0 %1844 }
 0x4a4   : > { %4350 = vrsqrt.f32 %v1886_v61  ;;  %v1872_v43 = vmul.f32 0.0078125, %v1845_v12  ;;  %v1851_v10 = vpop.xlane.xlu1 %1850 }
 0x4a5   : > { %v1875_v11 = vmul.f32 0.0078125, %v1851_v10  ;;  %4352 = vrsqrt.f32 %v1889_v24 }
 0x4a6   : > { %v1888_v9 = vadd.f32 1e-05, %v1872_v43 }
 0x4a7   : > { %v4347_v3 = vpop.eup %4346  ;;  %v1891_v36 = vadd.f32 1e-05, %v1875_v11  ;;  %v1849_v7 = vpop.xlane.xlu0 %1848 }
 0x4a8   : > { %4354 = vrsqrt.f32 %v1888_v9  ;;  %v1874_v55 = vmul.f32 0.0078125, %v1849_v7  ;;  %v1916_v22 = vmul.f32 %v4347_v3, %v5721_v45 }
 0x4a9   : > { %4356 = vrsqrt.f32 %v1891_v36 }
 0x4aa   : > { %v1890_v8 = vadd.f32 1e-05, %v1874_v55  ;;  %4036 = vmatprep.mubr.f32.mxu0 %v1916_v22 }
 0x4ab   : > { %4037 = vmatmul.mubr.f32.vlgmr.msra.gmra.mxu0 %v1917_v38 }
 0x4ac   : > { %4358 = vrsqrt.f32 %v1890_v8  ;;  %v4349_v6 = vpop.eup %4348 }
 0x4ad   : > { %v1919_v1 = vmul.f32 %v4349_v6, %v5726_v19 }
 0x4ae   : > { %v1855_v0 = vpop.xlane.xlu1 %1854 }
 0x4af   : > { %v1877_v25 = vmul.f32 0.0078125, %v1855_v0 }
 0x4b1   : > { %v4351_v18 = vpop.eup %4350  ;;  %v1893_v15 = vadd.f32 1e-05, %v1877_v25 }
 0x4b2   : > { %v1918_v48 = vmul.f32 %v4351_v18, %v5731_v42  ;;  %v4353_v32 = vpop.eup %4352 }
 0x4b3   : > { %v1853_v52 = vpop.xlane.xlu0 %1852  ;;  %4360 = vrsqrt.f32 %v1893_v15  ;;  %v1921_v49 = vmul.f32 %v4353_v32, %v5734_v2 }
 0x4b4   : > { %v1876_v29 = vmul.f32 0.0078125, %v1853_v52  ;;  %4039 = vmatprep.mubr.f32.mxu0 %v1918_v48 }
 0x4b5   : > { %v4355_v45 = vpop.eup %4354  ;;  %4040 = vmatmul.mubr.f32.gmra.mxu0 %v1919_v1 }
 0x4b6   : > { %v1892_v56 = vadd.f32 1e-05, %v1876_v29  ;;  %v1920_v51 = vmul.f32 %v4355_v45, %v5744_v58  ;;  %v4357_v47 = vpop.eup %4356 }
 0x4b7   : > { %v1923_v39 = vmul.f32 %v4357_v47, %v5747_v54 }
 0x4b8   : > { %4362 = vrsqrt.f32 %v1892_v56  ;;  %4042 = vmatprep.mubr.f32.mxu0 %v1920_v51 }
 0x4b9   : > { %v4359_v30 = vpop.eup %4358  ;;  %4043 = vmatmul.mubr.f32.gmra.mxu0 %v1921_v49 }
 0x4ba   : > { %v1859_v42 = vpop.xlane.xlu1 %1858  ;;  %v1922_v50 = vmul.f32 %v4359_v30, %v5754_v26 }
 0x4bb   : > { %v1879_v19 = vmul.f32 0.0078125, %v1859_v42 }
 0x4bc   : > { %v1857_v33 = vpop.xlane.xlu0 %1856  ;;  %4045 = vmatprep.mubr.f32.mxu0 %v1922_v50 }
 0x4bd   : > { %v1895_v53 = vadd.f32 1e-05, %v1879_v19  ;;  %v1878_v21 = vmul.f32 0.0078125, %v1857_v33  ;;  %4046 = vmatmul.mubr.f32.gmra.mxu0 %v1923_v39 }
 0x4be   : > { %v1863_v58 = vpop.xlane.xlu1 %1862 }
 0x4bf   : > { %v1894_v28 = vadd.f32 1e-05, %v1878_v21  ;;  %v1881_v35 = vmul.f32 0.0078125, %v1863_v58  ;;  %4364 = vrsqrt.f32 %v1895_v53 }
 0x4c0   : > { %v1861_v2 = vpop.xlane.xlu0 %1860  ;;  %v4361_v26 = vpop.eup %4360 }
 0x4c1   : > { %4366 = vrsqrt.f32 %v1894_v28  ;;  %v1897_v31 = vadd.f32 1e-05, %v1881_v35  ;;  %v1880_v14 = vmul.f32 0.0078125, %v1861_v2  ;;  %v1925_v57 = vmul.f32 %v4361_v26, %v5765_v16 }
 0x4c2   : > { %v1867_v63 = vpop.xlane.xlu1 %1866 }
 0x4c3   : > { %v1896_v41 = vadd.f32 1e-05, %v1880_v14  ;;  %v1883_v62 = vmul.f32 0.0078125, %v1867_v63  ;;  %4368 = vrsqrt.f32 %v1897_v31 }
 0x4c4   : > { %v1865_v23 = vpop.xlane.xlu0 %1864 }
 0x4c5   : > { %v4363_v54 = vpop.eup %4362  ;;  %4370 = vrsqrt.f32 %v1896_v41  ;;  %v1899_v59 = vadd.f32 1e-05, %v1883_v62  ;;  %v1882_v40 = vmul.f32 0.0078125, %v1865_v23 }
 0x4c6   : > { %v1924_v4 = vmul.f32 %v4363_v54, %v5776_v17 }
 0x4c7   : > { %v1898_v5 = vadd.f32 1e-05, %v1882_v40  ;;  %4372 = vrsqrt.f32 %v1899_v59 }
 0x4c8   : > { %4048 = vmatprep.mubr.f32.mxu0 %v1924_v4 }
 0x4c9   : > { %4374 = vrsqrt.f32 %v1898_v5  ;;  %4049 = vmatmul.mubr.f32.gmra.mxu0 %v1925_v57 }
 0x4cc   : > { %v4365_v37 = vpop.eup %4364 }
 0x4cd   : > { %v1927_v12 = vmul.f32 %v4365_v37, %v5790_v27  ;;  %v5847_v27 = vld [vmem:[%s6871_s5 + $0x2] ss:$0 sm:$0xff] }
 0x4ce   : > { %v4367_v61 = vpop.eup %4366 }
 0x4cf   : > { %v1926_v24 = vmul.f32 %v4367_v61, %v5793_v60 }
 0x4d0   : > { %v4369_v43 = vpop.eup %4368 }
 0x4d1   : > { %4051 = vmatprep.mubr.f32.mxu0 %v1926_v24  ;;  %v1929_v17 = vmul.f32 %v4369_v43, %v5798_v34 }
 0x4d2   : > { %v4371_v10 = vpop.eup %4370  ;;  %4052 = vmatmul.mubr.f32.gmra.mxu0 %v1927_v12 }
 0x4d3   : > { %v1928_v11 = vmul.f32 %v4371_v10, %v5803_v20 }
 0x4d4   : > { %v4373_v44 = vpop.eup %4372 }
 0x4d5   : > { %4054 = vmatprep.mubr.f32.mxu0 %v1928_v11  ;;  %v1931_v3 = vmul.f32 %v4373_v44, %v5811_v13 }
 0x4d6   : > { %v4375_v16 = vpop.eup %4374  ;;  %4055 = vmatmul.mubr.f32.gmra.mxu0 %v1929_v17 }
 0x4d7   : > { %v1930_v9 = vmul.f32 %v4375_v16, %v5816_v46 }
 0x4d9   : > { %4057 = vmatprep.mubr.f32.mxu0 %v1930_v9 }
 0x4da   : > { %4058 = vmatmul.mubr.f32.gmra.mxu0 %v1931_v3 }
 0x56b   : > { %v4038_v60 = vpop.f32.mrf.mxu0 }
 0x56c   : > { %v2024_v20 = vadd.f32 %v4038_v60, %v5847_v27 }
 0x56d   : > { %v2018_v36 = vpop.f32.mrf.mxu0 }
 0x56e   : > { %v5850_v34 = vmul.f32 0.70710677, %v2024_v20  ;;  %v2019_v7 = vadd.f32 %v5847_v27, %v2018_v36  ;;  %v5894_v40 = vmul.f32 0.5, %v2024_v20 }
 0x570   : > { %v2130_v55 = vand.u32 2147483647, %v5850_v34  ;;  %v5854_v46 = vmul.f32 0.70710677, %v2019_v7  ;;  %v5907_v9 = vmul.f32 0.5, %v2019_v7  ;;  %vm2450_vm1 = vcmp.lt.f32.partialorder %v5850_v34, 0.0 }
 0x572   : > { %v2146_v13 = vmul.f32 0.3275911, %v2130_v55  ;;  %v2129_v22 = vand.u32 2147483647, %v5854_v46  ;;  %v2354_v15 = vmul.f32 %v2130_v55, %v2130_v55  ;;  %vm2449_vm2 = vcmp.lt.f32.partialorder %v5854_v46, 0.0 }
 0x574   : > { %v2162_v38 = vadd.f32 1.0, %v2146_v13  ;;  %v2145_v8 = vmul.f32 0.3275911, %v2129_v22  ;;  %v2353_v45 = vmul.f32 %v2129_v22, %v2129_v22  ;;  %v2370_v47 = vsub.f32 0.0, %v2354_v15 }
 0x575   : > { %v4041_v0 = vpop.f32.mrf.mxu0 }
 0x576   : > { %4376 = vrcp.f32 %v2162_v38  ;;  %v2161_v25 = vadd.f32 1.0, %v2145_v8  ;;  %v5858_v6 = vadd.f32 %v4041_v0, %v5847_v27  ;;  %v2369_v19 = vsub.f32 0.0, %v2353_v45 }
 0x577   : > { %v2028_v18 = vpop.f32.mrf.mxu0  ;;  %v2387_v58 = vmul.f32 1.442695, %v2370_v47 }
 0x578   : > { %v5861_v48 = vadd.f32 %v5847_v27, %v2028_v18  ;;  %4378 = vrcp.f32 %v2161_v25  ;;  %v5864_v52 = vmul.f32 0.70710677, %v5858_v6  ;;  %v2385_v63 = vmul.f32 1.442695, %v2369_v19 }
 0x579   : > { %v4044_v1 = vpop.f32.mrf.mxu0  ;;  %4380 = vpow2.f32 %v2387_v58 }
 0x57a   : > { %v5867_v32 = vmul.f32 0.70710677, %v5861_v48  ;;  %v5870_v29 = vadd.f32 %v4044_v1, %v5847_v27  ;;  %v2132_v56 = vand.u32 2147483647, %v5864_v52  ;;  %4382 = vpow2.f32 %v2385_v63 }
 0x57b   : > { %v2038_v51 = vpop.f32.mrf.mxu0  ;;  %vm2452_vm3 = vcmp.lt.f32.partialorder %v5864_v52, 0.0 }
 0x57c   : > { %v5874_v49 = vmul.f32 0.70710677, %v5870_v29  ;;  %v2131_v30 = vand.u32 2147483647, %v5867_v32  ;;  %v5878_v42 = vadd.f32 %v5847_v27, %v2038_v51  ;;  %v2356_v39 = vmul.f32 %v2132_v56, %v2132_v56 }
 0x57d   : > { %v4047_v50 = vpop.f32.mrf.mxu0  ;;  %v2148_v53 = vmul.f32 0.3275911, %v2132_v56  ;;  %vm2451_vm4 = vcmp.lt.f32.partialorder %v5867_v32, 0.0 }
 0x57e   : > { %v5881_v33 = vmul.f32 0.70710677, %v5878_v42  ;;  %v2134_v21 = vand.u32 2147483647, %v5874_v49  ;;  %v2147_v28 = vmul.f32 0.3275911, %v2131_v30  ;;  %v2355_v35 = vmul.f32 %v2131_v30, %v2131_v30 }
 0x57f   : > { %v2048_v2 = vpop.f32.mrf.mxu0  ;;  %v2372_v41 = vsub.f32 0.0, %v2356_v39  ;;  %v5888_v62 = vadd.f32 %v4047_v50, %v5847_v27  ;;  %v2164_v26 = vadd.f32 1.0, %v2148_v53  ;;  %v5922_v30 = vmul.f32 0.5, %v5858_v6 }
 0x580   : > { %v2133_v31 = vand.u32 2147483647, %v5881_v33  ;;  %v2358_v23 = vmul.f32 %v2134_v21, %v2134_v21  ;;  %v5891_v54 = vadd.f32 %v5847_v27, %v2048_v2  ;;  %v2163_v4 = vadd.f32 1.0, %v2147_v28 }
 0x581   : > { %v2371_v5 = vsub.f32 0.0, %v2355_v35  ;;  %v2150_v37 = vmul.f32 0.3275911, %v2134_v21  ;;  %v5899_v24 = vmul.f32 0.70710677, %v5888_v62  ;;  %4384 = vrcp.f32 %v2164_v26 }
 0x582   : > { %v2357_v61 = vmul.f32 %v2133_v31, %v2133_v31  ;;  %v5902_v12 = vmul.f32 0.70710677, %v5891_v54  ;;  %v2391_v43 = vmul.f32 1.442695, %v2372_v41  ;;  %v2374_v17 = vsub.f32 0.0, %v2358_v23 }
 0x583   : > { %v5885_v14 = vpop.eup %4376  ;;  %v2136_v44 = vand.u32 2147483647, %v5899_v24  ;;  %4386 = vrcp.f32 %v2163_v4  ;;  %v2389_v36 = vmul.f32 1.442695, %v2371_v5  ;;  %v2149_v55 = vmul.f32 0.3275911, %v2133_v31 }
 0x584   : > { %v2210_v59 = vmul.f32 1.0614054, %v5885_v14  ;;  %v2135_v16 = vand.u32 2147483647, %v5902_v12  ;;  %v2373_v13 = vsub.f32 0.0, %v2357_v61  ;;  %4388 = vpow2.f32 %v2391_v43 }
 0x585   : > { %v5896_v57 = vpop.eup %4378  ;;  %v2360_v22 = vmul.f32 %v2136_v44, %v2136_v44  ;;  %v2152_v38 = vmul.f32 0.3275911, %v2136_v44  ;;  %v2166_v15 = vadd.f32 1.0, %v2150_v37  ;;  %v2395_v7 = vmul.f32 1.442695, %v2374_v17 }
 0x586   : > { %v3717_v10 = vadd.f32 -1.4531521, %v2210_v59  ;;  %v2209_v11 = vmul.f32 1.0614054, %v5896_v57  ;;  %v2359_v8 = vmul.f32 %v2135_v16, %v2135_v16  ;;  %v2151_v45 = vmul.f32 0.3275911, %v2135_v16  ;;  %v5931_v41 = vpop.eup %4380 }
 0x587   : > { %4390 = vpow2.f32 %v2389_v36  ;;  %v2165_v50 = vadd.f32 1.0, %v2149_v55  ;;  %v2376_v19 = vsub.f32 0.0, %v2360_v22  ;;  %v2393_v39 = vmul.f32 1.442695, %v2373_v13  ;;  %v5941_v61 = vpop.eup %4382 }
 0x588   : > { %v2242_v60 = vmul.f32 %v5885_v14, %v3717_v10  ;;  %v3716_v20 = vadd.f32 -1.4531521, %v2209_v11  ;;  %v2168_v53 = vadd.f32 1.0, %v2152_v38  ;;  %v2375_v21 = vsub.f32 0.0, %v2359_v8 }
 0x589   : > { %v4050_v3 = vpop.f32.mrf.mxu0  ;;  %4392 = vrcp.f32 %v2166_v15  ;;  %v5929_v31 = vmul.f32 0.5, %v5861_v48  ;;  %v2167_v6 = vadd.f32 1.0, %v2151_v45  ;;  %v2399_v26 = vmul.f32 1.442695, %v2376_v19 }
 0x58a   : > { %v5911_v0 = vadd.f32 %v4050_v3, %v5847_v27  ;;  %v2258_v18 = vadd.f32 1.4214138, %v2242_v60  ;;  %v2241_v1 = vmul.f32 %v5896_v57, %v3716_v20  ;;  %4394 = vpow2.f32 %v2395_v7 }
 0x58b   : > { %v2058_v25 = vpop.f32.mrf.mxu0  ;;  %4396 = vrcp.f32 %v2165_v50  ;;  %v5935_v5 = vmul.f32 0.5, %v5870_v29  ;;  %v2397_v43 = vmul.f32 1.442695, %v2375_v21  ;;  %v5947_v16 = vmul.f32 0.5, %v5878_v42 }
 0x58c   : > { %v5915_v56 = vmul.f32 0.70710677, %v5911_v0  ;;  %v5918_v51 = vadd.f32 %v5847_v27, %v2058_v25  ;;  %v2274_v47 = vmul.f32 %v5885_v14, %v2258_v18  ;;  %v2257_v2 = vadd.f32 1.4214138, %v2241_v1 }
 0x58d   : > { %4398 = vpow2.f32 %v2393_v39  ;;  %vm2454_vm5 = vcmp.lt.f32.partialorder %v5874_v49, 0.0  ;;  %vm2453_vm6 = vcmp.lt.f32.partialorder %v5881_v33, 0.0  ;;  %vm2456_vm7 = vcmp.lt.f32.partialorder %v5899_v24, 0.0 }
 0x58e   : > { %v2138_v58 = vand.u32 2147483647, %v5915_v56  ;;  %v5926_v28 = vmul.f32 0.70710677, %v5918_v51  ;;  %v3733_v35 = vadd.f32 -0.28449672, %v2274_v47  ;;  %4400 = vrcp.f32 %v2168_v53  ;;  %v5944_v44 = vpop.eup %4384 }
 0x58f   : > { %v2273_v17 = vmul.f32 %v5896_v57, %v2257_v2  ;;  %4402 = vrcp.f32 %v2167_v6  ;;  %v2212_v7 = vmul.f32 1.0614054, %v5944_v44  ;;  %vm2455_vm8 = vcmp.lt.f32.partialorder %v5902_v12, 0.0 }
 0x590   : > { %v2362_v63 = vmul.f32 %v2138_v58, %v2138_v58  ;;  %v2154_v23 = vmul.f32 0.3275911, %v2138_v58  ;;  %v2137_v59 = vand.u32 2147483647, %v5926_v28  ;;  %v2306_v48 = vmul.f32 %v5885_v14, %v3733_v35  ;;  %v5952_v60 = vpop.eup %4386 }
 0x591   : > { %4404 = vpow2.f32 %v2399_v26  ;;  %v3732_v15 = vadd.f32 -0.28449672, %v2273_v17  ;;  %v5965_v1 = vpop.eup %4388  ;;  %vm2458_vm9 = vcmp.lt.f32.partialorder %v5915_v56, 0.0  ;;  %vm2457_vm10 = vcmp.lt.f32.partialorder %v5926_v28, 0.0 }
 0x592   : > { %v4053_v4 = vpop.f32.mrf.mxu0  ;;  %v2361_v10 = vmul.f32 %v2137_v59, %v2137_v59  ;;  %v2378_v29 = vsub.f32 0.0, %v2362_v63  ;;  %v2170_v20 = vadd.f32 1.0, %v2154_v23  ;;  %v2153_v36 = vmul.f32 0.3275911, %v2137_v59 }
 0x593   : > { %v5938_v37 = vadd.f32 %v4053_v4, %v5847_v27  ;;  %v2322_v8 = vadd.f32 0.2548296, %v2306_v48  ;;  %4406 = vpow2.f32 %v2397_v43 }
 0x594   : > { %v2068_v11 = vpop.f32.mrf.mxu0  ;;  %v2377_v22 = vsub.f32 0.0, %v2361_v10  ;;  %v2403_v45 = vmul.f32 1.442695, %v2378_v29  ;;  %4408 = vrcp.f32 %v2170_v20  ;;  %v2169_v39 = vadd.f32 1.0, %v2153_v36  ;;  %v5974_v58 = vpop.eup %4390 }
 0x595   : > { %v5950_v3 = vmul.f32 0.70710677, %v5938_v37  ;;  %v5955_v55 = vadd.f32 %v5847_v27, %v2068_v11  ;;  %v2338_v26 = vmul.f32 %v5885_v14, %v2322_v8 }
 0x596   : > { %v4056_v13 = vpop.f32.mrf.mxu0  ;;  %v2401_v35 = vmul.f32 1.442695, %v2377_v22  ;;  %v5981_v43 = vpop.eup %4392  ;;  %4410 = vpow2.f32 %v2403_v45 }
 0x597   : > { %6978 = vst [vmem:[#allocation10_spill] sm:$0xff] %v5955_v55  ;;  %v2140_v38 = vand.u32 2147483647, %v5950_v3  ;;  %v5959_v42 = vadd.f32 %v4056_v13, %v5847_v27  ;;  %v5962_v25 = vmul.f32 0.70710677, %v5955_v55  ;;  %v5983_v29 = vpop.eup %4394  ;;  %4412 = vrcp.f32 %v2169_v39 }
 0x598   : > { %v2078_v18 = vpop.f32.mrf.mxu0  ;;  %v5986_v14 = vpop.eup %4396  ;;  %4414 = vpow2.f32 %v2401_v35  ;;  %vm2460_vm11 = vcmp.lt.f32.partialorder %v5950_v3, 0.0 }
 0x599   : > { %6979 = vst [vmem:[#allocation15_spill] sm:$0xff] %v5959_v42  ;;  %v2156_v47 = vmul.f32 0.3275911, %v2140_v38  ;;  %v2364_v50 = vmul.f32 %v2140_v38, %v2140_v38  ;;  %v5968_v19 = vmul.f32 0.70710677, %v5959_v42  ;;  %v5972_v21 = vadd.f32 %v5847_v27, %v2078_v18 }
 0x59a   : > { %v2139_v53 = vand.u32 2147483647, %v5962_v25  ;;  %v4059_v63 = vpop.f32.mrf.mxu0  ;;  %v5991_v45 = vpop.eup %4398  ;;  %vm2459_vm12 = vcmp.lt.f32.partialorder %v5962_v25, 0.0 }
 0x59b   : > { %6980 = vst [vmem:[#allocation17_spill] sm:$0xff] %v5968_v19  ;;  %6981 = vst [vmem:[#allocation14_spill] sm:$0xff] %v5972_v21  ;;  %v2380_v2 = vsub.f32 0.0, %v2364_v50  ;;  %v2142_v6 = vand.u32 2147483647, %v5968_v19  ;;  %v2172_v23 = vadd.f32 1.0, %v2156_v47  ;;  %v5989_v8 = vadd.f32 %v4059_v63, %v5847_v27 }
 0x59c   : > { %v2155_v59 = vmul.f32 0.3275911, %v2139_v53  ;;  %v2363_v4 = vmul.f32 %v2139_v53, %v2139_v53  ;;  %v5979_v48 = vmul.f32 0.70710677, %v5972_v21  ;;  %v2088_v18 = vpop.f32.mrf.mxu0  ;;  %v5995_v47 = vmul.f32 0.5, %v5888_v62  ;;  %v5997_v53 = vpop.eup %4400 }
 0x59d   : > { %v2407_v10 = vmul.f32 1.442695, %v2380_v2  ;;  %v2158_v11 = vmul.f32 0.3275911, %v2142_v6  ;;  %v2366_v17 = vmul.f32 %v2142_v6, %v2142_v6  ;;  %6983 = vst [vmem:[#allocation23_spill] sm:$0xff] %v5989_v8  ;;  %4416 = vrcp.f32 %v2172_v23  ;;  %v6003_v63 = vpop.eup %4402 }
 0x59e   : > { %6982 = vst [vmem:[#allocation21_spill] sm:$0xff] %v5979_v48  ;;  %v2171_v20 = vadd.f32 1.0, %v2155_v59  ;;  %v2379_v36 = vsub.f32 0.0, %v2363_v4  ;;  %v2141_v13 = vand.u32 2147483647, %v5979_v48  ;;  %v2305_v2 = vmul.f32 %v5896_v57, %v3732_v15  ;;  %v6008_v23 = vpop.eup %4404 }
 0x59f   : > { %v2174_v22 = vadd.f32 1.0, %v2158_v11  ;;  %v2382_v38 = vsub.f32 0.0, %v2366_v17  ;;  %4418 = vpow2.f32 %v2407_v10  ;;  %v6000_v35 = vmul.f32 0.70710677, %v5989_v8 }
 0x5a0   : > { %v2405_v50 = vmul.f32 1.442695, %v2379_v36  ;;  %v2157_v39 = vmul.f32 0.3275911, %v2141_v13  ;;  %v3719_v6 = vadd.f32 -1.4531521, %v2212_v7  ;;  %4420 = vrcp.f32 %v2171_v20 }
 0x5a1   : > { %6984 = vst [vmem:[#allocation18_spill] sm:$0xff] %v6000_v35  ;;  %v2411_v59 = vmul.f32 1.442695, %v2382_v38  ;;  %v2365_v4 = vmul.f32 %v2141_v13, %v2141_v13  ;;  %v6006_v62 = vadd.f32 %v5847_v27, %v2088_v18  ;;  %v6011_v11 = vmul.f32 0.5, %v5891_v54  ;;  %v6021_v27 = vpop.eup %4406 }
 0x5a2   : > { %4422 = vrcp.f32 %v2174_v22  ;;  %v2144_v10 = vand.u32 2147483647, %v6000_v35  ;;  %v2418_v17 = vmul.f32 %v5931_v41, %v2338_v26  ;;  %v6016_v15 = vmul.f32 0.5, %v5911_v0  ;;  %v6026_v26 = vpop.eup %4408  ;;  %v6993_v25 = vld [vmem:[#allocation14_spill] sm:$0xff] }
 0x5a3   : > { %6985 = vst [vmem:[#allocation22_spill] sm:$0xff] %v6006_v62  ;;  %4424 = vpow2.f32 %v2405_v50  ;;  %v2173_v7 = vadd.f32 1.0, %v2157_v39  ;;  %v6019_v20 = vmul.f32 0.70710677, %v6006_v62  ;;  %v2321_v54 = vadd.f32 0.2548296, %v2305_v2 }
 0x5a4   : > { %v2160_v36 = vmul.f32 0.3275911, %v2144_v10  ;;  %v2368_v13 = vmul.f32 %v2144_v10, %v2144_v10  ;;  %v2434_v38 = vsub.f32 1.0, %v2418_v17  ;;  %4426 = vpow2.f32 %v2411_v59 }
 0x5a5   : > { %6986 = vst [vmem:[#allocation16_spill] sm:$0xff] %v6019_v20  ;;  %v2381_v22 = vsub.f32 0.0, %v2365_v4  ;;  %v2143_v41 = vand.u32 2147483647, %v6019_v20  ;;  %v2244_v0 = vmul.f32 %v5944_v44, %v3719_v6  ;;  %v2337_v62 = vmul.f32 %v5896_v57, %v2321_v54  ;;  %v6036_v4 = vpop.eup %4410 }
 0x5a6   : > { %v2176_v18 = vadd.f32 1.0, %v2160_v36  ;;  %v2384_v50 = vsub.f32 0.0, %v2368_v13  ;;  %v2466_v39 = vsub.f32 0.0, %v2434_v38  ;;  %v2211_v2 = vmul.f32 1.0614054, %v5952_v60 }
 0x5a7   : > { %v2159_v8 = vmul.f32 0.3275911, %v2143_v41  ;;  %v2367_v35 = vmul.f32 %v2143_v41, %v2143_v41  ;;  %v2260_v10 = vadd.f32 1.4214138, %v2244_v0  ;;  %v6031_v17 = vmul.f32 0.5, %v5918_v51  ;;  %v6041_v41 = vpop.eup %4412 }
 0x5a8   : > { %4428 = vrcp.f32 %v2173_v7  ;;  %v2482_v59 = vsel %vm2450_vm1, %v2466_v39, %v2434_v38  ;;  %v2417_v6 = vmul.f32 %v5941_v61, %v2337_v62  ;;  %v6038_v36 = vmul.f32 1.442695, %v2381_v22  ;;  %v6044_v20 = vpop.eup %4414 }
 0x5a9   : > { %v2383_v13 = vsub.f32 0.0, %v2367_v35  ;;  %v2498_v57 = vadd.f32 1.0, %v2482_v59  ;;  %v2276_v54 = vmul.f32 %v5944_v44, %v2260_v10  ;;  %4430 = vrcp.f32 %v2176_v18 }
 0x5aa   : > { %v2433_v0 = vsub.f32 1.0, %v2417_v6  ;;  %v3718_v51 = vadd.f32 -1.4531521, %v2211_v2  ;;  %v2214_v7 = vmul.f32 1.0614054, %v5981_v43  ;;  %v2175_v61 = vadd.f32 1.0, %v2159_v8  ;;  %v6051_v35 = vpop.eup %4416 }
 0x5ab   : > { %v6046_v34 = vmul.f32 1.442695, %v2384_v50  ;;  %v6049_v62 = vmul.f32 %v2498_v57, %v5894_v40  ;;  %v3735_v38 = vadd.f32 -0.28449672, %v2276_v54  ;;  %v2213_v18 = vmul.f32 1.0614054, %v5986_v14 }
 0x5ac   : > { %v2465_v22 = vsub.f32 0.0, %v2433_v0  ;;  %v2243_v39 = vmul.f32 %v5952_v60, %v3718_v51  ;;  %v3721_v10 = vadd.f32 -1.4531521, %v2214_v7  ;;  %v6055_v2 = vpop.eup %4418  ;;  %v6057_v59 = vmul.f32 1.442695, %v2383_v13 }
 0x5ad   : > { %6987 = vst [vmem:[#allocation9_spill] sm:$0xff] %v6049_v62  ;;  %2531 = vadd.xlane.f32.xlu1 %v6049_v62  ;;  %v2308_v8 = vmul.f32 %v5944_v44, %v3735_v38  ;;  %v2216_v40 = vmul.f32 1.0614054, %v5997_v53  ;;  %v2215_v50 = vmul.f32 1.0614054, %v6003_v63  ;;  %v6063_v6 = vpop.eup %4420  ;;  %4432 = vrcp.f32 %v2175_v61 }
 0x5ae   : > { %v2481_v57 = vsel %vm2449_vm2, %v2465_v22, %v2433_v0  ;;  %v2259_v54 = vadd.f32 1.4214138, %v2243_v39  ;;  %v2246_v51 = vmul.f32 %v5981_v43, %v3721_v10  ;;  %v3720_v7 = vadd.f32 -1.4531521, %v2213_v18 }
 0x5af   : > { %v6068_v21 = vpop.eup %4422  ;;  %v2497_v13 = vadd.f32 1.0, %v2481_v57  ;;  %v2324_v62 = vadd.f32 0.2548296, %v2308_v8  ;;  %v3723_v48 = vadd.f32 -1.4531521, %v2216_v40  ;;  %4434 = vpow2.f32 %v6038_v36 }
 0x5b0   : > { %v6070_v38 = vpop.eup %4424  ;;  %v2275_v42 = vmul.f32 %v5952_v60, %v2259_v54  ;;  %v2262_v19 = vadd.f32 1.4214138, %v2246_v51  ;;  %v2245_v46 = vmul.f32 %v5986_v14, %v3720_v7  ;;  %v3722_v0 = vadd.f32 -1.4531521, %v2215_v50 }
 0x5b1   : > { %v6076_v22 = vmul.f32 %v2497_v13, %v5907_v9  ;;  %v2340_v39 = vmul.f32 %v5944_v44, %v2324_v62  ;;  %v2248_v61 = vmul.f32 %v5997_v53, %v3723_v48  ;;  %v2218_v10 = vmul.f32 1.0614054, %v6026_v26  ;;  %v6081_v18 = vpop.eup %4426 }
 0x5b2   : > { %v3734_v8 = vadd.f32 -0.28449672, %v2275_v42  ;;  %v2278_v40 = vmul.f32 %v5981_v43, %v2262_v19  ;;  %v2261_v57 = vadd.f32 1.4214138, %v2245_v46  ;;  %v2247_v54 = vmul.f32 %v6003_v63, %v3722_v0 }
 0x5b3   : > { %6988 = vst [vmem:[#allocation20_spill] sm:$0xff] %v6076_v22  ;;  %2529 = vadd.xlane.f32.xlu0 %v6076_v22  ;;  %v2420_v50 = vmul.f32 %v5965_v1, %v2340_v39  ;;  %v2264_v9 = vadd.f32 1.4214138, %v2248_v61  ;;  %v3725_v51 = vadd.f32 -1.4531521, %v2218_v10  ;;  %4436 = vpow2.f32 %v6046_v34 }
 0x5b4   : > { %v2217_v44 = vmul.f32 1.0614054, %v6041_v41  ;;  %v2307_v48 = vmul.f32 %v5952_v60, %v3734_v8  ;;  %v3737_v62 = vadd.f32 -0.28449672, %v2278_v40  ;;  %v2277_v7 = vmul.f32 %v5986_v14, %v2261_v57 }
 0x5b5   : > { %v2263_v13 = vadd.f32 1.4214138, %v2247_v54  ;;  %v6090_v42 = vpop.eup %4428  ;;  %v2436_v19 = vsub.f32 1.0, %v2420_v50  ;;  %v2280_v46 = vmul.f32 %v5997_v53, %v2264_v9  ;;  %v2250_v0 = vmul.f32 %v6026_v26, %v3725_v51 }
 0x5b6   : > { %v3724_v22 = vadd.f32 -1.4531521, %v2217_v44  ;;  %v2323_v55 = vadd.f32 0.2548296, %v2307_v48  ;;  %v2310_v1 = vmul.f32 %v5981_v43, %v3737_v62  ;;  %v3736_v39 = vadd.f32 -0.28449672, %v2277_v7  ;;  %v6096_v10 = vpop.eup %4430 }
 0x5b7   : > { %v2279_v61 = vmul.f32 %v6003_v63, %v2263_v13  ;;  %v2468_v8 = vsub.f32 0.0, %v2436_v19  ;;  %v3739_v40 = vadd.f32 -0.28449672, %v2280_v46  ;;  %v2266_v57 = vadd.f32 1.4214138, %v2250_v0 }
 0x5b8   : > { %v2249_v54 = vmul.f32 %v6041_v41, %v3724_v22  ;;  %v2339_v50 = vmul.f32 %v5952_v60, %v2323_v55  ;;  %v2326_v9 = vadd.f32 0.2548296, %v2310_v1  ;;  %v2309_v51 = vmul.f32 %v5986_v14, %v3736_v39 }
 0x5b9   : > { %v3738_v44 = vadd.f32 -0.28449672, %v2279_v61  ;;  %v2484_v48 = vsel %vm2452_vm3, %v2468_v8, %v2436_v19  ;;  %v2312_v62 = vmul.f32 %v5997_v53, %v3739_v40  ;;  %v2282_v7 = vmul.f32 %v6026_v26, %v2266_v57 }
 0x5ba   : > { %v2265_v13 = vadd.f32 1.4214138, %v2249_v54  ;;  %v2500_v46 = vadd.f32 1.0, %v2484_v48  ;;  %v2419_v0 = vmul.f32 %v5974_v58, %v2339_v50  ;;  %v2342_v22 = vmul.f32 %v5981_v43, %v2326_v9  ;;  %v6112_v19 = vpop.eup %4432 }
 0x5bb   : > { %v2325_v60 = vadd.f32 0.2548296, %v2309_v51  ;;  %v2328_v55 = vadd.f32 0.2548296, %v2312_v62  ;;  %v2311_v1 = vmul.f32 %v6003_v63, %v3738_v44  ;;  %v3741_v39 = vadd.f32 -0.28449672, %v2282_v7 }
 0x5bc   : > { %v2281_v52 = vmul.f32 %v6041_v41, %v2265_v13  ;;  %v6116_v61 = vmul.f32 %v2500_v46, %v5922_v30  ;;  %v2435_v8 = vsub.f32 1.0, %v2419_v0  ;;  %v2422_v58 = vmul.f32 %v5983_v29, %v2342_v22 }
 0x5bd   : > { %v2341_v43 = vmul.f32 %v5986_v14, %v2325_v60  ;;  %v2344_v40 = vmul.f32 %v5997_v53, %v2328_v55  ;;  %v2327_v57 = vadd.f32 0.2548296, %v2311_v1  ;;  %v2314_v54 = vmul.f32 %v6026_v26, %v3741_v39 }
 0x5be   : > { %v3740_v50 = vadd.f32 -0.28449672, %v2281_v52  ;;  %2535 = vadd.xlane.f32.xlu1 %v6116_v61  ;;  %v2467_v9 = vsub.f32 0.0, %v2435_v8  ;;  %v2438_v51 = vsub.f32 1.0, %v2422_v58  ;;  %v2220_v44 = vmul.f32 1.0614054, %v6051_v35 }
 0x5bf   : > { %v2421_v30 = vmul.f32 %v5991_v45, %v2341_v43  ;;  %v2424_v29 = vmul.f32 %v6008_v23, %v2344_v40  ;;  %v2343_v14 = vmul.f32 %v6003_v63, %v2327_v57  ;;  %v2330_v48 = vadd.f32 0.2548296, %v2314_v54 }
 0x5c0   : > { %v2313_v53 = vmul.f32 %v6041_v41, %v3740_v50  ;;  %v2483_v62 = vsel %vm2451_vm4, %v2467_v9, %v2435_v8  ;;  %v2470_v7 = vsub.f32 0.0, %v2438_v51  ;;  %v3727_v46 = vadd.f32 -1.4531521, %v2220_v44 }
 0x5c1   : > { %v2437_v13 = vsub.f32 1.0, %v2421_v30  ;;  %v2499_v0 = vadd.f32 1.0, %v2483_v62  ;;  %v2440_v22 = vsub.f32 1.0, %v2424_v29  ;;  %v2423_v45 = vmul.f32 %v6021_v27, %v2343_v14 }
 0x5c2   : > { %v2346_v60 = vmul.f32 %v6026_v26, %v2330_v48  ;;  %v2486_v63 = vsel %vm2454_vm5, %v2470_v7, %v2438_v51  ;;  %v2329_v55 = vadd.f32 0.2548296, %v2313_v53  ;;  %v2252_v1 = vmul.f32 %v6051_v35, %v3727_v46 }
 0x5c3   : > { %v2469_v23 = vsub.f32 0.0, %v2437_v13  ;;  %v6139_v32 = vmul.f32 %v2499_v0, %v5929_v31  ;;  %v2502_v39 = vadd.f32 1.0, %v2486_v63  ;;  %v2472_v52 = vsub.f32 0.0, %v2440_v22 }
 0x5c4   : > { %v2439_v8 = vsub.f32 1.0, %v2423_v45  ;;  %v2426_v26 = vmul.f32 %v6036_v4, %v2346_v60  ;;  %v2345_v49 = vmul.f32 %v6041_v41, %v2329_v55  ;;  %v2268_v58 = vadd.f32 1.4214138, %v2252_v1 }
 0x5c5   : > { %v2485_v27 = vsel %vm2453_vm6, %v2469_v23, %v2437_v13  ;;  %2533 = vadd.xlane.f32.xlu0 %v6139_v32  ;;  %v6147_v43 = vmul.f32 %v2502_v39, %v5935_v5  ;;  %v2488_v31 = vsel %vm2456_vm7, %v2472_v52, %v2440_v22  ;;  %v2219_v41 = vmul.f32 1.0614054, %v6063_v6 }
 0x5c6   : > { %v2501_v40 = vadd.f32 1.0, %v2485_v27  ;;  %v2471_v57 = vsub.f32 0.0, %v2439_v8  ;;  %v2504_v54 = vadd.f32 1.0, %v2488_v31  ;;  %v2442_v50 = vsub.f32 1.0, %v2426_v26 }
 0x5c7   : > { %v2425_v33 = vmul.f32 %v6044_v20, %v2345_v49  ;;  %v2284_v9 = vmul.f32 %v6051_v35, %v2268_v58  ;;  %2539 = vadd.xlane.f32.xlu1 %v6147_v43  ;;  %v2222_v24 = vmul.f32 1.0614054, %v6068_v21  ;;  %v2224_v0 = vmul.f32 1.0614054, %v6096_v10 }
 0x5c8   : > { %v6155_v4 = vmul.f32 %v2501_v40, %v5947_v16  ;;  %v2487_v5 = vsel %vm2455_vm8, %v2471_v57, %v2439_v8  ;;  %v6162_v51 = vmul.f32 %v2504_v54, %v5995_v47  ;;  %v2474_v44 = vsub.f32 0.0, %v2442_v50 }
 0x5c9   : > { %v2503_v30 = vadd.f32 1.0, %v2487_v5  ;;  %v2441_v20 = vsub.f32 1.0, %v2425_v33  ;;  %v3743_v29 = vadd.f32 -0.28449672, %v2284_v9  ;;  %v3726_v16 = vadd.f32 -1.4531521, %v2219_v41  ;;  %v4435_v41 = vpop.eup %4434 }
 0x5ca   : > { %2537 = vadd.xlane.f32.xlu0 %v6155_v4  ;;  %v3729_v14 = vadd.f32 -1.4531521, %v2222_v24  ;;  %v2490_v48 = vsel %vm2458_vm9, %v2474_v44, %v2442_v50  ;;  %v2221_v47 = vmul.f32 1.0614054, %v6090_v42  ;;  %v2223_v56 = vmul.f32 1.0614054, %v6112_v19 }
 0x5cb   : > { %v6167_v12 = vmul.f32 %v2503_v30, %v6011_v11  ;;  %v2473_v53 = vsub.f32 0.0, %v2441_v20  ;;  %2543 = vadd.xlane.f32.xlu1 %v6162_v51  ;;  %v2506_v62 = vadd.f32 1.0, %v2490_v48  ;;  %v2316_v7 = vmul.f32 %v6051_v35, %v3743_v29 }
 0x5cc   : > { %v2251_v36 = vmul.f32 %v6063_v6, %v3726_v16  ;;  %v2254_v13 = vmul.f32 %v6068_v21, %v3729_v14  ;;  %v3728_v11 = vadd.f32 -1.4531521, %v2221_v47  ;;  %v3731_v1 = vadd.f32 -1.4531521, %v2224_v0 }
 0x5cd   : > { %v2489_v46 = vsel %vm2457_vm10, %v2473_v53, %v2441_v20  ;;  %v6182_v22 = vmul.f32 %v2506_v62, %v6016_v15  ;;  %v2332_v60 = vadd.f32 0.2548296, %v2316_v7  ;;  %v3730_v39 = vadd.f32 -1.4531521, %v2223_v56 }
 0x5ce   : > { %2541 = vadd.xlane.f32.xlu0 %v6167_v12  ;;  %v2505_v45 = vadd.f32 1.0, %v2489_v46  ;;  %v2267_v63 = vadd.f32 1.4214138, %v2251_v36  ;;  %v2270_v23 = vadd.f32 1.4214138, %v2254_v13  ;;  %v2253_v55 = vmul.f32 %v6090_v42, %v3728_v11 }
 0x5cf   : > { %2547 = vadd.xlane.f32.xlu1 %v6182_v22  ;;  %v2348_v52 = vmul.f32 %v6051_v35, %v2332_v60  ;;  %v2256_v26 = vmul.f32 %v6096_v10, %v3731_v1  ;;  %v2255_v49 = vmul.f32 %v6112_v19, %v3730_v39  ;;  %4438 = vpow2.f32 %v6057_v59  ;;  %v6990_v39 = vld [vmem:[#allocation17_spill] sm:$0xff] }
 0x5d0   : > { %v6188_v28 = vmul.f32 %v2505_v45, %v6031_v17  ;;  %v2283_v15 = vmul.f32 %v6063_v6, %v2267_v63  ;;  %v2286_v8 = vmul.f32 %v6068_v21, %v2270_v23  ;;  %v2269_v27 = vadd.f32 1.4214138, %v2253_v55 }
 0x5d1   : > { %v2428_v34 = vmul.f32 %v6055_v2, %v2348_v52  ;;  %v2272_v35 = vadd.f32 1.4214138, %v2256_v26  ;;  %v2271_v31 = vadd.f32 1.4214138, %v2255_v49  ;;  %v2108_v29 = vmul.f32 0.5, %v5938_v37 }
 0x5d2   : > { %2545 = vadd.xlane.f32.xlu0 %v6188_v28  ;;  %v3742_v58 = vadd.f32 -0.28449672, %v2283_v15  ;;  %v3745_v17 = vadd.f32 -0.28449672, %v2286_v8  ;;  %v2285_v40 = vmul.f32 %v6090_v42, %v2269_v27  ;;  %vm2462_vm13 = vcmp.lt.f32.partialorder %v6990_v39, 0.0 }
 0x5d3   : > { %v2444_v57 = vsub.f32 1.0, %v2428_v34  ;;  %v2288_v9 = vmul.f32 %v6096_v10, %v2272_v35  ;;  %v2287_v59 = vmul.f32 %v6112_v19, %v2271_v31 }
 0x5d4   : > { %v2315_v54 = vmul.f32 %v6063_v6, %v3742_v58  ;;  %v2318_v50 = vmul.f32 %v6068_v21, %v3745_v17  ;;  %v3744_v33 = vadd.f32 -0.28449672, %v2285_v40  ;;  %v6992_v58 = vld [vmem:[#allocation21_spill] sm:$0xff]  ;;  %v2109_v40 = vmul.f32 0.5, %v6993_v25 }
 0x5d5   : > { %v2476_v5 = vsub.f32 0.0, %v2444_v57  ;;  %v3747_v44 = vadd.f32 -0.28449672, %v2288_v9  ;;  %v3746_v20 = vadd.f32 -0.28449672, %v2287_v59  ;;  %vm2461_vm14 = vcmp.lt.f32.partialorder %v6992_v58, 0.0 }
 0x5d6   : > { %v2331_v2 = vadd.f32 0.2548296, %v2315_v54  ;;  %v2334_v24 = vadd.f32 0.2548296, %v2318_v50  ;;  %v2317_v30 = vmul.f32 %v6090_v42, %v3744_v33  ;;  %v6994_v54 = vld [vmem:[#allocation18_spill] sm:$0xff]  ;;  %v6995_v59 = vld [vmem:[#allocation16_spill] sm:$0xff] }
 0x5d7   : > { %v2492_v16 = vsel %vm2460_vm11, %v2476_v5, %v2444_v57  ;;  %v2320_v62 = vmul.f32 %v6096_v10, %v3747_v44  ;;  %v2319_v7 = vmul.f32 %v6112_v19, %v3746_v20  ;;  %vm2464_vm15 = vcmp.lt.f32.partialorder %v6994_v54, 0.0  ;;  %v6997_v20 = vld [vmem:[#allocation22_spill] sm:$0xff] }
 0x5d8   : > { %v2347_v14 = vmul.f32 %v6063_v6, %v2331_v2  ;;  %v2508_v48 = vadd.f32 1.0, %v2492_v16  ;;  %v2350_v53 = vmul.f32 %v6068_v21, %v2334_v24  ;;  %v2333_v47 = vadd.f32 0.2548296, %v2317_v30  ;;  %v4437_v6 = vpop.eup %4436  ;;  %v6996_v2 = vld [vmem:[#allocation23_spill] sm:$0xff] }
 0x5d9   : > { %v2336_v37 = vadd.f32 0.2548296, %v2320_v62  ;;  %v2335_v0 = vadd.f32 0.2548296, %v2319_v7  ;;  %vm2463_vm0 = vcmp.lt.f32.partialorder %v6995_v59, 0.0  ;;  %v2718_v62 = vld [vmem:[#allocation5 + $0x68] sm:$0xff] }
 0x5da   : > { %v2427_v3 = vmul.f32 %v6070_v38, %v2347_v14  ;;  %v6211_v36 = vmul.f32 %v2508_v48, %v2108_v29  ;;  %v2430_v13 = vmul.f32 %v6081_v18, %v2350_v53  ;;  %v2349_v46 = vmul.f32 %v6090_v42, %v2333_v47  ;;  %v6989_v42 = vld [vmem:[#allocation10_spill] sm:$0xff]  ;;  %v2720_v53 = vld [vmem:[#allocation5 + $0x78] sm:$0xff]  ;;  %v2719_v47 = vld [vmem:[#allocation5 + $0x70] sm:$0xff] }
 0x5db   : > { %v2352_v45 = vmul.f32 %v6096_v10, %v2336_v37  ;;  %v2351_v38 = vmul.f32 %v6112_v19, %v2335_v0  ;;  %v2107_v1 = vmul.f32 0.5, %v6989_v42  ;;  %v6991_v10 = vld [vmem:[#allocation15_spill] sm:$0xff]  ;;  %v2111_v29 = vmul.f32 0.5, %v6997_v20  ;;  %4060 = vmatprep.subr.mxu1 %v2720_v53  ;;  %v2716_v7 = vld [vmem:[#allocation5 + $0x58] sm:$0xff]  ;;  %v6998_v37 = vld [vmem:[#allocation9_spill] sm:$0xff] }
 0x5dc   : > { %v2443_v11 = vsub.f32 1.0, %v2427_v3  ;;  %2551 = vadd.xlane.f32.xlu1 %v6211_v36  ;;  %v2446_v21 = vsub.f32 1.0, %v2430_v13  ;;  %v2429_v56 = vmul.f32 %v4435_v41, %v2349_v46  ;;  %v4439_v63 = vpop.eup %4438  ;;  %v2110_v34 = vmul.f32 0.5, %v6991_v10  ;;  %4061 = vmatpush3.msra.mxu1 %v2720_v53  ;;  %v2717_v3 = vld [vmem:[#allocation5 + $0x60] sm:$0xff]  ;;  %v2708_v53 = vld [vmem:[#allocation5 + $0x18] sm:$0xff] }
 0x5dd   : > { %v2432_v55 = vmul.f32 %v4437_v6, %v2352_v45  ;;  %v2431_v15 = vmul.f32 %v4439_v63, %v2351_v38  ;;  %v2112_v41 = vmul.f32 0.5, %v6996_v2  ;;  %4062 = vmatprep.subr.mxu1 %v2719_v47  ;;  %v2713_v59 = vld [vmem:[#allocation5 + $0x40] sm:$0xff]  ;;  %v2712_v2 = vld [vmem:[#allocation5 + $0x38] sm:$0xff] }
 0x5de   : > { %v2475_v60 = vsub.f32 0.0, %v2443_v11  ;;  %v2478_v23 = vsub.f32 0.0, %v2446_v21  ;;  %v2445_v18 = vsub.f32 1.0, %v2429_v56  ;;  %4063 = vmatpush3.msra.mxu1 %v2719_v47  ;;  %v6999_v56 = vld [vmem:[#allocation20_spill] sm:$0xff] }
 0x5df   : > { %v2448_v49 = vsub.f32 1.0, %v2432_v55  ;;  %v2447_v17 = vsub.f32 1.0, %v2431_v15  ;;  %4064 = vmatprep.subr.mxu1 %v2718_v62 }
 0x5e0   : > { %v2491_v52 = vsel %vm2459_vm12, %v2475_v60, %v2443_v11  ;;  %v2494_v27 = vsel %vm2462_vm13, %v2478_v23, %v2446_v21  ;;  %v2477_v26 = vsub.f32 0.0, %v2445_v18  ;;  %4065 = vmatpush3.msra.mxu1 %v2718_v62  ;;  %v2707_v62 = vld [vmem:[#allocation5 + $0x10] sm:$0xff] }
 0x5e1   : > { %v2507_v8 = vadd.f32 1.0, %v2491_v52  ;;  %v2510_v19 = vadd.f32 1.0, %v2494_v27  ;;  %v2480_v57 = vsub.f32 0.0, %v2448_v49  ;;  %v2479_v9 = vsub.f32 0.0, %v2447_v17  ;;  %4066 = vmatprep.subr.mxu1 %v2717_v3 }
 0x5e2   : > { %v2493_v31 = vsel %vm2461_vm14, %v2477_v26, %v2445_v18  ;;  %4067 = vmatpush3.msra.mxu1 %v2717_v3  ;;  %v2715_v18 = vld [vmem:[#allocation5 + $0x50] sm:$0xff] }
 0x5e3   : > { %v6224_v35 = vmul.f32 %v2507_v8, %v2107_v1  ;;  %v6227_v50 = vmul.f32 %v2510_v19, %v2110_v34  ;;  %v2509_v33 = vadd.f32 1.0, %v2493_v31  ;;  %v2496_v5 = vsel %vm2464_vm15, %v2480_v57, %v2448_v49  ;;  %4068 = vmatprep.subr.mxu1 %v2716_v7  ;;  %v2714_v8 = vld [vmem:[#allocation5 + $0x48] sm:$0xff] }
 0x5e4   : > { %v2512_v30 = vadd.f32 1.0, %v2496_v5  ;;  %v2495_v44 = vsel %vm2463_vm0, %v2479_v9, %v2447_v17  ;;  %4069 = vmatpush3.msra.mxu1 %v2716_v7 }
 0x5e5   : > { %2549 = vadd.xlane.f32.xlu0 %v6224_v35  ;;  %2555 = vadd.xlane.f32.xlu1 %v6227_v50  ;;  %v6233_v24 = vmul.f32 %v2509_v33, %v2109_v40  ;;  %v2511_v16 = vadd.f32 1.0, %v2495_v44 }
 0x5e6   : > { %v6236_v14 = vmul.f32 %v2512_v30, %v2112_v41  ;;  %4070 = vmatprep.subr.mxu1 %v2715_v18  ;;  %v2711_v30 = vld [vmem:[#allocation5 + $0x30] sm:$0xff] }
 0x5e7   : > { %v6239_v48 = vmul.f32 %v2511_v16, %v2111_v29  ;;  %4071 = vmatpush3.msra.mxu1 %v2715_v18  ;;  %v2709_v29 = vld [vmem:[#allocation5 + $0x20] sm:$0xff] }
 0x5e8   : > { %4072 = vmatprep.subr.mxu1 %v2714_v8 }
 0x5e9   : > { %2553 = vadd.xlane.f32.xlu0 %v6233_v24  ;;  %2559 = vadd.xlane.f32.xlu1 %v6236_v14 }
 0x5ea   : > { %4073 = vmatpush3.msra.mxu1 %v2714_v8 }
 0x5eb   : > { %4074 = vmatprep.subr.mxu1 %v2713_v59 }
 0x5ec   : > { %4075 = vmatpush3.msra.mxu1 %v2713_v59 }
 0x5ed   : > { %2557 = vadd.xlane.f32.xlu0 %v6239_v48  ;;  %4076 = vmatprep.subr.mxu1 %v2712_v2 }
 0x5ee   : > { %4077 = vmatpush3.msra.mxu1 %v2712_v2 }
 0x5ef   : > { %4078 = vmatprep.subr.mxu1 %v2711_v30 }
 0x5f0   : > { %4079 = vmatpush3.msra.mxu1 %v2711_v30 }
 0x636   : > { %v2532_v13 = vpop.xlane.xlu1 %2531 }
 0x637   : > { %v2562_v46 = vmul.f32 0.0078125, %v2532_v13 }
 0x639   : > { %v6244_v11 = vsub.f32 %v6998_v37, %v2562_v46 }
 0x63b   : > { %v2594_v0 = vmul.f32 %v6244_v11, %v6244_v11 }
 0x63c   : > { %v2530_v6 = vpop.xlane.xlu0 %2529 }
 0x63d   : > { %v2561_v21 = vmul.f32 0.0078125, %v2530_v6  ;;  %2611 = vadd.xlane.f32.xlu1 %v2594_v0 }
 0x63f   : > { %v6249_v45 = vsub.f32 %v6999_v56, %v2561_v21 }
 0x641   : > { %v2593_v60 = vmul.f32 %v6249_v45, %v6249_v45 }
 0x643   : > { %2609 = vadd.xlane.f32.xlu0 %v2593_v60 }
 0x647   : > { %v2536_v38 = vpop.xlane.xlu1 %2535 }
 0x648   : > { %v2564_v63 = vmul.f32 0.0078125, %v2536_v38 }
 0x64a   : > { %v6254_v23 = vsub.f32 %v6116_v61, %v2564_v63 }
 0x64c   : > { %v2596_v55 = vmul.f32 %v6254_v23, %v6254_v23 }
 0x64e   : > { %v2534_v42 = vpop.xlane.xlu0 %2533  ;;  %2615 = vadd.xlane.f32.xlu1 %v2596_v55 }
 0x64f   : > { %v2563_v1 = vmul.f32 0.0078125, %v2534_v42 }
 0x650   : > { %v2540_v39 = vpop.xlane.xlu1 %2539 }
 0x651   : > { %v6259_v52 = vsub.f32 %v6139_v32, %v2563_v1  ;;  %v2566_v15 = vmul.f32 0.0078125, %v2540_v39  ;;  %v2705_v39 = vld [vmem:[#allocation5] sm:$0xff] }
 0x653   : > { %v2538_v27 = vpop.xlane.xlu0 %2537  ;;  %v6262_v61 = vsub.f32 %v6147_v43, %v2566_v15  ;;  %v2595_v49 = vmul.f32 %v6259_v52, %v6259_v52 }
 0x654   : > { %v2565_v26 = vmul.f32 0.0078125, %v2538_v27  ;;  %v2544_v10 = vpop.xlane.xlu1 %2543 }
 0x655   : > { %v2568_v58 = vmul.f32 0.0078125, %v2544_v10  ;;  %2613 = vadd.xlane.f32.xlu0 %v2595_v49  ;;  %v2598_v32 = vmul.f32 %v6262_v61, %v6262_v61 }
 0x656   : > { %v6267_v34 = vsub.f32 %v6155_v4, %v2565_v26 }
 0x657   : > { %v2542_v19 = vpop.xlane.xlu0 %2541  ;;  %v6272_v17 = vsub.f32 %v6162_v51, %v2568_v58  ;;  %2619 = vadd.xlane.f32.xlu1 %v2598_v32 }
 0x658   : > { %v2567_v43 = vmul.f32 0.0078125, %v2542_v19  ;;  %v2597_v25 = vmul.f32 %v6267_v34, %v6267_v34  ;;  %v2548_v40 = vpop.xlane.xlu1 %2547 }
 0x659   : > { %v2570_v4 = vmul.f32 0.0078125, %v2548_v40  ;;  %v2600_v57 = vmul.f32 %v6272_v17, %v6272_v17 }
 0x65a   : > { %v6277_v31 = vsub.f32 %v6167_v12, %v2567_v43  ;;  %2617 = vadd.xlane.f32.xlu0 %v2597_v25 }
 0x65b   : > { %v2546_v54 = vpop.xlane.xlu0 %2545  ;;  %v6282_v33 = vsub.f32 %v6182_v22, %v2570_v4  ;;  %2623 = vadd.xlane.f32.xlu1 %v2600_v57 }
 0x65c   : > { %v2569_v51 = vmul.f32 0.0078125, %v2546_v54  ;;  %v2599_v9 = vmul.f32 %v6277_v31, %v6277_v31 }
 0x65d   : > { %v2602_v12 = vmul.f32 %v6282_v33, %v6282_v33 }
 0x65e   : > { %v6287_v5 = vsub.f32 %v6188_v28, %v2569_v51  ;;  %2621 = vadd.xlane.f32.xlu0 %v2599_v9  ;;  %v2710_v28 = vld [vmem:[#allocation5 + $0x28] sm:$0xff] }
 0x65f   : > { %2627 = vadd.xlane.f32.xlu1 %v2602_v12  ;;  %4080 = vmatprep.subr.mxu1 %v2710_v28 }
 0x660   : > { %v2601_v22 = vmul.f32 %v6287_v5, %v6287_v5  ;;  %4081 = vmatpush3.msra.mxu1 %v2710_v28 }
 0x661   : > { %4082 = vmatprep.subr.mxu1 %v2709_v29 }
 0x662   : > { %2625 = vadd.xlane.f32.xlu0 %v2601_v22  ;;  %4083 = vmatpush3.msra.mxu1 %v2709_v29 }
 0x663   : > { %4084 = vmatprep.subr.mxu1 %v2708_v53 }
 0x664   : > { %4085 = vmatpush3.msra.mxu1 %v2708_v53 }
 0x665   : > { %v2552_v41 = vpop.xlane.xlu1 %2551  ;;  %4086 = vmatprep.subr.mxu1 %v2707_v62 }
 0x666   : > { %v2572_v44 = vmul.f32 0.0078125, %v2552_v41  ;;  %4087 = vmatpush3.msra.mxu1 %v2707_v62 }
 0x668   : > { %v6294_v20 = vsub.f32 %v6211_v36, %v2572_v44  ;;  %v2706_v36 = vld [vmem:[#allocation5 + $0x8] sm:$0xff] }
 0x669   : > { %4088 = vmatprep.subr.mxu1 %v2706_v36 }
 0x66a   : > { %v2604_v16 = vmul.f32 %v6294_v20, %v6294_v20  ;;  %4089 = vmatpush3.msra.mxu1 %v2706_v36 }
 0x66b   : > { %4090 = vmatprep.subr.mxu1 %v2705_v39 }
 0x66c   : > { %2631 = vadd.xlane.f32.xlu1 %v2604_v16  ;;  %4091 = vmatpush3.msra.mxu1 %v2705_v39 }
 0x66e   : > { %v2550_v47 = vpop.xlane.xlu0 %2549  ;;  %v2556_v7 = vpop.xlane.xlu1 %2555 }
 0x66f   : > { %v2571_v3 = vmul.f32 0.0078125, %v2550_v47  ;;  %v2574_v13 = vmul.f32 0.0078125, %v2556_v7 }
 0x671   : > { %v6299_v46 = vsub.f32 %v6224_v35, %v2571_v3  ;;  %v6302_v37 = vsub.f32 %v6227_v50, %v2574_v13 }
 0x672   : > { %v2554_v0 = vpop.xlane.xlu0 %2553  ;;  %v2560_v21 = vpop.xlane.xlu1 %2559 }
 0x673   : > { %v2573_v6 = vmul.f32 0.0078125, %v2554_v0  ;;  %v2603_v56 = vmul.f32 %v6299_v46, %v6299_v46  ;;  %v2576_v60 = vmul.f32 0.0078125, %v2560_v21  ;;  %v2606_v38 = vmul.f32 %v6302_v37, %v6302_v37 }
 0x675   : > { %v6309_v63 = vsub.f32 %v6233_v24, %v2573_v6  ;;  %2629 = vadd.xlane.f32.xlu0 %v2603_v56  ;;  %v6312_v35 = vsub.f32 %v6236_v14, %v2576_v60  ;;  %2635 = vadd.xlane.f32.xlu1 %v2606_v38 }
 0x676   : > { %v2558_v50 = vpop.xlane.xlu0 %2557 }
 0x677   : > { %v2575_v18 = vmul.f32 0.0078125, %v2558_v50  ;;  %v2605_v55 = vmul.f32 %v6309_v63, %v6309_v63  ;;  %v2608_v42 = vmul.f32 %v6312_v35, %v6312_v35 }
 0x679   : > { %v6319_v1 = vsub.f32 %v6239_v48, %v2575_v18  ;;  %2633 = vadd.xlane.f32.xlu0 %v2605_v55  ;;  %2639 = vadd.xlane.f32.xlu1 %v2608_v42 }
 0x67b   : > { %v2607_v24 = vmul.f32 %v6319_v1, %v6319_v1 }
 0x67d   : > { %2637 = vadd.xlane.f32.xlu0 %v2607_v24 }
 0x6c6   : > { %v2612_v14 = vpop.xlane.xlu1 %2611 }
 0x6c7   : > { %v2642_v15 = vmul.f32 0.0078125, %v2612_v14 }
 0x6c9   : > { %v2658_v8 = vadd.f32 1e-05, %v2642_v15 }
 0x6cb   : > { %4440 = vrsqrt.f32 %v2658_v8 }
 0x6cc   : > { %v2610_v27 = vpop.xlane.xlu0 %2609 }
 0x6cd   : > { %v2641_v26 = vmul.f32 0.0078125, %v2610_v27 }
 0x6cf   : > { %v2657_v49 = vadd.f32 1e-05, %v2641_v26 }
 0x6d1   : > { %4442 = vrsqrt.f32 %v2657_v49 }
 0x6d7   : > { %v2616_v10 = vpop.xlane.xlu1 %2615 }
 0x6d8   : > { %v2644_v48 = vmul.f32 0.0078125, %v2616_v10  ;;  %v4441_v58 = vpop.eup %4440 }
 0x6d9   : > { %v2690_v57 = vmul.f32 %v4441_v58, %v6244_v11 }
 0x6da   : > { %v2660_v19 = vadd.f32 1e-05, %v2644_v48 }
 0x6dc   : > { %4444 = vrsqrt.f32 %v2660_v19 }
 0x6de   : > { %v4443_v32 = vpop.eup %4442  ;;  %v2614_v43 = vpop.xlane.xlu0 %2613 }
 0x6df   : > { %v2643_v25 = vmul.f32 0.0078125, %v2614_v43  ;;  %v2689_v40 = vmul.f32 %v4443_v32, %v6249_v45 }
 0x6e0   : > { %v2620_v4 = vpop.xlane.xlu1 %2619 }
 0x6e1   : > { %v2659_v54 = vadd.f32 1e-05, %v2643_v25  ;;  %v2646_v51 = vmul.f32 0.0078125, %v2620_v4  ;;  %4092 = vmatprep.mubr.f32.mxu1 %v2689_v40 }
 0x6e2   : > { %4093 = vmatmul.mubr.f32.vlgmr.msra.gmra.mxu1 %v2690_v57 }
 0x6e3   : > { %v2618_v9 = vpop.xlane.xlu0 %2617  ;;  %4446 = vrsqrt.f32 %v2659_v54  ;;  %v2662_v59 = vadd.f32 1e-05, %v2646_v51 }
 0x6e4   : > { %v2645_v12 = vmul.f32 0.0078125, %v2618_v9  ;;  %v2624_v22 = vpop.xlane.xlu1 %2623 }
 0x6e5   : > { %v2648_v41 = vmul.f32 0.0078125, %v2624_v22  ;;  %4448 = vrsqrt.f32 %v2662_v59 }
 0x6e6   : > { %v2661_v2 = vadd.f32 1e-05, %v2645_v12 }
 0x6e7   : > { %v2622_v30 = vpop.xlane.xlu0 %2621  ;;  %v2664_v44 = vadd.f32 1e-05, %v2648_v41 }
 0x6e8   : > { %4450 = vrsqrt.f32 %v2661_v2  ;;  %v2647_v45 = vmul.f32 0.0078125, %v2622_v30  ;;  %v2628_v28 = vpop.xlane.xlu1 %2627 }
 0x6e9   : > { %v2650_v11 = vmul.f32 0.0078125, %v2628_v28  ;;  %4452 = vrsqrt.f32 %v2664_v44  ;;  %v4445_v3 = vpop.eup %4444 }
 0x6ea   : > { %v2663_v29 = vadd.f32 1e-05, %v2647_v45  ;;  %v2692_v36 = vmul.f32 %v4445_v3, %v6254_v23 }
 0x6eb   : > { %v2626_v16 = vpop.xlane.xlu0 %2625  ;;  %v2666_v53 = vadd.f32 1e-05, %v2650_v11 }
 0x6ec   : > { %4454 = vrsqrt.f32 %v2663_v29  ;;  %v2649_v47 = vmul.f32 0.0078125, %v2626_v16 }
 0x6ed   : > { %4456 = vrsqrt.f32 %v2666_v53 }
 0x6ee   : > { %v2665_v62 = vadd.f32 1e-05, %v2649_v47 }
 0x6f0   : > { %4458 = vrsqrt.f32 %v2665_v62  ;;  %v4447_v7 = vpop.eup %4446 }
 0x6f1   : > { %v2691_v13 = vmul.f32 %v4447_v7, %v6259_v52 }
 0x6f2   : > { %v4449_v0 = vpop.eup %4448 }
 0x6f3   : > { %4095 = vmatprep.mubr.f32.mxu1 %v2691_v13  ;;  %v2694_v60 = vmul.f32 %v4449_v0, %v6262_v61 }
 0x6f4   : > { %4096 = vmatmul.mubr.f32.gmra.mxu1 %v2692_v36 }
 0x6f5   : > { %v4451_v6 = vpop.eup %4450  ;;  %v2632_v56 = vpop.xlane.xlu1 %2631 }
 0x6f6   : > { %v2693_v21 = vmul.f32 %v4451_v6, %v6267_v34  ;;  %v4453_v38 = vpop.eup %4452  ;;  %v2652_v18 = vmul.f32 0.0078125, %v2632_v56 }
 0x6f7   : > { %v2696_v52 = vmul.f32 %v4453_v38, %v6272_v17 }
 0x6f8   : > { %4098 = vmatprep.mubr.f32.mxu1 %v2693_v21  ;;  %v2668_v24 = vadd.f32 1e-05, %v2652_v18 }
 0x6f9   : > { %v4455_v50 = vpop.eup %4454  ;;  %4099 = vmatmul.mubr.f32.gmra.mxu1 %v2694_v60 }
 0x6fa   : > { %v2695_v55 = vmul.f32 %v4455_v50, %v6277_v31  ;;  %v4457_v42 = vpop.eup %4456  ;;  %4460 = vrsqrt.f32 %v2668_v24 }
 0x6fb   : > { %v2698_v61 = vmul.f32 %v4457_v42, %v6282_v33 }
 0x6fc   : > { %4101 = vmatprep.mubr.f32.mxu1 %v2695_v55 }
 0x6fd   : > { %v4459_v23 = vpop.eup %4458  ;;  %4102 = vmatmul.mubr.f32.gmra.mxu1 %v2696_v52 }
 0x6fe   : > { %v2630_v39 = vpop.xlane.xlu0 %2629  ;;  %v2697_v34 = vmul.f32 %v4459_v23, %v6287_v5  ;;  %v2636_v15 = vpop.xlane.xlu1 %2635 }
 0x6ff   : > { %v2651_v14 = vmul.f32 0.0078125, %v2630_v39  ;;  %v2654_v8 = vmul.f32 0.0078125, %v2636_v15 }
 0x700   : > { %4104 = vmatprep.mubr.f32.mxu1 %v2697_v34 }
 0x701   : > { %v2667_v27 = vadd.f32 1e-05, %v2651_v14  ;;  %4105 = vmatmul.mubr.f32.gmra.mxu1 %v2698_v61  ;;  %v2670_v31 = vadd.f32 1e-05, %v2654_v8 }
 0x702   : > { %v2634_v26 = vpop.xlane.xlu0 %2633  ;;  %v2640_v49 = vpop.xlane.xlu1 %2639 }
 0x703   : > { %4462 = vrsqrt.f32 %v2667_v27  ;;  %v2653_v17 = vmul.f32 0.0078125, %v2634_v26  ;;  %v2656_v10 = vmul.f32 0.0078125, %v2640_v49 }
 0x704   : > { %4464 = vrsqrt.f32 %v2670_v31 }
 0x705   : > { %v2669_v48 = vadd.f32 1e-05, %v2653_v17  ;;  %v2672_v58 = vadd.f32 1e-05, %v2656_v10 }
 0x706   : > { %v2638_v32 = vpop.xlane.xlu0 %2637 }
 0x707   : > { %4466 = vrsqrt.f32 %v2669_v48  ;;  %v2655_v5 = vmul.f32 0.0078125, %v2638_v32  ;;  %v4461_v33 = vpop.eup %4460 }
 0x708   : > { %4468 = vrsqrt.f32 %v2672_v58  ;;  %v2700_v40 = vmul.f32 %v4461_v33, %v6294_v20  ;;  %v6342_v20 = vld [vmem:[%s6871_s5 + $0x3] ss:$0 sm:$0xff] }
 0x709   : > { %v2671_v19 = vadd.f32 1e-05, %v2655_v5 }
 0x70b   : > { %4470 = vrsqrt.f32 %v2671_v19 }
 0x710   : > { %v4463_v43 = vpop.eup %4462 }
 0x711   : > { %v2699_v25 = vmul.f32 %v4463_v43, %v6299_v46  ;;  %v4465_v4 = vpop.eup %4464 }
 0x712   : > { %v2702_v51 = vmul.f32 %v4465_v4, %v6302_v37 }
 0x713   : > { %4107 = vmatprep.mubr.f32.mxu1 %v2699_v25 }
 0x714   : > { %v4467_v57 = vpop.eup %4466  ;;  %4108 = vmatmul.mubr.f32.gmra.mxu1 %v2700_v40 }
 0x715   : > { %v2701_v54 = vmul.f32 %v4467_v57, %v6309_v63  ;;  %v4469_v9 = vpop.eup %4468 }
 0x716   : > { %v2704_v22 = vmul.f32 %v4469_v9, %v6312_v35 }
 0x717   : > { %4110 = vmatprep.mubr.f32.mxu1 %v2701_v54 }
 0x718   : > { %v4471_v59 = vpop.eup %4470  ;;  %4111 = vmatmul.mubr.f32.gmra.mxu1 %v2702_v51 }
 0x719   : > { %v2703_v12 = vmul.f32 %v4471_v59, %v6319_v1 }
 0x71b   : > { %4113 = vmatprep.mubr.f32.mxu1 %v2703_v12 }
 0x71c   : > { %4114 = vmatmul.mubr.f32.gmra.mxu1 %v2704_v22 }
 0x7a2   : > { %v4094_v46 = vpop.f32.mrf.mxu1 }
 0x7a3   : > { %v6345_v63 = vadd.f32 %v4094_v46, %v6342_v20 }
 0x7a4   : > { %v2791_v2 = vpop.f32.mrf.mxu1 }
 0x7a5   : > { %7000 = vst [vmem:[#allocation11_spill] sm:$0xff] %v6345_v63  ;;  %v6348_v37 = vmul.f32 0.70710677, %v6345_v63  ;;  %v6352_v35 = vadd.f32 %v6342_v20, %v2791_v2 }
 0x7a7   : > { %7001 = vst [vmem:[#allocation13_spill] sm:$0xff] %v6348_v37  ;;  %v2903_v41 = vand.u32 2147483647, %v6348_v37  ;;  %7002 = vst [vmem:[#allocation19_spill] sm:$0xff] %v6352_v35  ;;  %v6364_v16 = vmul.f32 0.70710677, %v6352_v35 }
 0x7a9   : > { %v2919_v45 = vmul.f32 0.3275911, %v2903_v41  ;;  %7006 = vst [vmem:[#allocation15_spill] sm:$0xff] %v6364_v16  ;;  %v3127_v13 = vmul.f32 %v2903_v41, %v2903_v41  ;;  %v2902_v0 = vand.u32 2147483647, %v6364_v16 }
 0x7ab   : > { %v2935_v3 = vadd.f32 1.0, %v2919_v45  ;;  %v3143_v50 = vsub.f32 0.0, %v3127_v13  ;;  %v3126_v55 = vmul.f32 %v2902_v0, %v2902_v0  ;;  %v2918_v23 = vmul.f32 0.3275911, %v2902_v0 }
 0x7ad   : > { %4472 = vrcp.f32 %v2935_v3  ;;  %v3160_v15 = vmul.f32 1.442695, %v3143_v50  ;;  %v3142_v27 = vsub.f32 0.0, %v3126_v55  ;;  %v2934_v48 = vadd.f32 1.0, %v2918_v23 }
 0x7af   : > { %v3158_v25 = vmul.f32 1.442695, %v3142_v27 }
 0x7b4   : > { %v4097_v1 = vpop.f32.mrf.mxu1 }
 0x7b5   : > { %v6355_v30 = vadd.f32 %v4097_v1, %v6342_v20 }
 0x7b6   : > { %v2801_v44 = vpop.f32.mrf.mxu1 }
 0x7b7   : > { %7003 = vst [vmem:[#allocation12_spill] sm:$0xff] %v6355_v30  ;;  %v6358_v28 = vmul.f32 0.70710677, %v6355_v30  ;;  %v6361_v29 = vadd.f32 %v6342_v20, %v2801_v44 }
 0x7b9   : > { %7004 = vst [vmem:[#allocation10_spill] sm:$0xff] %v6358_v28  ;;  %7005 = vst [vmem:[#allocation17_spill] sm:$0xff] %v6361_v29  ;;  %v4100_v11 = vpop.f32.mrf.mxu1  ;;  %v2905_v53 = vand.u32 2147483647, %v6358_v28  ;;  %v6371_v7 = vmul.f32 0.70710677, %v6361_v29 }
 0x7ba   : > { %v6368_v47 = vadd.f32 %v4100_v11, %v6342_v20  ;;  %v6412_v22 = vpop.eup %4472 }
 0x7bb   : > { %v2811_v62 = vpop.f32.mrf.mxu1  ;;  %7008 = vst [vmem:[#allocation14_spill] sm:$0xff] %v6371_v7  ;;  %v2921_v6 = vmul.f32 0.3275911, %v2905_v53  ;;  %v2904_v60 = vand.u32 2147483647, %v6371_v7  ;;  %v3129_v31 = vmul.f32 %v2905_v53, %v2905_v53  ;;  %7017 = vst [vmem:[#allocation26_spill] sm:$0xff] %v6412_v22 }
 0x7bc   : > { %7007 = vst [vmem:[#allocation21_spill] sm:$0xff] %v6368_v47  ;;  %v6375_v21 = vmul.f32 0.70710677, %v6368_v47  ;;  %v6379_v38 = vadd.f32 %v6342_v20, %v2811_v62 }
 0x7bd   : > { %v4103_v36 = vpop.f32.mrf.mxu1  ;;  %v2937_v52 = vadd.f32 1.0, %v2921_v6  ;;  %v2920_v39 = vmul.f32 0.3275911, %v2904_v60  ;;  %v3128_v17 = vmul.f32 %v2904_v60, %v2904_v60  ;;  %v3145_v40 = vsub.f32 0.0, %v3129_v31 }
 0x7be   : > { %7009 = vst [vmem:[#allocation18_spill] sm:$0xff] %v6375_v21  ;;  %7010 = vst [vmem:[#allocation16_spill] sm:$0xff] %v6379_v38  ;;  %v6382_v42 = vadd.f32 %v4103_v36, %v6342_v20  ;;  %v2907_v24 = vand.u32 2147483647, %v6375_v21  ;;  %v6386_v34 = vmul.f32 0.70710677, %v6379_v38 }
 0x7bf   : > { %v2821_v56 = vpop.f32.mrf.mxu1  ;;  %4474 = vrcp.f32 %v2937_v52  ;;  %v2936_v58 = vadd.f32 1.0, %v2920_v39  ;;  %v3144_v4 = vsub.f32 0.0, %v3128_v17  ;;  %v3164_v1 = vmul.f32 1.442695, %v3145_v40 }
 0x7c0   : > { %7011 = vst [vmem:[#allocation23_spill] sm:$0xff] %v6382_v42  ;;  %7012 = vst [vmem:[#allocation22_spill] sm:$0xff] %v6386_v34  ;;  %v6389_v14 = vmul.f32 0.70710677, %v6382_v42  ;;  %v6392_v61 = vadd.f32 %v6342_v20, %v2821_v56  ;;  %v2923_v49 = vmul.f32 0.3275911, %v2907_v24  ;;  %4476 = vpow2.f32 %v3160_v15 }
 0x7c1   : > { %v4106_v18 = vpop.f32.mrf.mxu1  ;;  %v2906_v32 = vand.u32 2147483647, %v6386_v34  ;;  %v3131_v54 = vmul.f32 %v2907_v24, %v2907_v24  ;;  %4478 = vrcp.f32 %v2936_v58  ;;  %v3162_v11 = vmul.f32 1.442695, %v3144_v4 }
 0x7c2   : > { %7013 = vst [vmem:[#allocation9_spill] sm:$0xff] %v6392_v61  ;;  %v2909_v26 = vand.u32 2147483647, %v6389_v14  ;;  %v6396_v10 = vadd.f32 %v4106_v18, %v6342_v20  ;;  %v6403_v33 = vmul.f32 0.70710677, %v6392_v61  ;;  %v2939_v57 = vadd.f32 1.0, %v2923_v49 }
 0x7c3   : > { %v2831_v8 = vpop.f32.mrf.mxu1  ;;  %v2922_v9 = vmul.f32 0.3275911, %v2906_v32  ;;  %v3130_v59 = vmul.f32 %v2906_v32, %v2906_v32  ;;  %4480 = vrcp.f32 %v2934_v48  ;;  %v3147_v53 = vsub.f32 0.0, %v3131_v54 }
 0x7c4   : > { %7014 = vst [vmem:[#allocation20_spill] sm:$0xff] %v6396_v10  ;;  %v6400_v5 = vadd.f32 %v6342_v20, %v2831_v8  ;;  %v2925_v19 = vmul.f32 0.3275911, %v2909_v26  ;;  %7016 = vst [vmem:[#allocation25_spill] sm:$0xff] %v6403_v33  ;;  %v6406_v43 = vmul.f32 0.70710677, %v6396_v10  ;;  %4482 = vpow2.f32 %v3158_v25 }
 0x7c5   : > { %v2908_v2 = vand.u32 2147483647, %v6403_v33  ;;  %v3133_v44 = vmul.f32 %v2909_v26, %v2909_v26  ;;  %4484 = vrcp.f32 %v2939_v57  ;;  %v2938_v62 = vadd.f32 1.0, %v2922_v9 }
 0x7c6   : > { %7015 = vst [vmem:[#allocation24_spill] sm:$0xff] %v6400_v5  ;;  %v2911_v51 = vand.u32 2147483647, %v6406_v43  ;;  %v6410_v12 = vmul.f32 0.70710677, %v6400_v5  ;;  %v2941_v46 = vadd.f32 1.0, %v2925_v19 }
 0x7c7   : > { %v3146_v3 = vsub.f32 0.0, %v3130_v59  ;;  %v2983_v36 = vmul.f32 1.0614054, %v6412_v22  ;;  %v3132_v0 = vmul.f32 %v2908_v2, %v2908_v2  ;;  %v3149_v56 = vsub.f32 0.0, %v3133_v44 }
 0x7c8   : > { %v2927_v41 = vmul.f32 0.3275911, %v2911_v51  ;;  %v2910_v45 = vand.u32 2147483647, %v6410_v12  ;;  %4486 = vrcp.f32 %v2941_v46  ;;  %v3168_v18 = vmul.f32 1.442695, %v3147_v53 }
 0x7c9   : > { %4488 = vpow2.f32 %v3164_v1  ;;  %v2924_v55 = vmul.f32 0.3275911, %v2908_v2  ;;  %v3166_v52 = vmul.f32 1.442695, %v3146_v3  ;;  %v3750_v24 = vadd.f32 -1.4531521, %v2983_v36 }
 0x7ca   : > { %v2926_v13 = vmul.f32 0.3275911, %v2910_v45  ;;  %v2943_v6 = vadd.f32 1.0, %v2927_v41  ;;  %4490 = vpow2.f32 %v3162_v11  ;;  %v3148_v39 = vsub.f32 0.0, %v3132_v0 }
 0x7cb   : > { %4492 = vrcp.f32 %v2938_v62  ;;  %v3172_v8 = vmul.f32 1.442695, %v3149_v56  ;;  %v3135_v27 = vmul.f32 %v2911_v51, %v2911_v51  ;;  %v2940_v49 = vadd.f32 1.0, %v2924_v55 }
 0x7cc   : > { %v2942_v60 = vadd.f32 1.0, %v2926_v13  ;;  %v6417_v50 = vpop.eup %4474  ;;  %4494 = vrcp.f32 %v2943_v6  ;;  %v3015_v19 = vmul.f32 %v6412_v22, %v3750_v24  ;;  %v3170_v40 = vmul.f32 1.442695, %v3148_v39 }
 0x7cd   : > { %v2985_v26 = vmul.f32 1.0614054, %v6417_v50  ;;  %v6423_v17 = vpop.eup %4476  ;;  %v3134_v4 = vmul.f32 %v2910_v45, %v2910_v45  ;;  %v3151_v9 = vsub.f32 0.0, %v3135_v27  ;;  %vm3231_vm1 = vcmp.lt.f32.partialorder %v6406_v43, 0.0 }
 0x7ce   : > { %4496 = vrcp.f32 %v2942_v60  ;;  %7018 = vst [vmem:[#allocation27_spill] sm:$0xff] %v6423_v17  ;;  %v6432_v25 = vpop.eup %4478  ;;  %v3031_v13 = vadd.f32 1.4214138, %v3015_v19  ;;  %vm3230_vm8 = vcmp.lt.f32.partialorder %v6410_v12, 0.0  ;;  %vm3229_vm9 = vcmp.lt.f32.partialorder %v6389_v14, 0.0  ;;  %v7035_v14 = vld [vmem:[#allocation25_spill] sm:$0xff] }
 0x7cf   : > { %4498 = vpow2.f32 %v3168_v18  ;;  %v3752_v2 = vadd.f32 -1.4531521, %v2985_v26  ;;  %v2984_v3 = vmul.f32 1.0614054, %v6432_v25  ;;  %v3150_v36 = vsub.f32 0.0, %v3134_v4 }
 0x7d0   : > { %4500 = vpow2.f32 %v3166_v52  ;;  %v6438_v51 = vpop.eup %4480  ;;  %v3176_v60 = vmul.f32 1.442695, %v3151_v9  ;;  %v3047_v19 = vmul.f32 %v6412_v22, %v3031_v13  ;;  %vm3228_vm11 = vcmp.lt.f32.partialorder %v7035_v14, 0.0 }
 0x7d1   : > { %4502 = vpow2.f32 %v3172_v8  ;;  %v6443_v41 = vpop.eup %4482  ;;  %v2982_v27 = vmul.f32 1.0614054, %v6438_v51  ;;  %v3174_v4 = vmul.f32 1.442695, %v3150_v36 }
 0x7d2   : > { %7020 = vst [vmem:[#allocation29_spill] sm:$0xff] %v6443_v41  ;;  %4504 = vrcp.f32 %v2940_v49  ;;  %v6446_v45 = vpop.eup %4484  ;;  %v3766_v29 = vadd.f32 -0.28449672, %v3047_v19 }
 0x7d3   : > { %4506 = vpow2.f32 %v3170_v40  ;;  %v2987_v8 = vmul.f32 1.0614054, %v6446_v45 }
 0x7d4   : > { %v4109_v23 = vpop.f32.mrf.mxu1 }
 0x7d5   : > { %v6420_v15 = vadd.f32 %v4109_v23, %v6342_v20  ;;  %v6455_v56 = vpop.eup %4486  ;;  %v3017_v23 = vmul.f32 %v6417_v50, %v3752_v2  ;;  %v3754_v36 = vadd.f32 -1.4531521, %v2987_v8 }
 0x7d6   : > { %v2841_v31 = vpop.f32.mrf.mxu1  ;;  %v6462_v24 = vpop.eup %4488  ;;  %v2989_v2 = vmul.f32 1.0614054, %v6455_v56 }
 0x7d7   : > { %v6426_v48 = vmul.f32 0.70710677, %v6420_v15  ;;  %v6429_v58 = vadd.f32 %v6342_v20, %v2841_v31  ;;  %7021 = vst [vmem:[#allocation30_spill] sm:$0xff] %v6462_v24  ;;  %v6466_v31 = vpop.eup %4490  ;;  %v3033_v35 = vadd.f32 1.4214138, %v3017_v23  ;;  %v6504_v38 = vmul.f32 0.5, %v6420_v15 }
 0x7d8   : > { %v4112_v32 = vpop.f32.mrf.mxu1  ;;  %7022 = vst [vmem:[#allocation31_spill] sm:$0xff] %v6466_v31  ;;  %v6470_v40 = vpop.eup %4492 }
 0x7d9   : > { %7019 = vst [vmem:[#allocation28_spill] sm:$0xff] %v6429_v58  ;;  %v2913_v57 = vand.u32 2147483647, %v6426_v48  ;;  %v6436_v54 = vmul.f32 0.70710677, %v6429_v58  ;;  %v6441_v59 = vadd.f32 %v4112_v32, %v6342_v20  ;;  %7024 = vst [vmem:[#allocation33_spill] sm:$0xff] %v6504_v38 }
 0x7da   : > { %v2851_v46 = vpop.f32.mrf.mxu1  ;;  %v3751_v32 = vadd.f32 -1.4531521, %v2984_v3  ;;  %vm3233_vm3 = vcmp.lt.f32.partialorder %v6426_v48, 0.0 }
 0x7db   : > { %v2929_v1 = vmul.f32 0.3275911, %v2913_v57  ;;  %v2912_v44 = vand.u32 2147483647, %v6436_v54  ;;  %v6449_v11 = vmul.f32 0.70710677, %v6441_v59  ;;  %v6452_v53 = vadd.f32 %v6342_v20, %v2851_v46 }
 0x7dc   : > { %v4115_v62 = vpop.f32.mrf.mxu1  ;;  %vm3232_vm7 = vcmp.lt.f32.partialorder %v6436_v54, 0.0  ;;  %v7027_v54 = vld [vmem:[#allocation26_spill] sm:$0xff] }
 0x7dd   : > { %v2945_v0 = vadd.f32 1.0, %v2929_v1  ;;  %v2928_v6 = vmul.f32 0.3275911, %v2912_v44  ;;  %v2915_v18 = vand.u32 2147483647, %v6449_v11  ;;  %v6473_v9 = vadd.f32 %v4115_v62, %v6342_v20  ;;  %v6479_v1 = vpop.eup %4494 }
 0x7de   : > { %v6459_v55 = vmul.f32 0.70710677, %v6452_v53  ;;  %v2861_v52 = vpop.f32.mrf.mxu1  ;;  %v6481_v3 = vpop.eup %4496  ;;  %v3749_v62 = vadd.f32 -1.4531521, %v2982_v27  ;;  %v2991_v8 = vmul.f32 1.0614054, %v6479_v1 }
 0x7df   : > { %4508 = vrcp.f32 %v2945_v0  ;;  %v2944_v39 = vadd.f32 1.0, %v2928_v6  ;;  %v2931_v26 = vmul.f32 0.3275911, %v2915_v18  ;;  %v6476_v46 = vadd.f32 %v6342_v20, %v2861_v52  ;;  %v6486_v63 = vpop.eup %4498 }
 0x7e0   : > { %v2914_v49 = vand.u32 2147483647, %v6459_v55  ;;  %v6484_v13 = vmul.f32 0.70710677, %v6473_v9  ;;  %v3016_v52 = vmul.f32 %v6432_v25, %v3751_v32  ;;  %v6489_v16 = vpop.eup %4500  ;;  %v2990_v27 = vmul.f32 1.0614054, %v6481_v3 }
 0x7e1   : > { %4510 = vrcp.f32 %v2944_v39  ;;  %v2947_v0 = vadd.f32 1.0, %v2931_v26  ;;  %7023 = vst [vmem:[#allocation32_spill] sm:$0xff] %v6489_v16  ;;  %v6493_v39 = vmul.f32 0.70710677, %v6476_v46  ;;  %v3137_v26 = vmul.f32 %v2913_v57, %v2913_v57 }
 0x7e2   : > { %v2930_v6 = vmul.f32 0.3275911, %v2914_v49  ;;  %4512 = vpow2.f32 %v3176_v60  ;;  %v2917_v23 = vand.u32 2147483647, %v6484_v13  ;;  %v3756_v60 = vadd.f32 -1.4531521, %v2989_v2 }
 0x7e3   : > { %4514 = vrcp.f32 %v2947_v0  ;;  %v2986_v0 = vmul.f32 1.0614054, %v6470_v40  ;;  %v3136_v32 = vmul.f32 %v2912_v44, %v2912_v44  ;;  %v2916_v57 = vand.u32 2147483647, %v6493_v39 }
 0x7e4   : > { %v2946_v20 = vadd.f32 1.0, %v2930_v6  ;;  %4516 = vpow2.f32 %v3174_v4  ;;  %v6498_v6 = vpop.eup %4502  ;;  %v2933_v19 = vmul.f32 0.3275911, %v2917_v23  ;;  %v3049_v4 = vmul.f32 %v6417_v50, %v3033_v35 }
 0x7e5   : > { %v6501_v30 = vpop.eup %4504  ;;  %v3758_v2 = vadd.f32 -1.4531521, %v2991_v8  ;;  %v6508_v7 = vmul.f32 %v6438_v51, %v3749_v62  ;;  %v3139_v37 = vmul.f32 %v2915_v18, %v2915_v18  ;;  %v3757_v61 = vadd.f32 -1.4531521, %v2990_v27 }
 0x7e6   : > { %4518 = vrcp.f32 %v2946_v20  ;;  %v2949_v47 = vadd.f32 1.0, %v2933_v19  ;;  %v3021_v44 = vmul.f32 %v6455_v56, %v3756_v60  ;;  %v6511_v20 = vpop.eup %4506  ;;  %v3153_v34 = vsub.f32 0.0, %v3137_v26 }
 0x7e7   : > { %v2932_v35 = vmul.f32 0.3275911, %v2916_v57  ;;  %v3023_v41 = vmul.f32 %v6479_v1, %v3758_v2  ;;  %v3753_v28 = vadd.f32 -1.4531521, %v2986_v0  ;;  %v3152_v15 = vsub.f32 0.0, %v3136_v32 }
 0x7e8   : > { %v3138_v5 = vmul.f32 %v2914_v49, %v2914_v49  ;;  %4520 = vrcp.f32 %v2949_v47  ;;  %v6514_v33 = vadd.f32 -0.28449672, %v3049_v4  ;;  %v3019_v27 = vmul.f32 %v6446_v45, %v3754_v36 }
 0x7e9   : > { %v2948_v62 = vadd.f32 1.0, %v2932_v35  ;;  %v3039_v18 = vadd.f32 1.4214138, %v3023_v41  ;;  %v6519_v19 = vadd.f32 1.4214138, %v3016_v52  ;;  %v3155_v60 = vsub.f32 0.0, %v3139_v37 }
 0x7ea   : > { %v3022_v42 = vmul.f32 %v6481_v3, %v3757_v61  ;;  %v3037_v2 = vadd.f32 1.4214138, %v3021_v44  ;;  %v3180_v0 = vmul.f32 1.442695, %v3153_v34  ;;  %v2988_v47 = vmul.f32 1.0614054, %v6501_v30 }
 0x7eb   : > { %4522 = vrcp.f32 %v2948_v62  ;;  %v6525_v49 = vmul.f32 %v6412_v22, %v3766_v29  ;;  %v3178_v41 = vmul.f32 1.442695, %v3152_v15  ;;  %v3154_v4 = vsub.f32 0.0, %v3138_v5 }
 0x7ec   : > { %v6516_v8 = vpop.eup %4508  ;;  %v3055_v52 = vmul.f32 %v6479_v1, %v3039_v18  ;;  %v3141_v35 = vmul.f32 %v2917_v23, %v2917_v23  ;;  %v3035_v44 = vadd.f32 1.4214138, %v3019_v27  ;;  %v6534_v34 = vmul.f32 %v6470_v40, %v3753_v28 }
 0x7ed   : > { %v2993_v26 = vmul.f32 1.0614054, %v6516_v8  ;;  %v3184_v29 = vmul.f32 1.442695, %v3155_v60  ;;  %v3038_v17 = vadd.f32 1.4214138, %v3022_v42  ;;  %v3053_v5 = vmul.f32 %v6455_v56, %v3037_v2 }
 0x7ee   : > { %v6527_v32 = vpop.eup %4510  ;;  %4524 = vpow2.f32 %v3180_v0  ;;  %v3182_v27 = vmul.f32 1.442695, %v3154_v4  ;;  %v3774_v28 = vadd.f32 -0.28449672, %v3055_v52  ;;  %v3157_v38 = vsub.f32 0.0, %v3141_v35 }
 0x7ef   : > { %v3760_v36 = vadd.f32 -1.4531521, %v2993_v26  ;;  %v6530_v37 = vpop.eup %4512  ;;  %v2992_v61 = vmul.f32 1.0614054, %v6527_v32  ;;  %v3755_v26 = vadd.f32 -1.4531521, %v2988_v47  ;;  %4526 = vpow2.f32 %v3178_v41 }
 0x7f0   : > { %v6536_v62 = vpop.eup %4514  ;;  %v3140_v60 = vmul.f32 %v2916_v57, %v2916_v57  ;;  %4528 = vpow2.f32 %v3184_v29  ;;  %v3054_v41 = vmul.f32 %v6481_v3, %v3038_v17  ;;  %v3087_v57 = vmul.f32 %v6479_v1, %v3774_v28 }
 0x7f1   : > { %v3025_v21 = vmul.f32 %v6516_v8, %v3760_v36  ;;  %v6540_v15 = vpop.eup %4516  ;;  %v2995_v18 = vmul.f32 1.0614054, %v6536_v62  ;;  %v3759_v23 = vadd.f32 -1.4531521, %v2992_v61  ;;  %v3772_v36 = vadd.f32 -0.28449672, %v3053_v5 }
 0x7f2   : > { %4530 = vpow2.f32 %v3182_v27  ;;  %v3188_v29 = vmul.f32 1.442695, %v3157_v38  ;;  %vm3235_vm2 = vcmp.lt.f32.partialorder %v6449_v11, 0.0  ;;  %vm3237_vm4 = vcmp.lt.f32.partialorder %v6484_v13, 0.0 }
 0x7f3   : > { %v3041_v58 = vadd.f32 1.4214138, %v3025_v21  ;;  %v6543_v31 = vpop.eup %4518  ;;  %v3762_v10 = vadd.f32 -1.4531521, %v2995_v18  ;;  %v3024_v42 = vmul.f32 %v6527_v32, %v3759_v23  ;;  %v3020_v21 = vmul.f32 %v6501_v30, %v3755_v26 }
 0x7f4   : > { %v2994_v2 = vmul.f32 1.0614054, %v6543_v31  ;;  %v3156_v18 = vsub.f32 0.0, %v3140_v60  ;;  %v3085_v26 = vmul.f32 %v6455_v56, %v3772_v36  ;;  %4532 = vpow2.f32 %v3188_v29 }
 0x7f5   : > { %v3057_v0 = vmul.f32 %v6516_v8, %v3041_v58  ;;  %v3027_v61 = vmul.f32 %v6536_v62, %v3762_v10  ;;  %v3040_v47 = vadd.f32 1.4214138, %v3024_v42  ;;  %v6552_v35 = vpop.eup %4520  ;;  %v3036_v28 = vadd.f32 1.4214138, %v3020_v21 }
 0x7f6   : > { %v3761_v4 = vadd.f32 -1.4531521, %v2994_v2  ;;  %v2997_v5 = vmul.f32 1.0614054, %v6552_v35  ;;  %v3773_v2 = vadd.f32 -0.28449672, %v3054_v41 }
 0x7f7   : > { %v3776_v52 = vadd.f32 -0.28449672, %v3057_v0  ;;  %v3043_v23 = vadd.f32 1.4214138, %v3027_v61  ;;  %v3056_v58 = vmul.f32 %v6527_v32, %v3040_v47  ;;  %v3103_v61 = vadd.f32 0.2548296, %v3087_v57 }
 0x7f8   : > { %v3026_v10 = vmul.f32 %v6543_v31, %v3761_v4  ;;  %v6560_v0 = vpop.eup %4522  ;;  %v3764_v38 = vadd.f32 -1.4531521, %v2997_v5  ;;  %v3051_v47 = vmul.f32 %v6446_v45, %v3035_v44  ;;  %v3186_v22 = vmul.f32 1.442695, %v3156_v18 }
 0x7f9   : > { %v3089_v17 = vmul.f32 %v6516_v8, %v3776_v52  ;;  %v3059_v27 = vmul.f32 %v6536_v62, %v3043_v23  ;;  %v3775_v42 = vadd.f32 -0.28449672, %v3056_v58  ;;  %v2996_v4 = vmul.f32 1.0614054, %v6560_v0 }
 0x7fa   : > { %v3042_v60 = vadd.f32 1.4214138, %v3026_v10  ;;  %v3029_v52 = vmul.f32 %v6552_v35, %v3764_v38  ;;  %v3101_v58 = vadd.f32 0.2548296, %v3085_v26  ;;  %v3086_v57 = vmul.f32 %v6481_v3, %v3773_v2 }
 0x7fb   : > { %v3778_v24 = vadd.f32 -0.28449672, %v3059_v27  ;;  %v3105_v23 = vadd.f32 0.2548296, %v3089_v17  ;;  %v3763_v41 = vadd.f32 -1.4531521, %v2996_v4  ;;  %v3088_v5 = vmul.f32 %v6527_v32, %v3775_v42  ;;  %v4525_v10 = vpop.eup %4524 }
 0x7fc   : > { %v3058_v36 = vmul.f32 %v6543_v31, %v3042_v60  ;;  %v3045_v44 = vadd.f32 1.4214138, %v3029_v52  ;;  %v3119_v18 = vmul.f32 %v6479_v1, %v3103_v61  ;;  %v3052_v27 = vmul.f32 %v6501_v30, %v3036_v28  ;;  %v4527_v16 = vpop.eup %4526 }
 0x7fd   : > { %v3091_v21 = vmul.f32 %v6536_v62, %v3778_v24  ;;  %4534 = vpow2.f32 %v3186_v22  ;;  %v3028_v38 = vmul.f32 %v6560_v0, %v3763_v41  ;;  %v3770_v26 = vadd.f32 -0.28449672, %v3051_v47  ;;  %v4529_v4 = vpop.eup %4528 }
 0x7fe   : > { %v3777_v29 = vadd.f32 -0.28449672, %v3058_v36  ;;  %v3061_v60 = vmul.f32 %v6552_v35, %v3045_v44  ;;  %v3121_v42 = vmul.f32 %v6516_v8, %v3105_v23  ;;  %v3117_v2 = vmul.f32 %v6455_v56, %v3101_v58 }
 0x7ff   : > { %v3107_v17 = vadd.f32 0.2548296, %v3091_v21  ;;  %v3044_v52 = vadd.f32 1.4214138, %v3028_v38  ;;  %v3104_v61 = vadd.f32 0.2548296, %v3088_v5  ;;  %v6578_v41 = vmul.f32 %v6530_v37, %v3119_v18  ;;  %v4531_v21 = vpop.eup %4530 }
 0x800   : > { %v3090_v24 = vmul.f32 %v6543_v31, %v3777_v29  ;;  %v3102_v28 = vadd.f32 0.2548296, %v3086_v57  ;;  %v3780_v36 = vadd.f32 -0.28449672, %v3061_v60  ;;  %v3771_v47 = vadd.f32 -0.28449672, %v3052_v27 }
 0x801   : > { %v3123_v1 = vmul.f32 %v6536_v62, %v3107_v17  ;;  %v6581_v44 = vmul.f32 0.5, %v6441_v59  ;;  %v6584_v8 = vmul.f32 0.5, %v6452_v53  ;;  %v3060_v56 = vmul.f32 %v6560_v0, %v3044_v52  ;;  %v4533_v17 = vpop.eup %4532 }
 0x802   : > { %v3106_v22 = vadd.f32 0.2548296, %v3090_v24  ;;  %v3093_v62 = vmul.f32 %v6552_v35, %v3780_v36  ;;  %v3201_v5 = vmul.f32 %v4525_v10, %v3121_v42  ;;  %v6590_v57 = vmul.f32 %v6498_v6, %v3117_v2 }
 0x803   : > { %v3203_v23 = vmul.f32 %v4529_v4, %v3123_v1  ;;  %v3779_v37 = vadd.f32 -0.28449672, %v3060_v56  ;;  %v3120_v29 = vmul.f32 %v6527_v32, %v3104_v61  ;;  %v3118_v59 = vmul.f32 %v6481_v3, %v3102_v28 }
 0x804   : > { %v3122_v58 = vmul.f32 %v6543_v31, %v3106_v22  ;;  %v3083_v18 = vmul.f32 %v6446_v45, %v3770_v26  ;;  %v2885_v53 = vmul.f32 0.5, %v6473_v9  ;;  %v3109_v27 = vadd.f32 0.2548296, %v3093_v62 }
 0x805   : > { %v3215_v31 = vsub.f32 1.0, %v6578_v41  ;;  %v3084_v10 = vmul.f32 %v6501_v30, %v3771_v47  ;;  %v6602_v6 = vmul.f32 0.5, %v6476_v46  ;;  %v3092_v3 = vmul.f32 %v6560_v0, %v3779_v37 }
 0x806   : > { %v3219_v32 = vsub.f32 1.0, %v3203_v23  ;;  %v3202_v38 = vmul.f32 %v4531_v21, %v3122_v58  ;;  %v3125_v26 = vmul.f32 %v6552_v35, %v3109_v27  ;;  %v3217_v9 = vsub.f32 1.0, %v3201_v5 }
 0x807   : > { %v3213_v60 = vsub.f32 1.0, %v6590_v57  ;;  %v3108_v24 = vadd.f32 0.2548296, %v3092_v3  ;;  %v3200_v42 = vmul.f32 %v4527_v16, %v3120_v29  ;;  %v6609_v2 = vmul.f32 %v6540_v15, %v3118_v59  ;;  %v7034_v57 = vld [vmem:[#allocation23_spill] sm:$0xff] }
 0x808   : > { %v3099_v4 = vadd.f32 0.2548296, %v3083_v18  ;;  %vm3234_vm5 = vcmp.lt.f32.partialorder %v6459_v55, 0.0  ;;  %vm3236_vm6 = vcmp.lt.f32.partialorder %v6493_v39, 0.0  ;;  %v3205_v46 = vmul.f32 %v4533_v17, %v3125_v26 }
 0x809   : > { %v3247_v52 = vsub.f32 0.0, %v3215_v31  ;;  %v3100_v1 = vadd.f32 0.2548296, %v3084_v10  ;;  %v3124_v61 = vmul.f32 %v6560_v0, %v3108_v24  ;;  %v3251_v28 = vsub.f32 0.0, %v3219_v32 }
 0x80a   : > { %v3218_v35 = vsub.f32 1.0, %v3202_v38  ;;  %v3034_v36 = vadd.f32 1.4214138, %v6534_v34  ;;  %v4535_v22 = vpop.eup %4534  ;;  %v3221_v41 = vsub.f32 1.0, %v3205_v46  ;;  %v3249_v16 = vsub.f32 0.0, %v3217_v9 }
 0x80b   : > { %v6617_v15 = vsub.f32 0.0, %v3213_v60  ;;  %v3081_v47 = vmul.f32 %v6417_v50, %v6514_v33  ;;  %v3204_v21 = vmul.f32 %v4535_v22, %v3124_v61  ;;  %v3216_v56 = vsub.f32 1.0, %v3200_v42 }
 0x80c   : > { %v3214_v0 = vsub.f32 1.0, %v6609_v2  ;;  %v3115_v23 = vmul.f32 %v6446_v45, %v3099_v4  ;;  %v3253_v62 = vsub.f32 0.0, %v3221_v41  ;;  %v3116_v34 = vmul.f32 %v6501_v30, %v3100_v1 }
 0x80d   : > { %v3050_v58 = vmul.f32 %v6470_v40, %v3034_v36  ;;  %v3048_v5 = vmul.f32 %v6432_v25, %v6519_v19  ;;  %v3220_v37 = vsub.f32 1.0, %v3204_v21  ;;  %v3267_v33 = vsel %vm3235_vm2, %v3251_v28, %v3219_v32  ;;  %v7029_v21 = vld [vmem:[#allocation33_spill] sm:$0xff] }
 0x80e   : > { %v3250_v29 = vsub.f32 0.0, %v3218_v35  ;;  %v3263_v59 = vsel %vm3231_vm1, %v3247_v52, %v3215_v31  ;;  %v3269_v45 = vsel %vm3237_vm4, %v3253_v62, %v3221_v41  ;;  %v3265_v30 = vsel %vm3233_vm3, %v3249_v16, %v3217_v9  ;;  %v7028_v41 = vld [vmem:[#allocation20_spill] sm:$0xff] }
 0x80f   : > { %v3769_v18 = vadd.f32 -0.28449672, %v3050_v58  ;;  %v3097_v27 = vadd.f32 0.2548296, %v3081_v47  ;;  %v3285_v19 = vadd.f32 1.0, %v3269_v45  ;;  %v3252_v10 = vsub.f32 0.0, %v3220_v37 }
 0x810   : > { %v3248_v11 = vsub.f32 0.0, %v3216_v56  ;;  %v3767_v3 = vadd.f32 -0.28449672, %v3048_v5  ;;  %v3283_v32 = vadd.f32 1.0, %v3267_v33  ;;  %v3196_v43 = vmul.f32 %v6511_v20, %v3116_v34  ;;  %v7030_v5 = vld [vmem:[#allocation31_spill] sm:$0xff] }
 0x811   : > { %v6640_v31 = vmul.f32 %v6486_v63, %v3115_v23  ;;  %v3082_v13 = vmul.f32 %v6470_v40, %v3769_v18  ;;  %v6643_v38 = vmul.f32 %v3285_v19, %v2885_v53  ;;  %v3268_v48 = vsel %vm3236_vm6, %v3252_v10, %v3220_v37 }
 0x812   : > { %v3266_v17 = vsel %vm3234_vm5, %v3250_v29, %v3218_v35  ;;  %v3080_v26 = vmul.f32 %v6432_v25, %v3767_v3  ;;  %v3284_v9 = vadd.f32 1.0, %v3268_v48  ;;  %v3113_v42 = vmul.f32 %v6417_v50, %v3097_v27  ;;  %v7026_v35 = vld [vmem:[#allocation30_spill] sm:$0xff] }
 0x813   : > { %v3098_v24 = vadd.f32 0.2548296, %v3082_v13  ;;  %v3095_v20 = vadd.f32 0.2548296, %v6525_v49  ;;  %3332 = vadd.xlane.f32.xlu0 %v6643_v38  ;;  %v3281_v63 = vadd.f32 1.0, %v3265_v30  ;;  %v3246_v2 = vsub.f32 0.0, %v3214_v0 }
 0x814   : > { %v3096_v53 = vadd.f32 0.2548296, %v3080_v26  ;;  %v3030_v4 = vadd.f32 1.4214138, %v6508_v7  ;;  %v6655_v39 = vmul.f32 %v3284_v9, %v6602_v6  ;;  %v3282_v55 = vadd.f32 1.0, %v3266_v17  ;;  %v7025_v6 = vld [vmem:[#allocation32_spill] sm:$0xff] }
 0x815   : > { %v3264_v46 = vsel %vm3232_vm7, %v3248_v11, %v3216_v56  ;;  %v3114_v52 = vmul.f32 %v6470_v40, %v3098_v24  ;;  %v6661_v50 = vmul.f32 %v3283_v32, %v6581_v44  ;;  %v3212_v49 = vsub.f32 1.0, %v3196_v43  ;;  %v7033_v30 = vld [vmem:[#allocation18_spill] sm:$0xff]  ;;  %v7038_v24 = vld [vmem:[#allocation29_spill] sm:$0xff] }
 0x816   : > { %v3112_v1 = vmul.f32 %v6432_v25, %v3096_v53  ;;  %v3046_v61 = vmul.f32 %v6438_v51, %v3030_v4  ;;  %3330 = vadd.xlane.f32.xlu1 %v6655_v39  ;;  %v3211_v7 = vsub.f32 1.0, %v6640_v31  ;;  %v3193_v36 = vmul.f32 %v7026_v35, %v3113_v42  ;;  %v7036_v31 = vld [vmem:[#allocation24_spill] sm:$0xff]  ;;  %v7037_v9 = vld [vmem:[#allocation10_spill] sm:$0xff] }
 0x817   : > { %v3194_v28 = vmul.f32 %v7025_v6, %v3114_v52  ;;  %v3111_v22 = vmul.f32 %v7027_v54, %v3095_v20  ;;  %v2879_v40 = vmul.f32 0.5, %v7028_v41  ;;  %3328 = vadd.xlane.f32.xlu0 %v6661_v50  ;;  %v3279_v44 = vadd.f32 1.0, %v3263_v59  ;;  %v7032_v59 = vld [vmem:[#allocation27_spill] sm:$0xff]  ;;  %v7039_v20 = vld [vmem:[#allocation22_spill] sm:$0xff]  ;;  %v7040_v52 = vld [vmem:[#allocation9_spill] sm:$0xff] }
 0x818   : > { %v3262_v25 = vsel %vm3230_vm8, %v3246_v2, %v3214_v0  ;;  %v3765_v16 = vadd.f32 -0.28449672, %v3046_v61  ;;  %v6675_v47 = vmul.f32 %v3282_v55, %v6584_v8  ;;  %v6678_v56 = vmul.f32 %v3281_v63, %v7029_v21  ;;  %v7031_v0 = vld [vmem:[#allocation28_spill] sm:$0xff]  ;;  %v7043_v35 = vld [vmem:[#allocation14_spill] sm:$0xff] }
 0x819   : > { %v3280_v23 = vadd.f32 1.0, %v3264_v46  ;;  %v3261_v62 = vsel %vm3229_vm9, %v6617_v15, %v3213_v60  ;;  %v3244_v34 = vsub.f32 0.0, %v3212_v49  ;;  %v3210_v58 = vsub.f32 1.0, %v3194_v28  ;;  %v7042_v28 = vld [vmem:[#allocation13_spill] sm:$0xff] }
 0x81a   : > { %v3192_v37 = vmul.f32 %v7030_v5, %v3112_v1  ;;  %v3078_v12 = vmul.f32 %v6438_v51, %v3765_v16  ;;  %v2880_v33 = vmul.f32 0.5, %v7031_v0  ;;  %3326 = vadd.xlane.f32.xlu1 %v6675_v47  ;;  %v3243_v8 = vsub.f32 0.0, %v3211_v7 }
 0x81b   : > { %v3209_v29 = vsub.f32 1.0, %v3193_v36  ;;  %v3191_v45 = vmul.f32 %v7032_v59, %v3111_v22  ;;  %vm3227_vm10 = vcmp.lt.f32.partialorder %v7033_v30, 0.0  ;;  %v2877_v18 = vmul.f32 0.5, %v7034_v57  ;;  %3324 = vadd.xlane.f32.xlu0 %v6678_v56 }
 0x81c   : > { %v3094_v60 = vadd.f32 0.2548296, %v3078_v12  ;;  %v6694_v15 = vmul.f32 %v3280_v23, %v2880_v33  ;;  %v6696_v27 = vmul.f32 %v3279_v44, %v2879_v40  ;;  %v3278_v19 = vadd.f32 1.0, %v3262_v25  ;;  %v7044_v25 = vld [vmem:[#allocation16_spill] sm:$0xff]  ;;  %v7047_v33 = vld [vmem:[#allocation17_spill] sm:$0xff] }
 0x81d   : > { %v3277_v10 = vadd.f32 1.0, %v3261_v62  ;;  %v3260_v11 = vsel %vm3228_vm11, %v3244_v34, %v3212_v49  ;;  %v3242_v3 = vsub.f32 0.0, %v3210_v58  ;;  %v3208_v32 = vsub.f32 1.0, %v3192_v37  ;;  %v7045_v23 = vld [vmem:[#allocation12_spill] sm:$0xff]  ;;  %v7046_v34 = vld [vmem:[#allocation15_spill] sm:$0xff] }
 0x81e   : > { %v3110_v43 = vmul.f32 %v6438_v51, %v3094_v60  ;;  %v2878_v13 = vmul.f32 0.5, %v7036_v31  ;;  %3322 = vadd.xlane.f32.xlu1 %v6694_v15  ;;  %v3259_v48 = vsel %vm3227_vm10, %v3243_v8, %v3211_v7  ;;  %v3241_v17 = vsub.f32 0.0, %v3209_v29  ;;  %v7041_v7 = vld [vmem:[#allocation21_spill] sm:$0xff] }
 0x81f   : > { %v3207_v26 = vsub.f32 1.0, %v3191_v45  ;;  %vm3225_vm12 = vcmp.lt.f32.partialorder %v7037_v9, 0.0  ;;  %3320 = vadd.xlane.f32.xlu0 %v6696_v27  ;;  %vm3226_vm13 = vcmp.lt.f32.partialorder %v7039_v20, 0.0  ;;  %v6707_v2 = vmul.f32 %v3277_v10, %v2877_v18  ;;  %v7049_v18 = vld [vmem:[#allocation19_spill] sm:$0xff] }
 0x820   : > { %v3190_v42 = vmul.f32 %v7038_v24, %v3110_v43  ;;  %v6705_v63 = vmul.f32 %v3278_v19, %v2878_v13  ;;  %v3276_v51 = vadd.f32 1.0, %v3260_v11  ;;  %v3275_v53 = vadd.f32 1.0, %v3259_v48 }
 0x821   : > { %v3258_v4 = vsel %vm3226_vm13, %v3242_v3, %v3210_v58  ;;  %v3240_v55 = vsub.f32 0.0, %v3208_v32  ;;  %v2876_v49 = vmul.f32 0.5, %v7040_v52  ;;  %v3257_v1 = vsel %vm3225_vm12, %v3241_v17, %v3209_v29  ;;  %v7048_v29 = vld [vmem:[#allocation11_spill] sm:$0xff] }
 0x822   : > { %v3206_v46 = vsub.f32 1.0, %v3190_v42  ;;  %3318 = vadd.xlane.f32.xlu1 %v6705_v63  ;;  %v3239_v61 = vsub.f32 0.0, %v3207_v26  ;;  %v2875_v6 = vmul.f32 0.5, %v7041_v7  ;;  %vm3223_vm14 = vcmp.lt.f32.partialorder %v7042_v28, 0.0 }
 0x823   : > { %3316 = vadd.xlane.f32.xlu0 %v6707_v2  ;;  %vm3224_vm15 = vcmp.lt.f32.partialorder %v7043_v35, 0.0  ;;  %v6715_v36 = vmul.f32 %v3276_v51, %v2876_v49  ;;  %v3274_v54 = vadd.f32 1.0, %v3258_v4  ;;  %v3273_v41 = vadd.f32 1.0, %v3257_v1 }
 0x824   : > { %v6717_v22 = vmul.f32 %v3275_v53, %v2875_v6  ;;  %v3256_v40 = vsel %vm3224_vm15, %v3240_v55, %v3208_v32  ;;  %v3238_v44 = vsub.f32 0.0, %v3206_v46  ;;  %v2874_v16 = vmul.f32 0.5, %v7044_v25 }
 0x825   : > { %v3255_v21 = vsel %vm3223_vm14, %v3239_v61, %v3207_v26  ;;  %v2873_v62 = vmul.f32 0.5, %v7045_v23  ;;  %vm3222_vm0 = vcmp.lt.f32.partialorder %v7046_v34, 0.0  ;;  %v3272_v5 = vadd.f32 1.0, %v3256_v40 }
 0x826   : > { %3314 = vadd.xlane.f32.xlu1 %v6715_v36  ;;  %v6724_v58 = vmul.f32 %v3274_v54, %v2874_v16  ;;  %v3271_v12 = vadd.f32 1.0, %v3255_v21  ;;  %v3254_v0 = vsel %vm3222_vm0, %v3238_v44, %v3206_v46  ;;  %v2872_v8 = vmul.f32 0.5, %v7047_v33 }
 0x827   : > { %3312 = vadd.xlane.f32.xlu0 %v6717_v22  ;;  %v6726_v37 = vmul.f32 %v3273_v41, %v2873_v62  ;;  %v2871_v59 = vmul.f32 0.5, %v7048_v29  ;;  %v3270_v30 = vadd.f32 1.0, %v3254_v0  ;;  %v2870_v14 = vmul.f32 0.5, %v7049_v18 }
 0x828   : > { %v6732_v45 = vmul.f32 %v3272_v5, %v2872_v8  ;;  %vm4641_vm1 = vmmov 0  }
 0x829   : > { %v6734_v57 = vmul.f32 %v3271_v12, %v2871_v59  ;;  %v6739_v60 = vmul.f32 %v3270_v30, %v2870_v14 }
 0x82a   : > { %3310 = vadd.xlane.f32.xlu1 %v6724_v58 }
 0x82b   : > { %3308 = vadd.xlane.f32.xlu0 %v6726_v37 }
 0x82e   : > { %3306 = vadd.xlane.f32.xlu1 %v6732_v45 }
 0x82f   : > { %3304 = vadd.xlane.f32.xlu0 %v6734_v57 }
 0x832   : > { %3302 = vadd.xlane.f32.xlu1 %v6739_v60 }
 0x89c   : > { %v3333_v19 = vpop.xlane.xlu0 %3332 }
 0x89d   : > { %v3349_v10 = vmul.f32 0.0078125, %v3333_v19 }
 0x89f   : > { %v6743_v11 = vsub.f32 %v6643_v38, %v3349_v10  ;;  %v3331_v3 = vpop.xlane.xlu1 %3330 }
 0x8a0   : > { %v3348_v32 = vmul.f32 0.0078125, %v3331_v3  ;;  %v3329_v43 = vpop.xlane.xlu0 %3328 }
 0x8a1   : > { %v3347_v31 = vmul.f32 0.0078125, %v3329_v43  ;;  %v3381_v13 = vmul.f32 %v6743_v11, %v6743_v11 }
 0x8a2   : > { %v6748_v48 = vsub.f32 %v6655_v39, %v3348_v32 }
 0x8a3   : > { %v6751_v17 = vsub.f32 %v6661_v50, %v3347_v31  ;;  %v3327_v26 = vpop.xlane.xlu1 %3326  ;;  %3412 = vadd.xlane.f32.xlu0 %v3381_v13 }
 0x8a4   : > { %v3346_v9 = vmul.f32 0.0078125, %v3327_v26  ;;  %v3325_v24 = vpop.xlane.xlu0 %3324  ;;  %v3380_v38 = vmul.f32 %v6748_v48, %v6748_v48 }
 0x8a5   : > { %v3345_v42 = vmul.f32 0.0078125, %v3325_v24  ;;  %v3379_v20 = vmul.f32 %v6751_v17, %v6751_v17 }
 0x8a6   : > { %v6758_v51 = vsub.f32 %v6675_v47, %v3346_v9  ;;  %3410 = vadd.xlane.f32.xlu1 %v3380_v38 }
 0x8a7   : > { %v6761_v39 = vsub.f32 %v6678_v56, %v3345_v42  ;;  %v3323_v50 = vpop.xlane.xlu1 %3322  ;;  %3408 = vadd.xlane.f32.xlu0 %v3379_v20 }
 0x8a8   : > { %v3344_v53 = vmul.f32 0.0078125, %v3323_v50  ;;  %v3321_v4 = vpop.xlane.xlu0 %3320  ;;  %v3378_v55 = vmul.f32 %v6758_v51, %v6758_v51 }
 0x8a9   : > { %v3343_v46 = vmul.f32 0.0078125, %v3321_v4  ;;  %v3377_v52 = vmul.f32 %v6761_v39, %v6761_v39 }
 0x8aa   : > { %v6768_v49 = vsub.f32 %v6694_v15, %v3344_v53  ;;  %3406 = vadd.xlane.f32.xlu1 %v3378_v55 }
 0x8ab   : > { %v6771_v47 = vsub.f32 %v6696_v27, %v3343_v46  ;;  %v3319_v56 = vpop.xlane.xlu1 %3318  ;;  %3404 = vadd.xlane.f32.xlu0 %v3377_v52 }
 0x8ac   : > { %v3342_v1 = vmul.f32 0.0078125, %v3319_v56  ;;  %v3317_v61 = vpop.xlane.xlu0 %3316  ;;  %v3376_v7 = vmul.f32 %v6768_v49, %v6768_v49 }
 0x8ad   : > { %v3341_v6 = vmul.f32 0.0078125, %v3317_v61  ;;  %v3375_v28 = vmul.f32 %v6771_v47, %v6771_v47 }
 0x8ae   : > { %v6778_v35 = vsub.f32 %v6705_v63, %v3342_v1  ;;  %3402 = vadd.xlane.f32.xlu1 %v3376_v7 }
 0x8af   : > { %v6781_v15 = vsub.f32 %v6707_v2, %v3341_v6  ;;  %v3315_v27 = vpop.xlane.xlu1 %3314  ;;  %3400 = vadd.xlane.f32.xlu0 %v3375_v28 }
 0x8b0   : > { %v3340_v54 = vmul.f32 0.0078125, %v3315_v27  ;;  %v3313_v41 = vpop.xlane.xlu0 %3312  ;;  %v3374_v40 = vmul.f32 %v6778_v35, %v6778_v35 }
 0x8b1   : > { %v3339_v44 = vmul.f32 0.0078125, %v3313_v41  ;;  %v3373_v25 = vmul.f32 %v6781_v15, %v6781_v15 }
 0x8b2   : > { %v6788_v16 = vsub.f32 %v6715_v36, %v3340_v54  ;;  %3398 = vadd.xlane.f32.xlu1 %v3374_v40 }
 0x8b3   : > { %v6791_v63 = vsub.f32 %v6717_v22, %v3339_v44  ;;  %v3311_v2 = vpop.xlane.xlu1 %3310  ;;  %3396 = vadd.xlane.f32.xlu0 %v3373_v25 }
 0x8b4   : > { %v3338_v21 = vmul.f32 0.0078125, %v3311_v2  ;;  %v3309_v23 = vpop.xlane.xlu0 %3308  ;;  %v3372_v62 = vmul.f32 %v6788_v16, %v6788_v16 }
 0x8b5   : > { %v3337_v34 = vmul.f32 0.0078125, %v3309_v23  ;;  %v3371_v5 = vmul.f32 %v6791_v63, %v6791_v63 }
 0x8b6   : > { %v6798_v12 = vsub.f32 %v6724_v58, %v3338_v21  ;;  %3394 = vadd.xlane.f32.xlu1 %v3372_v62 }
 0x8b7   : > { %v6801_v36 = vsub.f32 %v6726_v37, %v3337_v34  ;;  %v3307_v22 = vpop.xlane.xlu1 %3306  ;;  %3392 = vadd.xlane.f32.xlu0 %v3371_v5 }
 0x8b8   : > { %v3336_v0 = vmul.f32 0.0078125, %v3307_v22  ;;  %v3305_v33 = vpop.xlane.xlu0 %3304  ;;  %v3370_v8 = vmul.f32 %v6798_v12, %v6798_v12 }
 0x8b9   : > { %v3335_v29 = vmul.f32 0.0078125, %v3305_v33  ;;  %v3369_v59 = vmul.f32 %v6801_v36, %v6801_v36 }
 0x8ba   : > { %v6808_v30 = vsub.f32 %v6732_v45, %v3336_v0  ;;  %3390 = vadd.xlane.f32.xlu1 %v3370_v8 }
 0x8bb   : > { %v6811_v58 = vsub.f32 %v6734_v57, %v3335_v29  ;;  %v3303_v37 = vpop.xlane.xlu1 %3302  ;;  %3388 = vadd.xlane.f32.xlu0 %v3369_v59  ;;  %v4640_v57 = vmov 0.0  }
 0x8bc   : > { %v3334_v18 = vmul.f32 0.0078125, %v3303_v37  ;;  %v3368_v14 = vmul.f32 %v6808_v30, %v6808_v30  ;;  %4116 = vmatprep.subr.mxu0 %v4640_v57  ;;  %4148 = vmatprep.mubr.msk.f32.mxu0 %vm4641_vm1, %v4640_v57 }
 0x8bd   : > { %v3367_v19 = vmul.f32 %v6811_v58, %v6811_v58 }
 0x8be   : > { %v6818_v10 = vsub.f32 %v6739_v60, %v3334_v18  ;;  %3386 = vadd.xlane.f32.xlu1 %v3368_v14 }
 0x8bf   : > { %3384 = vadd.xlane.f32.xlu0 %v3367_v19 }
 0x8c0   : > { %v3366_v45 = vmul.f32 %v6818_v10, %v6818_v10 }
 0x8c2   : > { %3382 = vadd.xlane.f32.xlu1 %v3366_v45 }
 0x92c   : > { %v3413_v3 = vpop.xlane.xlu0 %3412 }
 0x92d   : > { %v3429_v32 = vmul.f32 0.0078125, %v3413_v3 }
 0x92f   : > { %v3445_v43 = vadd.f32 1e-05, %v3429_v32  ;;  %v3411_v31 = vpop.xlane.xlu1 %3410 }
 0x930   : > { %v3428_v13 = vmul.f32 0.0078125, %v3411_v31  ;;  %v3409_v26 = vpop.xlane.xlu0 %3408 }
 0x931   : > { %4536 = vrsqrt.f32 %v3445_v43  ;;  %v3427_v60 = vmul.f32 0.0078125, %v3409_v26 }
 0x932   : > { %v3444_v9 = vadd.f32 1e-05, %v3428_v13 }
 0x933   : > { %v3443_v24 = vadd.f32 1e-05, %v3427_v60  ;;  %v3407_v38 = vpop.xlane.xlu1 %3406 }
 0x934   : > { %4538 = vrsqrt.f32 %v3444_v9  ;;  %v3426_v42 = vmul.f32 0.0078125, %v3407_v38  ;;  %v3405_v20 = vpop.xlane.xlu0 %3404 }
 0x935   : > { %4540 = vrsqrt.f32 %v3443_v24  ;;  %v3425_v53 = vmul.f32 0.0078125, %v3405_v20 }
 0x936   : > { %v3442_v50 = vadd.f32 1e-05, %v3426_v42 }
 0x937   : > { %v3403_v4 = vpop.xlane.xlu1 %3402  ;;  %v3441_v55 = vadd.f32 1e-05, %v3425_v53 }
 0x938   : > { %4542 = vrsqrt.f32 %v3442_v50  ;;  %v3424_v46 = vmul.f32 0.0078125, %v3403_v4  ;;  %v3401_v52 = vpop.xlane.xlu0 %3400 }
 0x939   : > { %4544 = vrsqrt.f32 %v3441_v55  ;;  %v3423_v61 = vmul.f32 0.0078125, %v3401_v52 }
 0x93a   : > { %v3440_v1 = vadd.f32 1e-05, %v3424_v46 }
 0x93b   : > { %v3399_v6 = vpop.xlane.xlu1 %3398  ;;  %v3439_v27 = vadd.f32 1e-05, %v3423_v61  ;;  %v3478_v61 = vld [vmem:[%s6871_s5] sm:$0xff] }
 0x93c   : > { %4546 = vrsqrt.f32 %v3440_v1  ;;  %v3422_v54 = vmul.f32 0.0078125, %v3399_v6  ;;  %v3397_v44 = vpop.xlane.xlu0 %3396 }
 0x93d   : > { %4548 = vrsqrt.f32 %v3439_v27  ;;  %v3421_v2 = vmul.f32 0.0078125, %v3397_v44 }
 0x93e   : > { %v4537_v56 = vpop.eup %4536  ;;  %v3438_v25 = vadd.f32 1e-05, %v3422_v54 }
 0x93f   : > { %v3477_v7 = vmul.f32 %v4537_v56, %v6743_v11  ;;  %v3395_v23 = vpop.xlane.xlu1 %3394  ;;  %v3437_v62 = vadd.f32 1e-05, %v3421_v2 }
 0x940   : > { %4550 = vrsqrt.f32 %v3438_v25  ;;  %v3420_v34 = vmul.f32 0.0078125, %v3395_v23  ;;  %v3393_v22 = vpop.xlane.xlu0 %3392 }
 0x941   : > { %v4539_v28 = vpop.eup %4538  ;;  %4117 = vmatpush3.xpose.msra.mxu0 %v3477_v7  ;;  %4552 = vrsqrt.f32 %v3437_v62  ;;  %v3419_v33 = vmul.f32 0.0078125, %v3393_v22 }
 0x942   : > { %4118 = vmatprep.subr.mxu0 %v4640_v57  ;;  %v3476_v41 = vmul.f32 %v4539_v28, %v6748_v48  ;;  %v4541_v40 = vpop.eup %4540  ;;  %v3436_v0 = vadd.f32 1e-05, %v3420_v34 }
 0x943   : > { %v3475_v11 = vmul.f32 %v4541_v40, %v6751_v17  ;;  %v3391_v29 = vpop.xlane.xlu1 %3390  ;;  %v3435_v59 = vadd.f32 1e-05, %v3419_v33 }
 0x944   : > { %4554 = vrsqrt.f32 %v3436_v0  ;;  %v3418_v37 = vmul.f32 0.0078125, %v3391_v29  ;;  %v3389_v14 = vpop.xlane.xlu0 %3388 }
 0x945   : > { %4119 = vmatpush3.xpose.msra.mxu0 %v3476_v41  ;;  %v4543_v21 = vpop.eup %4542  ;;  %4556 = vrsqrt.f32 %v3435_v59  ;;  %v3417_v45 = vmul.f32 0.0078125, %v3389_v14 }
 0x946   : > { %4120 = vmatprep.subr.mxu0 %v4640_v57  ;;  %v3474_v48 = vmul.f32 %v4543_v21, %v6758_v51  ;;  %v4545_v5 = vpop.eup %4544  ;;  %v3434_v19 = vadd.f32 1e-05, %v3418_v37 }
 0x947   : > { %v3473_v17 = vmul.f32 %v4545_v5, %v6761_v39  ;;  %v3387_v32 = vpop.xlane.xlu1 %3386  ;;  %v3433_v43 = vadd.f32 1e-05, %v3417_v45 }
 0x948   : > { %4558 = vrsqrt.f32 %v3434_v19  ;;  %v3416_v31 = vmul.f32 0.0078125, %v3387_v32  ;;  %v3385_v26 = vpop.xlane.xlu0 %3384 }
 0x949   : > { %4121 = vmatpush3.xpose.msra.mxu0 %v3475_v11  ;;  %v4547_v8 = vpop.eup %4546  ;;  %4560 = vrsqrt.f32 %v3433_v43  ;;  %v3415_v9 = vmul.f32 0.0078125, %v3385_v26 }
 0x94a   : > { %4122 = vmatprep.subr.mxu0 %v4640_v57  ;;  %v3472_v51 = vmul.f32 %v4547_v8, %v6768_v49  ;;  %v4549_v18 = vpop.eup %4548  ;;  %v3432_v60 = vadd.f32 1e-05, %v3416_v31 }
 0x94b   : > { %v3471_v39 = vmul.f32 %v4549_v18, %v6771_v47  ;;  %v3383_v38 = vpop.xlane.xlu1 %3382  ;;  %v3431_v42 = vadd.f32 1e-05, %v3415_v9 }
 0x94c   : > { %4562 = vrsqrt.f32 %v3432_v60  ;;  %v3414_v20 = vmul.f32 0.0078125, %v3383_v38 }
 0x94d   : > { %4123 = vmatpush3.xpose.msra.mxu0 %v3474_v48  ;;  %v4551_v3 = vpop.eup %4550  ;;  %4564 = vrsqrt.f32 %v3431_v42 }
 0x94e   : > { %4124 = vmatprep.subr.mxu0 %v4640_v57  ;;  %v3470_v49 = vmul.f32 %v4551_v3, %v6778_v35  ;;  %v4553_v13 = vpop.eup %4552  ;;  %v3430_v53 = vadd.f32 1e-05, %v3414_v20 }
 0x94f   : > { %v3469_v47 = vmul.f32 %v4553_v13, %v6781_v15 }
 0x950   : > { %4566 = vrsqrt.f32 %v3430_v53 }
 0x951   : > { %4125 = vmatpush3.xpose.msra.mxu0 %v3473_v17  ;;  %v4555_v24 = vpop.eup %4554 }
 0x952   : > { %4126 = vmatprep.subr.mxu0 %v4640_v57  ;;  %v3468_v35 = vmul.f32 %v4555_v24, %v6788_v16  ;;  %v4557_v50 = vpop.eup %4556 }
 0x953   : > { %v3467_v4 = vmul.f32 %v4557_v50, %v6791_v63 }
 0x955   : > { %4127 = vmatpush3.xpose.msra.mxu0 %v3472_v51  ;;  %v4559_v55 = vpop.eup %4558 }
 0x956   : > { %4128 = vmatprep.subr.mxu0 %v4640_v57  ;;  %v3466_v15 = vmul.f32 %v4559_v55, %v6798_v12  ;;  %v4561_v46 = vpop.eup %4560 }
 0x957   : > { %v3465_v16 = vmul.f32 %v4561_v46, %v6801_v36 }
 0x959   : > { %4129 = vmatpush3.xpose.msra.mxu0 %v3471_v39  ;;  %v4563_v52 = vpop.eup %4562 }
 0x95a   : > { %4130 = vmatprep.subr.mxu0 %v4640_v57  ;;  %v3464_v63 = vmul.f32 %v4563_v52, %v6808_v30  ;;  %v4565_v56 = vpop.eup %4564  ;;  %v3550_v30 = vstv %s3549_s9 }
 0x95b   : > { %v3463_v12 = vmul.f32 %v4565_v56, %v6811_v58 }
 0x95d   : > { %4131 = vmatpush3.xpose.msra.mxu0 %v3470_v49  ;;  %v4567_v1 = vpop.eup %4566 }
 0x95e   : > { %4132 = vmatprep.subr.mxu0 %v4640_v57  ;;  %v3462_v36 = vmul.f32 %v4567_v1, %v6818_v10 }
 0x961   : > { %4133 = vmatpush3.xpose.msra.mxu0 %v3469_v47 }
 0x962   : > { %4134 = vmatprep.subr.mxu0 %v4640_v57 }
 0x965   : > { %4135 = vmatpush3.xpose.msra.mxu0 %v3468_v35 }
 0x966   : > { %4136 = vmatprep.subr.mxu0 %v4640_v57 }
 0x969   : > { %4137 = vmatpush3.xpose.msra.mxu0 %v3467_v4 }
 0x96a   : > { %4138 = vmatprep.subr.mxu0 %v4640_v57 }
 0x96d   : > { %4139 = vmatpush3.xpose.msra.mxu0 %v3466_v15 }
 0x96e   : > { %4140 = vmatprep.subr.mxu0 %v4640_v57 }
 0x971   : > { %4141 = vmatpush3.xpose.msra.mxu0 %v3465_v16 }
 0x972   : > { %4142 = vmatprep.subr.mxu0 %v4640_v57 }
 0x975   : > { %4143 = vmatpush3.xpose.msra.mxu0 %v3464_v63 }
 0x976   : > { %4144 = vmatprep.subr.mxu0 %v4640_v57 }
 0x979   : > { %4145 = vmatpush3.xpose.msra.mxu0 %v3463_v12 }
 0x97a   : > { %4146 = vmatprep.subr.mxu0 %v4640_v57 }
 0x97d   : > { %4147 = vmatpush3.xpose.msra.mxu0 %v3462_v36 }
 0x980   : > { %4149 = vmatmul.mubr.f32.vlgmr.msra.gmra.mxu0 %v3478_v61 }
 0xa40   : > { %v3545_v58 = vpop.f32.mrf.mxu0 }
 0xa41   : > { %v3551_v7 = vadd.f32 %v3550_v30, %v3545_v58 }
 0xa42   : > { %v4150_v6 = vpop.f32.mrf.mxu0 }
 0xa43   : > { %3552 = vst [vmem:[%s327_s12 - $0x4] sm:$0x10] %v3551_v7 }
 0xa44 PF: > { %s20_s26 = sadd.s32 1, %s4634_s26  }
 0xa45   : > { %p17_p3 = scmp.ge.s32.totalorder %s20_s26, 4  }
 0xa47   :  { %19 = sbr.rel (!%p17_p3) target bundleno = 4 (0x4), region = 87 }
 0xa4c   :  { %3570 = vsyncpa [#allocation4], 1 }
 0xa4d   :  { %3572 = vsyncpa [#allocation4 + $0x1], 1 }
 0xa4e   :  { %3573 = vsyncpa [#allocation6], 1 }

</bundles_post_ra>
